<compile_context>
chip_gen: v7x
topology: tpu7x:2x2x1
jax: 0.10.0
libtpu: 0.0.40
codegen_flags: <defaults>
</compile_context>

<pallas_src>
import functools
import math

import jax
import jax.numpy as jnp
from jax.experimental import pallas as pl
from jax.experimental.pallas import tpu as pltpu

# Make the pure-JAX reference matmuls f32-accurate so they match the
# f32-accumulating MXU matmuls inside the Pallas kernels.
jax.config.update("jax_default_matmul_precision", "highest")

EPS = 1e-5   # nn.LayerNorm default eps
TM = 256     # token tile (rows / grid step): multiple of 8, >=256 amortizes per-step overhead


def _gelu_tanh(x):
    # TODO(synk): nn.GELU default is the exact erf formulation; the tanh
    # approximation (EUP-friendly) is used here and in the reference.
    c = math.sqrt(2.0 / math.pi)
    return 0.5 * x * (1.0 + jnp.tanh(c * (x + 0.044715 * x * x * x)))


# --------------------------------------------------------------------------
# Kernel 1: LayerNorm (affine folded into W/b) + Linear   ->  qkv projection
# --------------------------------------------------------------------------
def _ln_linear_kernel(x_ref, w_ref, b_ref, o_ref):
    x = x_ref[...].astype(jnp.float32)
    mean = jnp.mean(x, axis=-1, keepdims=True)
    xc = x - mean
    var = jnp.mean(xc * xc, axis=-1, keepdims=True)
    normed = xc * jax.lax.rsqrt(var + EPS)
    y = jnp.dot(normed.astype(w_ref.dtype), w_ref[...],
                preferred_element_type=jnp.float32)
    o_ref[...] = (y + b_ref[...].astype(jnp.float32)).astype(o_ref.dtype)


def ln_linear(x2d, w, b, *, tm=TM):
    M, D = x2d.shape
    Dout = w.shape[1]
    tm = min(tm, M)
    return pl.pallas_call(
        _ln_linear_kernel,
        out_shape=jax.ShapeDtypeStruct((M, Dout), x2d.dtype),
        grid_spec=pltpu.PrefetchScalarGridSpec(
            num_scalar_prefetch=0,
            grid=(pl.cdiv(M, tm),),
            in_specs=[
                pl.BlockSpec((tm, D), lambda i: (i, 0)),      # token tile
                pl.BlockSpec((D, Dout), lambda i: (0, 0)),    # VMEM-resident weight
                pl.BlockSpec((1, Dout), lambda i: (0, 0)),    # VMEM-resident bias
            ],
            out_specs=pl.BlockSpec((tm, Dout), lambda i: (i, 0)),
        ),
        compiler_params=pltpu.CompilerParams(dimension_semantics=("parallel",)),
    )(x2d, w, b.reshape(1, Dout))


# --------------------------------------------------------------------------
# Kernel 2: per-(window, head) softmax attention
# --------------------------------------------------------------------------
def _attn_kernel(q_ref, k_ref, v_ref, o_ref, *, scale):
    q = q_ref[0].astype(jnp.float32) * scale           # (S, hd)
    k = k_ref[0].astype(jnp.float32)                   # (S, hd)
    v = v_ref[0].astype(jnp.float32)                   # (S, hd)
    s = jax.lax.dot_general(q, k, (((1,), (1,)), ((), ())),
                            preferred_element_type=jnp.float32)   # (S, S)
    s = s - jnp.max(s, axis=-1, keepdims=True)
    p = jnp.exp(s)
    p = p / jnp.sum(p, axis=-1, keepdims=True)
    o = jnp.dot(p, v, preferred_element_type=jnp.float32)
    o_ref[0] = o.astype(o_ref.dtype)


def attention(q, k, v, scale):
    BH, S, hd = q.shape
    kernel = functools.partial(_attn_kernel, scale=float(scale))
    spec = pl.BlockSpec((1, S, hd), lambda i: (i, 0, 0))
    return pl.pallas_call(
        kernel,
        out_shape=jax.ShapeDtypeStruct((BH, S, hd), q.dtype),
        grid_spec=pltpu.PrefetchScalarGridSpec(
            num_scalar_prefetch=0,
            grid=(BH,),
            in_specs=[spec, spec, spec],
            out_specs=spec,
        ),
        compiler_params=pltpu.CompilerParams(dimension_semantics=("parallel",)),
    )(q, k, v)


# --------------------------------------------------------------------------
# Kernel 3: attn-proj + residual + LayerNorm2 (affine folded into W1/b1) + MLP + residual
# --------------------------------------------------------------------------
def _proj_res_mlp_kernel(y_ref, sc_ref, wp_ref, bp_ref,
                         w1_ref, b1_ref, w2_ref, b2_ref, o_ref):
    y = y_ref[...].astype(jnp.float32)
    sc = sc_ref[...].astype(jnp.float32)

    x1 = jnp.dot(y.astype(wp_ref.dtype), wp_ref[...],
                 preferred_element_type=jnp.float32)
    x1 = x1 + bp_ref[...].astype(jnp.float32) + sc        # first residual

    mean = jnp.mean(x1, axis=-1, keepdims=True)
    xc = x1 - mean
    var = jnp.mean(xc * xc, axis=-1, keepdims=True)
    n2 = xc * jax.lax.rsqrt(var + EPS)

    h = jnp.dot(n2.astype(w1_ref.dtype), w1_ref[...],
                preferred_element_type=jnp.float32)
    h = _gelu_tanh(h + b1_ref[...].astype(jnp.float32))
    m = jnp.dot(h.astype(w2_ref.dtype), w2_ref[...],
                preferred_element_type=jnp.float32)
    o_ref[...] = (x1 + m + b2_ref[...].astype(jnp.float32)).astype(o_ref.dtype)


def proj_res_mlp(y2d, sc2d, wp, bp, w1, b1, w2, b2, *, tm=TM):
    M, D = y2d.shape
    F = w1.shape[1]
    tm = min(tm, M)
    return pl.pallas_call(
        _proj_res_mlp_kernel,
        out_shape=jax.ShapeDtypeStruct((M, D), y2d.dtype),
        grid_spec=pltpu.PrefetchScalarGridSpec(
            num_scalar_prefetch=0,
            grid=(pl.cdiv(M, tm),),
            in_specs=[
                pl.BlockSpec((tm, D), lambda i: (i, 0)),    # attention output tile
                pl.BlockSpec((tm, D), lambda i: (i, 0)),    # residual shortcut tile
                pl.BlockSpec((D, D), lambda i: (0, 0)),     # Wproj (resident)
                pl.BlockSpec((1, D), lambda i: (0, 0)),
                pl.BlockSpec((D, F), lambda i: (0, 0)),     # W1 (resident)
                pl.BlockSpec((1, F), lambda i: (0, 0)),
                pl.BlockSpec((F, D), lambda i: (0, 0)),     # W2 (resident)
                pl.BlockSpec((1, D), lambda i: (0, 0)),
            ],
            out_specs=pl.BlockSpec((tm, D), lambda i: (i, 0)),
        ),
        compiler_params=pltpu.CompilerParams(dimension_semantics=("parallel",)),
    )(y2d, sc2d, wp, bp.reshape(1, D), w1, b1.reshape(1, F), w2, b2.reshape(1, D))


# --------------------------------------------------------------------------
# Layout helpers (pure jnp, no compute)
# --------------------------------------------------------------------------
def window_partition_jax(x, ws):
    B, H, W, C = x.shape
    pad_h = (ws - H % ws) % ws
    pad_w = (ws - W % ws) % ws
    if pad_h > 0 or pad_w > 0:
        x = jnp.pad(x, ((0, 0), (0, pad_h), (0, pad_w), (0, 0)))
    Hp, Wp = H + pad_h, W + pad_w
    x = x.reshape(B, Hp // ws, ws, Wp // ws, ws, C)
    windows = x.transpose(0, 1, 3, 2, 4, 5).reshape(-1, ws, ws, C)
    return windows, (Hp, Wp)


def window_unpartition_jax(windows, ws, pad_hw, hw):
    Hp, Wp = pad_hw
    H, W = hw
    B = windows.shape[0] // (Hp * Wp // ws // ws)
    x = windows.reshape(B, Hp // ws, Wp // ws, ws, ws, -1)
    x = x.transpose(0, 1, 3, 2, 4, 5).reshape(B, Hp, Wp, -1)
    if Hp > H or Wp > W:
        x = x[:, :H, :W, :]
    return x


# --------------------------------------------------------------------------
# Block forward (Pallas pipeline)
# --------------------------------------------------------------------------
def block_forward(x, p, *, num_heads, window_size=0, tm=TM):
    B, H, W, D = x.shape
    M0 = B * H * W
    hd = D // num_heads
    scale = hd ** -0.5
    dt = x.dtype

    x2d = x.reshape(M0, D)

    # norm1 + qkv; LayerNorm affine folded into the projection (exact algebra).
    wqkv_f = p["gamma1"][:, None] * p["wqkv"]
    bqkv_f = p["beta1"] @ p["wqkv"] + p["bqkv"]
    qkv2d = ln_linear(x2d, wqkv_f, bqkv_f, tm=tm)                 # (M0, 3D)

    # Window partition is a per-token permutation, so it commutes with the
    # per-token qkv projection (valid when no padding is needed).
    if window_size > 0:
        if H % window_size or W % window_size:
            # TODO(synk): padded-window path (F.pad of the normed activations) not implemented.
            raise NotImplementedError("window padding path not supported")
        qkv_w, _ = window_partition_jax(qkv2d.reshape(B, H, W, 3 * D), window_size)
        S = window_size * window_size
        qkv_w = qkv_w.reshape(-1, S, 3 * D)
    else:
        S = H * W
        qkv_w = qkv2d.reshape(B, S, 3 * D)
    Bw = qkv_w.shape[0]

    qkv_h = qkv_w.reshape(Bw, S, 3, num_heads, hd).transpose(2, 0, 3, 1, 4)
    qkv_h = qkv_h.reshape(3, Bw * num_heads, S, hd)
    q, k, v = qkv_h[0], qkv_h[1], qkv_h[2]

    # TODO(synk): use_rel_pos (decomposed relative position bias) not implemented
    # (module default use_rel_pos=False).
    o = attention(q, k, v, scale)                                 # (Bw*nh, S, hd)
    o = o.reshape(Bw, num_heads, S, hd).transpose(0, 2, 1, 3).reshape(Bw, S, D)

    if window_size > 0:
        o = window_unpartition_jax(o.reshape(Bw, window_size, window_size, D),
                                   window_size, (H, W), (H, W))
    o2d = o.reshape(M0, D).astype(dt)

    # proj + residual + norm2 + MLP + residual; norm2 affine folded into W1/b1.
    w1_f = p["gamma2"][:, None] * p["w1"]
    b1_f = p["beta2"] @ p["w1"] + p["b1"]
    out2d = proj_res_mlp(o2d, x2d, p["wproj"], p["bproj"], w1_f, b1_f,
                         p["w2"], p["b2"], tm=tm)
    return out2d.reshape(B, H, W, D)


# --------------------------------------------------------------------------
# Pure-JAX reference (faithful to the PyTorch Block, unfused)
# --------------------------------------------------------------------------
def reference_block(x, p, *, num_heads, window_size=0):
    B, H, W, D = x.shape
    hd = D // num_heads
    scale = hd ** -0.5
    xf = x.astype(jnp.float32)
    shortcut = xf

    def layer_norm(t, g, b):
        m = jnp.mean(t, axis=-1, keepdims=True)
        v = jnp.mean((t - m) ** 2, axis=-1, keepdims=True)
        return (t - m) * jax.lax.rsqrt(v + EPS) * g + b

    xn = layer_norm(xf, p["gamma1"], p["beta1"])
    if window_size > 0:
        xn_w, pad_hw = window_partition_jax(xn, window_size)
        S = window_size * window_size
    else:
        xn_w, pad_hw = xn, (H, W)
        S = H * W
    Bw = xn_w.shape[0]
    xn_w = xn_w.reshape(Bw, S, D)

    qkv = xn_w @ p["wqkv"] + p["bqkv"]
    qkv = qkv.reshape(Bw, S, 3, num_heads, hd).transpose(2, 0, 3, 1, 4)
    qkv = qkv.reshape(3, Bw * num_heads, S, hd)
    q, k, v = qkv[0], qkv[1], qkv[2]
    attn = (q * scale) @ jnp.swapaxes(k, -2, -1)
    attn = jax.nn.softmax(attn, axis=-1)
    o = (attn @ v).reshape(Bw, num_heads, S, hd).transpose(0, 2, 1, 3).reshape(Bw, S, D)
    o = o @ p["wproj"] + p["bproj"]
    if window_size > 0:
        o = window_unpartition_jax(o.reshape(Bw, window_size, window_size, D),
                                   window_size, pad_hw, (H, W))
    else:
        o = o.reshape(B, H, W, D)

    x1 = shortcut + o
    n2 = layer_norm(x1, p["gamma2"], p["beta2"])
    h = _gelu_tanh(n2 @ p["w1"] + p["b1"])
    out = x1 + h @ p["w2"] + p["b2"]
    return out.astype(x.dtype)


if __name__ == "__main__":
    key = jax.random.PRNGKey(0)
    B, H, W = 2, 16, 16
    D, num_heads, mlp_ratio, window_size = 128, 4, 4.0, 8   # lane-dense D (multiple of 128)
    F = int(D * mlp_ratio)

    ks = jax.random.split(key, 12)
    x = jax.random.normal(ks[0], (B, H, W, D), dtype=jnp.float32)

    def lin(k, fan_in, shape):
        return jax.random.normal(k, shape, dtype=jnp.float32) / math.sqrt(fan_in)

    params = dict(
        gamma1=1.0 + 0.1 * jax.random.normal(ks[1], (D,), jnp.float32),
        beta1=0.1 * jax.random.normal(ks[2], (D,), jnp.float32),
        wqkv=lin(ks[3], D, (D, 3 * D)),
        bqkv=0.02 * jax.random.normal(ks[4], (3 * D,), jnp.float32),
        wproj=lin(ks[5], D, (D, D)),
        bproj=0.02 * jax.random.normal(ks[6], (D,), jnp.float32),
        gamma2=1.0 + 0.1 * jax.random.normal(ks[7], (D,), jnp.float32),
        beta2=0.1 * jax.random.normal(ks[8], (D,), jnp.float32),
        w1=lin(ks[9], D, (D, F)),
        b1=0.02 * jax.random.normal(ks[10], (F,), jnp.float32),
        w2=lin(ks[11], F, (F, D)),
        b2=jnp.zeros((D,), jnp.float32),
    )

    out = block_forward(x, params, num_heads=num_heads, window_size=window_size)
    out = jax.block_until_ready(out)

    ref = reference_block(x, params, num_heads=num_heads, window_size=window_size)
    assert out.shape == (B, H, W, D)
    max_err = float(jnp.max(jnp.abs(out - ref)))
    assert jnp.allclose(out, ref, atol=5e-3, rtol=5e-3), f"mismatch vs reference (max abs err {max_err})"

    print("KERNEL_OK")
</pallas_src>

<mosaic_0001>
module attributes {stable_mosaic.version = 11 : i64} {
  func.func @_ln_linear_kernel(%arg0: i32, %arg1: memref<256x128xf32, #tpu.memory_space<vmem>>, %arg2: memref<128x384xf32, #tpu.memory_space<vmem>>, %arg3: memref<1x384xf32, #tpu.memory_space<vmem>>, %arg4: memref<256x384xf32, #tpu.memory_space<vmem>>) attributes {dimension_semantics = [#tpu.dimension_semantics<parallel>], iteration_bounds = array<i64: 2>, scalar_prefetch = 0 : i64, scratch_operands = 0 : i64, tpu.core_type = #tpu.core_type<tc>, window_params = [{transform_indices = @transform_0, window_bounds = array<i64: 256, 128>}, {pipeline_mode = #tpu.pipeline_mode<synchronous>, transform_indices = @transform_1, window_bounds = array<i64: 128, 384>}, {pipeline_mode = #tpu.pipeline_mode<synchronous>, transform_indices = @transform_2, window_bounds = array<i64: 1, 384>}, {transform_indices = @transform_3, window_bounds = array<i64: 256, 384>}]} {
    %c0 = arith.constant 0 : index
    %c0_0 = arith.constant 0 : index
    %0 = vector.load %arg1[%c0, %c0_0] : memref<256x128xf32, #tpu.memory_space<vmem>>, vector<256x128xf32>
    %cst = arith.constant dense<0.000000e+00> : vector<256xf32>
    %1 = vector.multi_reduction <add>, %0, %cst [1] : vector<256x128xf32> to vector<256xf32>
    %2 = vector.shape_cast %1 : vector<256xf32> to vector<256x1xf32>
    %cst_1 = arith.constant 1.280000e+02 : f32
    %3 = vector.broadcast %cst_1 : f32 to vector<256x1xf32>
    %4 = arith.divf %2, %3 : vector<256x1xf32>
    %5 = vector.broadcast %4 : vector<256x1xf32> to vector<256x128xf32>
    %6 = arith.subf %0, %5 : vector<256x128xf32>
    %7 = arith.mulf %6, %6 : vector<256x128xf32>
    %cst_2 = arith.constant dense<0.000000e+00> : vector<256xf32>
    %8 = vector.multi_reduction <add>, %7, %cst_2 [1] : vector<256x128xf32> to vector<256xf32>
    %9 = vector.shape_cast %8 : vector<256xf32> to vector<256x1xf32>
    %cst_3 = arith.constant 1.280000e+02 : f32
    %10 = vector.broadcast %cst_3 : f32 to vector<256x1xf32>
    %11 = arith.divf %9, %10 : vector<256x1xf32>
    %cst_4 = arith.constant 9.99999974E-6 : f32
    %12 = vector.broadcast %cst_4 : f32 to vector<256x1xf32>
    %13 = arith.addf %11, %12 : vector<256x1xf32>
    %14 = math.rsqrt %13 : vector<256x1xf32>
    %15 = vector.broadcast %14 : vector<256x1xf32> to vector<256x128xf32>
    %16 = arith.mulf %6, %15 : vector<256x128xf32>
    %c0_5 = arith.constant 0 : index
    %c0_6 = arith.constant 0 : index
    %17 = vector.load %arg2[%c0_5, %c0_6] : memref<128x384xf32, #tpu.memory_space<vmem>>, vector<128x384xf32>
    %cst_7 = arith.constant dense<0.000000e+00> : vector<256x384xf32>
    %18 = tpu.matmul %16, %17, %cst_7 {dimension_numbers = #tpu.dot_dimension_numbers<[1], [0], [0], [1], [0, 0, 1, 1], [], []>, precision = #tpu.contract_precision<fp32>} : vector<256x128xf32>, vector<128x384xf32>, vector<256x384xf32> -> vector<256x384xf32>
    %c0_8 = arith.constant 0 : index
    %c0_9 = arith.constant 0 : index
    %19 = vector.load %arg3[%c0_8, %c0_9] : memref<1x384xf32, #tpu.memory_space<vmem>>, vector<1x384xf32>
    %20 = vector.broadcast %19 : vector<1x384xf32> to vector<256x384xf32>
    %21 = arith.addf %18, %20 : vector<256x384xf32>
    %c0_10 = arith.constant 0 : index
    %c0_11 = arith.constant 0 : index
    %22 = vector.load %arg4[%c0_10, %c0_11] : memref<256x384xf32, #tpu.memory_space<vmem>>, vector<256x384xf32>
    tpu.vector_store %arg4[%c0_10, %c0_11], %21 {strides = array<i32>} : memref<256x384xf32, #tpu.memory_space<vmem>>, vector<256x384xf32>,
    return
  }
  func.func @transform_0(%arg0: i32) -> (i32, i32) {
    %c0_i32 = arith.constant 0 : i32
    %c0_i32_0 = arith.constant 0 : i32
    return %arg0, %c0_i32 : i32, i32
  }
  func.func @transform_1(%arg0: i32) -> (i32, i32) {
    %c0_i32 = arith.constant 0 : i32
    %c0_i32_0 = arith.constant 0 : i32
    %c0_i32_1 = arith.constant 0 : i32
    return %c0_i32, %c0_i32_0 : i32, i32
  }
  func.func @transform_2(%arg0: i32) -> (i32, i32) {
    %c0_i32 = arith.constant 0 : i32
    %c0_i32_0 = arith.constant 0 : i32
    %c0_i32_1 = arith.constant 0 : i32
    return %c0_i32, %c0_i32_0 : i32, i32
  }
  func.func @transform_3(%arg0: i32) -> (i32, i32) {
    %c0_i32 = arith.constant 0 : i32
    %c0_i32_0 = arith.constant 0 : i32
    return %arg0, %c0_i32 : i32, i32
  }
}

</mosaic_0001>

<bundles_post_ra>
// kernel: tpu_custom_call.1
= control target key start
LH: loop header
LB: loop body
LE: loop exit
PB: predicated region body
PF: predicated region fallthrough
CT: control target
= control target key end

     0   :  { %8 = vsyncpa [#allocation3], 0  ;;  %s10076_s0 = inlined_call_operand.hbm [shape: f32[512,128], index: 0, kind: input, shape index: {}]   ;;  %s10077_s1 = inlined_call_operand.hbm [shape: f32[128,384], index: 1, kind: input, shape index: {}]   ;;  %s10078_s2 = inlined_call_operand.vmem [shape: f32[1,384], index: 2, kind: input, shape index: {}]   ;;  %s10079_s3 = inlined_call_operand.hbm [shape: f32[512,384], index: 3, kind: output, shape index: {}]  }
   0x1   :  { %10 = vsyncpa [#allocation3 + $0x1], 0 }
   0x2   :  { %11 = vsyncpa [#allocation6], 0 }
   0x3   :  { %12 = vsyncpa [#allocation4], 0 }
   0x4   :  { %14 = vsyncpa [#allocation4 + $0x1], 0  ;;  %s7248_s12 = smov 0   ;;  %s7250_s13 = smov 0  }
   0x5   :  { %s7252_s14 = smov 0   ;;  %s7254_s15 = smov 0  }
   0x6 LB: > { %s7269_s16 = sadd.s32 4294967295, %s7216_s15   ;;  %s5198_s17 = sadd.s32 4294967294, %s7216_s15   ;;  %s7216_s15 = sphi %s7254_s15, %s11098_s15   ;;  %s7212_s14 = sphi %s7252_s14, %s11097_s14   ;;  %s7208_s13 = sphi %s7250_s13, %s11096_s13   ;;  %s7204_s12 = sphi %s7248_s12, %s11095_s12  }
   0x7   : > { %p40_p0 = scmp.ne.s32.totalorder %s7208_s13, %s7204_s12  ;;  %p10080_p1 = scmp.eq.s32.totalorder %s7269_s16, 0 }
   0x8   : > { %p112_p3 = scmp.eq.s32.totalorder %s5198_s17, 1  ;;  %p5199_p5 = scmp.ge.s32.totalorder %s7216_s15, 1 }
   0x9   : > { %p7278_p4 = por %p10080_p1, %p40_p0  ;;  %p119_p7 = scmp.lt.s32.totalorder %s7216_s15, 3 }
   0xa   : > { %p7283_p6 = por %p112_p3, %p40_p0  ;;  %s7218_s21 = smov [#allocation5]  }
   0xb   : > { %s10427_s18 = scalar_select %p7278_p4, 1, 0 }
   0xc   : > { %s10428_s19 = scalar_select %p7283_p6, 1, 0 }
   0xd   : > { %p7288_p8 = pnand %p5199_p5, %p119_p7  ;;  %s131_s22 = sshll.u32 %s7218_s21, 4  ;;  %s7292_s22 = int_to_ptr.vmem [resolvable:$true] %s131_s22 }
   0xe   : > { %s7304_s24 = sadd.s32 1, %s7216_s15   ;;  %s27_s25 = sadd.s32 1, %s7212_s14 }
   0xf   : > { %s10429_s20 = scalar_select %p7288_p8, 1, 0 }
  0x10   : > { %p6968_p9 = pneg %p7288_p8  ;;  %s24_s26 = ssub.s32 %s7216_s15, %s7304_s24 }
  0x11   : > { %s7088_s29 = scalar_lea.hbm %s10077_s1, 6144 }
  0x12   : > { %p7299_p11 = pnand %p6968_p9, %p10080_p1  ;;  %p7089_p12 = scmp.ne.s32.totalorder %s10077_s1, %s7088_s29 }
  0x13   : > { %p7095_p5 = scmp.lt.u32.totalorder %s7088_s29, %s10077_s1 }
  0x14   : > { %p7090_p13 = pneg %p7299_p11 }
  0x16   : > { %p7091_p0 = pnand %p7090_p13, %p7089_p12 }
  0x18   : > { %p7092_p3 = pneg %p7091_p0 }
  0x1a   : > { %p7097_p7 = pnand %p7095_p5, %p7092_p3 }
  0x1c   : > { %7100 = shalt.err (!%p7097_p7)
}
  0x1d   : > { %s7101_s7 = scalar_lea.vmem %s7292_s22, 6144  ;;  %p7109_p2 = scmp.lt.s32.totalorder %s7292_s22, %s7292_s22 }
  0x1e   : > { %p7102_p9 = scmp.ne.s32.totalorder %s7292_s22, %s7101_s7  ;;  %p7110_p6 = scmp.lt.s32.totalorder %s7101_s7, %s7101_s7 }
  0x20   : > { %p7104_p10 = pnand %p7102_p9, %p7090_p13  ;;  %p7111_p4 = por %p7110_p6, %p7109_p2 }
  0x22   : > { %p7105_p1 = pneg %p7104_p10 }
  0x24   : > { %p7112_p8 = pnand %p7111_p4, %p7105_p1 }
  0x26   : > { %7115 = shalt.err (!%p7112_p8)
}
  0x27   : > { %s7219_s8 = smov 384   ;;  %s7220_s9 = smov 24  }
  0x28   : > { %6971 = dma.hbm_to_vmem [thread:$0]  (!%p7299_p11), %s10077_s1, 6144, %s7292_s22, [#allocation6], %s7219_s8, %s7219_s8, %s7220_s9  }
  0x29   : > { %p25_p2 = scmp.eq.s32.totalorder %s24_s26, 0  ;;  %p34_p1 = scmp.ne.s32.totalorder %s7212_s14, %s7208_s13 }
  0x2a   : > { %p35_p4 = scmp.eq.s32.totalorder %s7216_s15, 0  ;;  %p6981_p6 = scmp.lt.s32.totalorder %s7216_s15, 2 }
  0x2b   : > { %s7335_s17 = scalar_select %p25_p2, %s7212_s14, %s27_s25  }
  0x2c   : > { %p36_p8 = por %p35_p4, %p34_p1  ;;  %p10431_p10 = scmp.eq.s32.totalorder %s7269_s16, 1 }
  0x2d   : > { %s148_s27 = sand.u32 1, %s7212_s14   ;;  %s5213_s28 = sshll.u32 %s7216_s15, 12 }
  0x2e   : > { %p7339_p12 = por %p10431_p10, %p34_p1  ;;  %s5202_s29 = sshll.u32 %s148_s27, 8 }
  0x2f   : > { %s7348_s4 = scalar_lea.hbm %s10076_s0, %s5213_s28  ;;  %s152_s22 = scalar_lea.vmem [#allocation2], %s5202_s29 }
  0x30   : > { %s159_s25 = sshll.u32 %s152_s22, 4  ;;  %p7350_p11 = pnand %p6981_p6, %p36_p8  ;;  %s7354_s25 = int_to_ptr.vmem [resolvable:$true] %s159_s25 }
  0x31   : > { %s7356_s5 = scalar_lea.sflag [#allocation3], %s148_s27  ;;  %s7116_s6 = scalar_lea.hbm %s7348_s4, 4096 }
  0x32   : > { %p7117_p13 = scmp.ne.s32.totalorder %s7348_s4, %s7116_s6  ;;  %p7118_p0 = pneg %p7350_p11 }
  0x33   : > { %s7121_s9 = scalar_lea.hbm %s10076_s0, 8192  ;;  %p7122_p7 = scmp.lt.u32.totalorder %s7348_s4, %s10076_s0 }
  0x34   : > { %p7119_p3 = pnand %p7118_p0, %p7117_p13  ;;  %p7123_p9 = scmp.lt.u32.totalorder %s7121_s9, %s7116_s6 }
  0x35   : > { %p7125_p1 = scmp.lt.u32.totalorder %s7116_s6, %s7348_s4 }
  0x36   : > { %p7120_p5 = pneg %p7119_p3  ;;  %p7124_p2 = por %p7123_p9, %p7122_p7 }
  0x38   : > { %p7126_p4 = por %p7125_p1, %p7124_p2 }
  0x3a   : > { %p7127_p6 = pnand %p7126_p4, %p7120_p5 }
  0x3c   : > { %7130 = shalt.err (!%p7127_p6)
}
  0x3d   : > { %s7131_s27 = scalar_lea.vmem %s7354_s25, 4096  ;;  %s7221_s28 = smov [#allocation2]  }
  0x3e   : > { %p7132_p8 = scmp.ne.s32.totalorder %s7354_s25, %s7131_s27  ;;  %s7136_s29 = sshll.u32 %s7221_s28, 4  ;;  %s7137_s29 = int_to_ptr.vmem [resolvable:$false] %s7136_s29 }
  0x3f   : > { %s7138_s23 = scalar_lea.vmem %s7137_s29, 8192  ;;  %p7139_p3 = scmp.lt.s32.totalorder %s7354_s25, %s7137_s29 }
  0x40   : > { %p7134_p10 = pnand %p7132_p8, %p7118_p0  ;;  %p7140_p7 = scmp.lt.s32.totalorder %s7138_s23, %s7131_s27 }
  0x42   : > { %p7135_p13 = pneg %p7134_p10  ;;  %p7141_p9 = por %p7140_p7, %p7139_p3 }
  0x44   : > { %p7142_p2 = pnand %p7141_p9, %p7135_p13 }
  0x46   : > { %7145 = shalt.err (!%p7142_p2)
}
  0x47   : > { %s7222_s30 = smov 128   ;;  %s7223_s22 = smov 8  }
  0x48   : > { %6975 = dma.hbm_to_vmem [thread:$0]  (!%p7350_p11), %s7348_s4, 4096, %s7354_s25, %s7356_s5, %s7222_s30, %s7222_s30, %s7223_s22  }
  0x49   : > { %p10434_p0 = scmp.ne.s32.totalorder %s10429_s20, 0 }
  0x4b   : > { %171 = sbr.rel (%p10434_p0) target bundleno = 1213 (0x4bd), region = 32 }
  0x52   : > { %s7387_s6 = sand.u32 1, %s7208_s13   ;;  %p10435_p5 = scmp.ne.s32.totalorder %s10427_s18, 0 }
  0x53   : > { %s5206_s7 = sshll.u32 %s7387_s6, 8  ;;  %s174_s8 = scalar_lea.sflag [#allocation3], %s7387_s6 }
  0x54   : > { %s7391_s9 = scalar_lea.vmem [#allocation2], %s5206_s7 }
  0x55   : > { %7191 = dma.done.wait (%p10435_p5), %s174_s8, 4096  }
  0x56   : > { %7193 = vsyncadd (%p10435_p5), %s174_s8, 4294963200  ;;  %p10436_p11 = scmp.eq.s32.totalorder %s7269_s16, 0 }
  0x58   : > { %7195 = dma.done.wait (%p10436_p11), [#allocation6], 6144   ;;  %p10437_p1 = pmov %p10436_p11 }
  0x59   : > { %v7402_v0 = vld [vmem:[%s7391_s9 + $0x10] sm:$0xff]  ;;  %v7405_v1 = vld [vmem:[%s7391_s9] sm:$0xff]  ;;  %v7410_v2 = vld [vmem:[%s7391_s9 + $0x18] sm:$0xff]  ;;  %s6958_s4 = smul.u32 768, %s7387_s6  ;;  %s7225_s29 = smov [#allocation7]  }
  0x5a   : > { %7197 = vsyncadd (%p10437_p1), [#allocation6], 4294961152  ;;  %242 = vadd.xlane.f32.xlu1 %v7402_v0  ;;  %238 = vadd.xlane.f32.xlu0 %v7405_v1  ;;  %v7413_v3 = vld [vmem:[%s7391_s9 + $0x8] sm:$0xff]  ;;  %v7421_v5 = vld [vmem:[%s7391_s9 + $0x20] sm:$0xff]  ;;  %s6959_s26 = smul.u32 12288, %s7269_s16  ;;  %s5101_s16 = scalar_lea.sflag [#allocation4], %s7387_s6 }
  0x5b   : > { %v7418_v4 = vld [vmem:[%s7391_s9 + $0x28] sm:$0xff]  ;;  %v7426_v6 = vld [vmem:[%s7391_s9 + $0x38] sm:$0xff]  ;;  %v7429_v7 = vld [vmem:[%s7391_s9 + $0x30] sm:$0xff]  ;;  %s9769_s25 = scalar_lea.vmem [#allocation7], %s6958_s4  ;;  %s7150_s23 = sshll.u32 %s7225_s29, 4  ;;  %s7151_s23 = int_to_ptr.vmem [resolvable:$false] %s7150_s23 }
  0x5c   : > { %v7434_v8 = vld [vmem:[%s7391_s9 + $0x48] sm:$0xff]  ;;  %v7437_v9 = vld [vmem:[%s7391_s9 + $0x40] sm:$0xff]  ;;  %v7442_v10 = vld [vmem:[%s7391_s9 + $0x58] sm:$0xff]  ;;  %s5115_s5 = sshll.u32 %s9769_s25, 4  ;;  %s10027_s27 = scalar_lea.hbm %s10079_s3, %s6959_s26  ;;  %s10029_s5 = int_to_ptr.vmem [resolvable:$true] %s5115_s5 }
  0x5d   : > { %v7445_v11 = vld [vmem:[%s7391_s9 + $0x50] sm:$0xff]  ;;  %v7450_v12 = vld [vmem:[%s7391_s9 + $0x68] sm:$0xff]  ;;  %v7453_v13 = vld [vmem:[%s7391_s9 + $0x60] sm:$0xff]  ;;  %s7146_s28 = scalar_lea.vmem %s10029_s5, 12288  ;;  %s7152_s30 = scalar_lea.vmem %s7151_s23, 24576 }
  0x5e   : > { %244 = vadd.xlane.f32.xlu1 %v7410_v2  ;;  %240 = vadd.xlane.f32.xlu0 %v7413_v3  ;;  %v7458_v14 = vld [vmem:[%s7391_s9 + $0x78] sm:$0xff]  ;;  %v7461_v15 = vld [vmem:[%s7391_s9 + $0x70] sm:$0xff]  ;;  %v7466_v16 = vld [vmem:[%s7391_s9 + $0x88] sm:$0xff]  ;;  %p7147_p4 = scmp.ne.s32.totalorder %s10029_s5, %s7146_s28  ;;  %p7153_p10 = scmp.lt.s32.totalorder %s10029_s5, %s7151_s23 }
  0x5f   : > { %v7469_v17 = vld [vmem:[%s7391_s9 + $0x80] sm:$0xff]  ;;  %v7474_v18 = vld [vmem:[%s7391_s9 + $0x98] sm:$0xff]  ;;  %v7477_v19 = vld [vmem:[%s7391_s9 + $0x90] sm:$0xff]  ;;  %p7154_p13 = scmp.lt.s32.totalorder %s7152_s30, %s7146_s28 }
  0x60   : > { %v7482_v20 = vld [vmem:[%s7391_s9 + $0xa0] sm:$0xff]  ;;  %v7486_v21 = vld [vmem:[%s7391_s9 + $0xa8] sm:$0xff]  ;;  %v7490_v22 = vld [vmem:[%s7391_s9 + $0xb0] sm:$0xff]  ;;  %p7148_p6 = pnand %p7147_p4, %p7339_p12 }
  0x61   : > { %v7494_v23 = vld [vmem:[%s7391_s9 + $0xb8] sm:$0xff]  ;;  %v7498_v24 = vld [vmem:[%s7391_s9 + $0xc0] sm:$0xff]  ;;  %v7502_v25 = vld [vmem:[%s7391_s9 + $0xc8] sm:$0xff]  ;;  %p7155_p3 = por %p7154_p13, %p7153_p10 }
  0x62   : > { %248 = vadd.xlane.f32.xlu1 %v7418_v4  ;;  %246 = vadd.xlane.f32.xlu0 %v7421_v5  ;;  %v7506_v26 = vld [vmem:[%s7391_s9 + $0xd0] sm:$0xff]  ;;  %v7510_v27 = vld [vmem:[%s7391_s9 + $0xd8] sm:$0xff]  ;;  %v7514_v28 = vld [vmem:[%s7391_s9 + $0xe0] sm:$0xff]  ;;  %p7149_p8 = pneg %p7148_p6 }
  0x63   : > { %v7518_v29 = vld [vmem:[%s7391_s9 + $0xe8] sm:$0xff]  ;;  %v7522_v30 = vld [vmem:[%s7391_s9 + $0xf0] sm:$0xff]  ;;  %v7526_v31 = vld [vmem:[%s7391_s9 + $0xf8] sm:$0xff] }
  0x64   : > { %v592_v32 = vld [vmem:[#allocation5 + $0x8] sm:$0xff]  ;;  %v595_v33 = vld [vmem:[#allocation5 + $0x20] sm:$0xff]  ;;  %v594_v37 = vld [vmem:[#allocation5 + $0x18] sm:$0xff]  ;;  %p7156_p7 = pnand %p7155_p3, %p7149_p8 }
  0x65   : > { %v591_v34 = vld [vmem:[#allocation5] sm:$0xff]  ;;  %v656_v35 = vand.u32 4294901760, %v592_v32  ;;  %v660_v36 = vand.u32 4294901760, %v595_v33  ;;  %v598_v39 = vld [vmem:[#allocation5 + $0x38] sm:$0xff]  ;;  %v601_v40 = vld [vmem:[#allocation5 + $0x50] sm:$0xff]  ;;  %v662_v41 = vand.u32 4294901760, %v594_v37 }
  0x66   : > { %252 = vadd.xlane.f32.xlu1 %v7426_v6  ;;  %250 = vadd.xlane.f32.xlu0 %v7429_v7  ;;  %v658_v38 = vand.u32 4294901760, %v591_v34  ;;  %v664_v42 = vand.u32 4294901760, %v598_v39  ;;  %v668_v43 = vand.u32 4294901760, %v601_v40  ;;  %v597_v44 = vld [vmem:[#allocation5 + $0x30] sm:$0xff]  ;;  %v600_v45 = vld [vmem:[#allocation5 + $0x48] sm:$0xff] }
  0x67   : > { %v7529_v46 = vsub.f32 %v592_v32, %v656_v35  ;;  %v7531_v47 = vsub.f32 %v595_v33, %v660_v36  ;;  %v666_v49 = vand.u32 4294901760, %v597_v44  ;;  %v7535_v50 = vsub.f32 %v594_v37, %v662_v41 }
  0x68   : > { %v7533_v48 = vsub.f32 %v591_v34, %v658_v38  ;;  %v7537_v51 = vsub.f32 %v598_v39, %v664_v42  ;;  %v7539_v52 = vsub.f32 %v601_v40, %v668_v43  ;;  %v670_v53 = vand.u32 4294901760, %v600_v45 }
  0x69   : > { %10439 = vst [vmem:[#allocation12_spill] sm:$0xff] %v7535_v50  ;;  %v10085_v54 = vand.u32 4294901760, %v7529_v46  ;;  %v10083_v55 = vand.u32 4294901760, %v7531_v47  ;;  %v7544_v57 = vsub.f32 %v597_v44, %v666_v49  ;;  %v10086_v58 = vand.u32 4294901760, %v7535_v50 }
  0x6a   : > { %256 = vadd.xlane.f32.xlu1 %v7434_v8  ;;  %254 = vadd.xlane.f32.xlu0 %v7437_v9  ;;  %10438 = vst [vmem:[#allocation11_spill] sm:$0xff] %v7533_v48  ;;  %10440 = vst [vmem:[#allocation13_spill] sm:$0xff] %v7537_v51  ;;  %v10084_v56 = vand.u32 4294901760, %v7533_v48  ;;  %v10091_v59 = vand.u32 4294901760, %v7537_v51  ;;  %v10094_v60 = vand.u32 4294901760, %v7539_v52  ;;  %v7549_v61 = vsub.f32 %v600_v45, %v670_v53 }
  0x6b   : > { %10441 = vst [vmem:[#allocation14_spill] sm:$0xff] %v7539_v52  ;;  %10442 = vst [vmem:[#allocation15_spill] sm:$0xff] %v7544_v57  ;;  %v1108_v62 = vsub.f32 %v7529_v46, %v10085_v54  ;;  %v1120_v63 = vsub.f32 %v7531_v47, %v10083_v55  ;;  %v10097_v33 = vand.u32 4294901760, %v7544_v57  ;;  %v1126_v34 = vsub.f32 %v7535_v50, %v10086_v58  ;;  %v7574_v54 = vld [vmem:[#allocation5 + $0x68] sm:$0xff] }
  0x6c   : > { %10443 = vst [vmem:[#allocation16_spill] sm:$0xff] %v7549_v61  ;;  %v1114_v32 = vsub.f32 %v7533_v48, %v10084_v56  ;;  %v1132_v37 = vsub.f32 %v7537_v51, %v10091_v59  ;;  %v1144_v39 = vsub.f32 %v7539_v52, %v10094_v60  ;;  %v10098_v40 = vand.u32 4294901760, %v7549_v61  ;;  %v7579_v51 = vld [vmem:[#allocation5 + $0x80] sm:$0xff] }
  0x6d   : > { %v1109_v44 = vand.u32 4294901760, %v1108_v62  ;;  %v1121_v45 = vand.u32 4294901760, %v1120_v63  ;;  %v1138_v56 = vsub.f32 %v7544_v57, %v10097_v33  ;;  %v1127_v58 = vand.u32 4294901760, %v1126_v34  ;;  %v7581_v60 = vld [vmem:[#allocation5 + $0x60] sm:$0xff]  ;;  %v7583_v62 = vld [vmem:[#allocation5 + $0x78] sm:$0xff]  ;;  %v7598_v57 = vld [vmem:[#allocation5 + $0xb0] sm:$0xff] }
  0x6e   : > { %260 = vadd.xlane.f32.xlu1 %v7442_v10  ;;  %258 = vadd.xlane.f32.xlu0 %v7445_v11  ;;  %v1115_v55 = vand.u32 4294901760, %v1114_v32  ;;  %v1133_v50 = vand.u32 4294901760, %v1132_v37  ;;  %v1145_v48 = vand.u32 4294901760, %v1144_v39  ;;  %v1150_v59 = vsub.f32 %v7549_v61, %v10098_v40  ;;  %v7591_v34 = vld [vmem:[#allocation5 + $0x98] sm:$0xff] }
  0x6f   : > { %v7585_v63 = vpack.c.bf16 %v1121_v45, %v1109_v44  ;;  %v1139_v32 = vand.u32 4294901760, %v1138_v56  ;;  %v7587_v52 = vpack.c.bf16 %v660_v36, %v656_v35  ;;  %v7589_v33 = vpack.c.bf16 %v662_v41, %v658_v38 }
  0x70   : > { %v7593_v37 = vpack.c.bf16 %v1127_v58, %v1115_v55  ;;  %v7595_v39 = vpack.c.bf16 %v1145_v48, %v1133_v50  ;;  %v1151_v40 = vand.u32 4294901760, %v1150_v59  ;;  %v10108_v61 = vand.u32 4294901760, %v7574_v54 }
  0x71   : > { %10444 = vst [vmem:[#allocation17_spill] sm:$0xff] %v7587_v52  ;;  %10445 = vst [vmem:[#allocation18_spill] sm:$0xff] %v7589_v33  ;;  %6015 = vmatprep.subr.bf16.mxu0 %v7585_v63  ;;  %5983 = vmatprep.subr.bf16.mxu1 %v7587_v52  ;;  %v10106_v35 = vand.u32 4294901760, %v7579_v51  ;;  %v10105_v36 = vand.u32 4294901760, %v7581_v60  ;;  %v10103_v38 = vand.u32 4294901760, %v7583_v62  ;;  %v7605_v41 = vpack.c.bf16 %v668_v43, %v664_v42 }
  0x72   : > { %264 = vadd.xlane.f32.xlu1 %v7450_v12  ;;  %262 = vadd.xlane.f32.xlu0 %v7453_v13  ;;  %10446 = vst [vmem:[#allocation19_spill] sm:$0xff] %v7593_v37  ;;  %10447 = vst [vmem:[#allocation20_spill] sm:$0xff] %v7595_v39  ;;  %v7608_v48 = vpack.c.bf16 %v1151_v40, %v1139_v32  ;;  %v7614_v50 = vsub.f32 %v7574_v54, %v10108_v61  ;;  %v10104_v56 = vand.u32 4294901760, %v7591_v34 }
  0x73   : > { %10448 = vst [vmem:[#allocation21_spill] sm:$0xff] %v7605_v41  ;;  %6017 = vmatpush1.bf16.msra.mxu0 %v7593_v37  ;;  %5985 = vmatpush1.bf16.msra.mxu1 %v7589_v33  ;;  %v7616_v55 = vpack.c.bf16 %v670_v53, %v666_v49  ;;  %v7623_v42 = vsub.f32 %v7579_v51, %v10106_v35  ;;  %v10107_v49 = vand.u32 4294901760, %v7598_v57  ;;  %v7756_v37 = vld [vmem:[#allocation5 + $0xf8] sm:$0xff] }
  0x74   : > { %10449 = vst [vmem:[#allocation22_spill] sm:$0xff] %v7608_v48  ;;  %10450 = vst [vmem:[#allocation23_spill] sm:$0xff] %v7614_v50  ;;  %6019 = vmatprep.subr.bf16.mxu0 %v7595_v39  ;;  %v7628_v43 = vsub.f32 %v7581_v60, %v10105_v36  ;;  %v7633_v58 = vsub.f32 %v7583_v62, %v10103_v38  ;;  %5987 = vmatprep.subr.bf16.mxu1 %v7605_v41  ;;  %v10111_v53 = vand.u32 4294901760, %v7614_v50 }
  0x75   : > { %10451 = vst [vmem:[#allocation24_spill] sm:$0xff] %v7616_v55  ;;  %10452 = vst [vmem:[#allocation25_spill] sm:$0xff] %v7623_v42  ;;  %v7641_v59 = vsub.f32 %v7591_v34, %v10104_v56  ;;  %v10118_v40 = vand.u32 4294901760, %v7623_v42  ;;  %v7649_v32 = vsub.f32 %v7598_v57, %v10107_v49 }
  0x76   : > { %268 = vadd.xlane.f32.xlu1 %v7458_v14  ;;  %266 = vadd.xlane.f32.xlu0 %v7461_v15  ;;  %10453 = vst [vmem:[#allocation26_spill] sm:$0xff] %v7628_v43  ;;  %10454 = vst [vmem:[#allocation27_spill] sm:$0xff] %v7633_v58  ;;  %v10120_v44 = vand.u32 4294901760, %v7628_v43  ;;  %v10122_v45 = vand.u32 4294901760, %v7633_v58  ;;  %v1156_v38 = vsub.f32 %v7614_v50, %v10111_v53 }
  0x77   : > { %10455 = vst [vmem:[#allocation28_spill] sm:$0xff] %v7641_v59  ;;  %10456 = vst [vmem:[#allocation29_spill] sm:$0xff] %v7649_v32  ;;  %6021 = vmatpush1.bf16.msra.mxu0 %v7608_v48  ;;  %5989 = vmatpush1.bf16.msra.mxu1 %v7616_v55  ;;  %v10123_v56 = vand.u32 4294901760, %v7641_v59  ;;  %v1168_v36 = vsub.f32 %v7623_v42, %v10118_v40  ;;  %v10124_v61 = vand.u32 4294901760, %v7649_v32 }
  0x78   : > { %v1162_v35 = vsub.f32 %v7628_v43, %v10120_v44  ;;  %v1174_v49 = vsub.f32 %v7633_v58, %v10122_v45  ;;  %v1157_v41 = vand.u32 4294901760, %v1156_v38 }
  0x79   : > { %v1180_v53 = vsub.f32 %v7641_v59, %v10123_v56  ;;  %v1169_v55 = vand.u32 4294901760, %v1168_v36  ;;  %v1192_v40 = vsub.f32 %v7649_v32, %v10124_v61 }
  0x7a   : > { %272 = vadd.xlane.f32.xlu1 %v7466_v16  ;;  %270 = vadd.xlane.f32.xlu0 %v7469_v17  ;;  %v1163_v33 = vand.u32 4294901760, %v1162_v35  ;;  %v1175_v52 = vand.u32 4294901760, %v1174_v49 }
  0x7b   : > { %v1181_v48 = vand.u32 4294901760, %v1180_v53  ;;  %v7673_v44 = vpack.c.bf16 %v1169_v55, %v1157_v41  ;;  %v1193_v45 = vand.u32 4294901760, %v1192_v40 }
  0x7c   : > { %v7675_v39 = vpack.c.bf16 %v1175_v52, %v1163_v33 }
  0x7d   : > { %10457 = vst [vmem:[#allocation30_spill] sm:$0xff] %v7673_v44  ;;  %6023 = vmatprep.subr.bf16.mxu0 %v7673_v44  ;;  %v7678_v38 = vpack.c.bf16 %v1193_v45, %v1181_v48  ;;  %v7724_v44 = vld [vmem:[#allocation5 + $0xd8] sm:$0xff] }
  0x7e   : > { %276 = vadd.xlane.f32.xlu1 %v7474_v18  ;;  %274 = vadd.xlane.f32.xlu0 %v7477_v19  ;;  %10458 = vst [vmem:[#allocation31_spill] sm:$0xff] %v7675_v39 }
  0x7f   : > { %10459 = vst [vmem:[#allocation32_spill] sm:$0xff] %v7678_v38  ;;  %6025 = vmatpush1.bf16.msra.mxu0 %v7675_v39 }
  0x80   : > { %6027 = vmatprep.subr.bf16.mxu0 %v7678_v38 }
  0x82   : > { %278 = vadd.xlane.f32.xlu1 %v7482_v20 }
  0x86   : > { %280 = vadd.xlane.f32.xlu1 %v7486_v21 }
  0x8a   : > { %282 = vadd.xlane.f32.xlu1 %v7490_v22 }
  0x8e   : > { %284 = vadd.xlane.f32.xlu1 %v7494_v23 }
  0x92   : > { %286 = vadd.xlane.f32.xlu1 %v7498_v24 }
  0x96   : > { %288 = vadd.xlane.f32.xlu1 %v7502_v25 }
  0x9a   : > { %290 = vadd.xlane.f32.xlu1 %v7506_v26 }
  0x9e   : > { %292 = vadd.xlane.f32.xlu1 %v7510_v27 }
  0xa2   : > { %294 = vadd.xlane.f32.xlu1 %v7514_v28 }
  0xa6   : > { %296 = vadd.xlane.f32.xlu1 %v7518_v29 }
  0xaa   : > { %298 = vadd.xlane.f32.xlu1 %v7522_v30 }
  0xae   : > { %300 = vadd.xlane.f32.xlu1 %v7526_v31 }
  0xe7   : > { %v243_v35 = vpop.xlane.xlu1 %242  ;;  %v239_v36 = vpop.xlane.xlu0 %238 }
  0xe8   : > { %v303_v49 = vmul.f32 0.0078125, %v239_v36  ;;  %v305_v56 = vmul.f32 0.0078125, %v243_v35  ;;  %v7693_v35 = vld [vmem:[#allocation5 + $0x90] sm:$0xff] }
  0xea   : > { %v7683_v61 = vsub.f32 %v7405_v1, %v303_v49  ;;  %v7688_v48 = vsub.f32 %v7402_v0, %v305_v56  ;;  %v7695_v1 = vld [vmem:[#allocation5 + $0xa8] sm:$0xff] }
  0xeb   : > { %v245_v41 = vpop.xlane.xlu1 %244  ;;  %v241_v55 = vpop.xlane.xlu0 %240  ;;  %v10136_v38 = vand.u32 4294901760, %v7695_v1 }
  0xec   : > { %10460 = vst [vmem:[#allocation33_spill] sm:$0xff] %v7683_v61  ;;  %v304_v52 = vmul.f32 0.0078125, %v241_v55  ;;  %v367_v33 = vmul.f32 %v7683_v61, %v7683_v61  ;;  %10461 = vst [vmem:[#allocation34_spill] sm:$0xff] %v7688_v48  ;;  %v306_v53 = vmul.f32 0.0078125, %v245_v41  ;;  %v10133_v55 = vand.u32 4294901760, %v7693_v35  ;;  %v7706_v41 = vld [vmem:[#allocation5 + $0xc8] sm:$0xff] }
  0xed   : > { %v10476_v61 = vand.u32 4294901760, %v7579_v51 }
  0xee   : > { %v7691_v40 = vsub.f32 %v7413_v3, %v304_v52  ;;  %399 = vadd.xlane.f32.xlu0 %v367_v33  ;;  %v7702_v0 = vsub.f32 %v7410_v2, %v306_v53  ;;  %v369_v3 = vmul.f32 %v7688_v48, %v7688_v48  ;;  %v7708_v52 = vld [vmem:[#allocation5 + $0xe0] sm:$0xff]  ;;  %v7713_v39 = vsub.f32 %v7693_v35, %v10133_v55 }
  0xef   : > { %v249_v45 = vpop.xlane.xlu1 %248  ;;  %v247_v36 = vpop.xlane.xlu0 %246  ;;  %v7718_v2 = vsub.f32 %v7695_v1, %v10136_v38  ;;  %v10140_v53 = vand.u32 4294901760, %v7706_v41 }
  0xf0   : > { %10462 = vst [vmem:[#allocation35_spill] sm:$0xff] %v7691_v40  ;;  %v368_v49 = vmul.f32 %v7691_v40, %v7691_v40  ;;  %10463 = vst [vmem:[#allocation36_spill] sm:$0xff] %v7702_v0  ;;  %v307_v56 = vmul.f32 0.0078125, %v247_v36  ;;  %v7722_v36 = vld [vmem:[#allocation5 + $0xc0] sm:$0xff]  ;;  %v308_v32 = vmul.f32 0.0078125, %v249_v45  ;;  %v370_v45 = vmul.f32 %v7702_v0, %v7702_v0 }
  0xf1   : > { %10464 = vst [vmem:[#allocation37_spill] sm:$0xff] %v7713_v39  ;;  %10465 = vst [vmem:[#allocation38_spill] sm:$0xff] %v7718_v2  ;;  %v7731_v58 = vsub.f32 %v7706_v41, %v10140_v53  ;;  %v10469_v53 = vand.u32 4294901760, %v7713_v39  ;;  %v10470_v50 = vand.u32 4294901760, %v7718_v2 }
  0xf2   : > { %401 = vadd.xlane.f32.xlu0 %v368_v49  ;;  %v10145_v49 = vand.u32 4294901760, %v7708_v52  ;;  %v7739_v43 = vsub.f32 %v7421_v5, %v307_v56  ;;  %v7754_v56 = vsub.f32 %v7418_v4, %v308_v32  ;;  %v10471_v4 = vand.u32 4294901760, %v7722_v36 }
  0xf3   : > { %v253_v33 = vpop.xlane.xlu1 %252  ;;  %v251_v59 = vpop.xlane.xlu0 %250  ;;  %10466 = vst [vmem:[#allocation39_spill] sm:$0xff] %v7731_v58  ;;  %v1186_v42 = vsub.f32 %v7713_v39, %v10469_v53 }
  0xf4   : > { %v7736_v38 = vsub.f32 %v7708_v52, %v10145_v49  ;;  %10468 = vst [vmem:[#allocation41_spill] sm:$0xff] %v7739_v43  ;;  %v1198_v49 = vsub.f32 %v7718_v2, %v10470_v50  ;;  %v309_v0 = vmul.f32 0.0078125, %v251_v59  ;;  %v310_v2 = vmul.f32 0.0078125, %v253_v33  ;;  %v7778_v33 = vld [vmem:[#allocation5 + $0x110] sm:$0xff] }
  0xf5   : > { %v1187_v55 = vand.u32 4294901760, %v1186_v42  ;;  %v371_v39 = vmul.f32 %v7739_v43, %v7739_v43  ;;  %v7769_v59 = vsub.f32 %v7722_v36, %v10471_v4  ;;  %v10473_v42 = vand.u32 4294901760, %v7724_v44  ;;  %v7784_v43 = vld [vmem:[#allocation5 + $0xf0] sm:$0xff] }
  0xf6   : > { %10467 = vst [vmem:[#allocation40_spill] sm:$0xff] %v7736_v38  ;;  %403 = vadd.xlane.f32.xlu0 %v369_v3  ;;  %v10152_v3 = vand.u32 4294901760, %v7731_v58  ;;  %v10155_v5 = vand.u32 4294901760, %v7736_v38  ;;  %v1199_v40 = vand.u32 4294901760, %v1198_v49 }
  0xf7   : > { %v257_v48 = vpop.xlane.xlu1 %256  ;;  %10472 = vst [vmem:[#allocation42_spill] sm:$0xff] %v7769_v59  ;;  %v7774_v32 = vsub.f32 %v7724_v44, %v10473_v42  ;;  %v255_v4 = vpop.xlane.xlu0 %254  ;;  %v10475_v42 = vand.u32 4294901760, %v7574_v54  ;;  %v10481_v54 = vand.u32 4294901760, %v7583_v62 }
  0xf8   : > { %v1204_v53 = vsub.f32 %v7731_v58, %v10152_v3  ;;  %v1216_v50 = vsub.f32 %v7736_v38, %v10155_v5  ;;  %v7776_v3 = vpack.c.bf16 %v1199_v40, %v1187_v55  ;;  %v7782_v38 = vsub.f32 %v7429_v7, %v309_v0 }
  0xf9   : > { %10474 = vst [vmem:[#allocation43_spill] sm:$0xff] %v7774_v32  ;;  %v7791_v40 = vpack.c.bf16 %v10476_v61, %v10475_v42  ;;  %v7798_v7 = vsub.f32 %v7426_v6, %v310_v2  ;;  %v372_v0 = vmul.f32 %v7754_v56, %v7754_v56 }
  0xfa   : > { %405 = vadd.xlane.f32.xlu0 %v370_v45  ;;  %v1205_v58 = vand.u32 4294901760, %v1204_v53  ;;  %v1217_v5 = vand.u32 4294901760, %v1216_v50  ;;  %6029 = vmatpush1.bf16.msra.mxu0 %v7776_v3  ;;  %v10160_v53 = vand.u32 4294901760, %v7769_v59  ;;  %v10163_v50 = vand.u32 4294901760, %v7774_v32 }
  0xfb   : > { %v261_v49 = vpop.xlane.xlu1 %260  ;;  %10477 = vst [vmem:[#allocation44_spill] sm:$0xff] %v7791_v40  ;;  %10479 = vst [vmem:[#allocation46_spill] sm:$0xff] %v7798_v7  ;;  %v10480_v45 = vand.u32 4294901760, %v7581_v60  ;;  %5991 = vmatprep.subr.bf16.mxu1 %v7791_v40  ;;  %v10483_v60 = vand.u32 4294901760, %v7756_v37  ;;  %v373_v42 = vmul.f32 %v7782_v38, %v7782_v38 }
  0xfc   : > { %v7793_v55 = vpack.c.bf16 %v1217_v5, %v1205_v58  ;;  %v1210_v6 = vsub.f32 %v7769_v59, %v10160_v53  ;;  %v312_v5 = vmul.f32 0.0078125, %v257_v48  ;;  %v7826_v53 = vld [vmem:[#allocation5 + $0x108] sm:$0xff] }
  0xfd   : > { %v7806_v51 = vpack.c.bf16 %v10481_v54, %v10480_v45  ;;  %v7820_v62 = vsub.f32 %v7756_v37, %v10483_v60  ;;  %v311_v54 = vmul.f32 0.0078125, %v255_v4  ;;  %v374_v4 = vmul.f32 %v7798_v7, %v7798_v7 }
  0xfe   : > { %10478 = vst [vmem:[#allocation45_spill] sm:$0xff] %v7793_v55  ;;  %407 = vadd.xlane.f32.xlu0 %v371_v39  ;;  %6031 = vmatprep.subr.bf16.mxu0 %v7793_v55  ;;  %v1222_v39 = vsub.f32 %v7774_v32, %v10163_v50  ;;  %v1211_v61 = vand.u32 4294901760, %v1210_v6  ;;  %v10485_v50 = vand.u32 4294901760, %v7591_v34  ;;  %v10486_v55 = vand.u32 4294901760, %v7598_v57 }
  0xff   : > { %10482 = vst [vmem:[#allocation47_spill] sm:$0xff] %v7806_v51  ;;  %v265_v58 = vpop.xlane.xlu1 %264  ;;  %10484 = vst [vmem:[#allocation48_spill] sm:$0xff] %v7820_v62  ;;  %5993 = vmatpush1.bf16.msra.mxu1 %v7806_v51  ;;  %v10165_v2 = vand.u32 4294901760, %v7820_v62  ;;  %v10490_v6 = vand.u32 4294901760, %v7695_v1  ;;  %v10492_v34 = vand.u32 4294901760, %v7778_v33  ;;  %v10495_v1 = vand.u32 4294901760, %v7784_v43 }
 0x100   : > { %v316_v45 = vmul.f32 0.0078125, %v265_v58  ;;  %v1223_v40 = vand.u32 4294901760, %v1222_v39  ;;  %v7832_v60 = vpack.c.bf16 %v10486_v55, %v10485_v50  ;;  %v10489_v58 = vand.u32 4294901760, %v7693_v35 }
 0x101   : > { %v7849_v57 = vsub.f32 %v7778_v33, %v10492_v34  ;;  %v259_v34 = vpop.xlane.xlu0 %258 }
 0x102   : > { %10487 = vst [vmem:[#allocation49_spill] sm:$0xff] %v7832_v60  ;;  %v7836_v48 = vsub.f32 %v7450_v12, %v316_v45  ;;  %409 = vadd.xlane.f32.xlu0 %v372_v0  ;;  %v7844_v39 = vpack.c.bf16 %v10490_v6, %v10489_v58  ;;  %v7851_v50 = vpack.c.bf16 %v1223_v40, %v1211_v61  ;;  %v7863_v45 = vld [vmem:[#allocation5 + $0x128] sm:$0xff]  ;;  %v313_v35 = vmul.f32 0.0078125, %v259_v34 }
 0x103   : > { %10493 = vst [vmem:[#allocation52_spill] sm:$0xff] %v7849_v57  ;;  %v269_v55 = vpop.xlane.xlu1 %268  ;;  %5995 = vmatprep.subr.bf16.mxu1 %v7832_v60  ;;  %v1228_v12 = vsub.f32 %v7820_v62, %v10165_v2  ;;  %v7861_v0 = vsub.f32 %v7784_v43, %v10495_v1  ;;  %v7866_v58 = vsub.f32 %v7434_v8, %v312_v5  ;;  %v314_v2 = vmul.f32 0.0078125, %v261_v49  ;;  %v7891_v1 = vld [vmem:[#allocation5 + $0x140] sm:$0xff] }
 0x104   : > { %10488 = vst [vmem:[#allocation50_spill] sm:$0xff] %v7836_v48  ;;  %10491 = vst [vmem:[#allocation51_spill] sm:$0xff] %v7844_v39  ;;  %v318_v40 = vmul.f32 0.0078125, %v269_v55  ;;  %v380_v61 = vmul.f32 %v7836_v48, %v7836_v48  ;;  %v7871_v6 = vsub.f32 %v7437_v9, %v311_v54  ;;  %5997 = vmatpush1.bf16.msra.mxu1 %v7844_v39  ;;  %6033 = vmatpush1.bf16.msra.mxu0 %v7851_v50 }
 0x105   : > { %10494 = vst [vmem:[#allocation53_spill] sm:$0xff] %v7851_v50  ;;  %10496 = vst [vmem:[#allocation54_spill] sm:$0xff] %v7861_v0  ;;  %v10499_v8 = vand.u32 4294901760, %v7826_v53  ;;  %v1229_v9 = vand.u32 4294901760, %v1228_v12  ;;  %v10502_v54 = vand.u32 4294901760, %v7706_v41  ;;  %v10503_v49 = vand.u32 4294901760, %v7708_v52  ;;  %v263_v48 = vpop.xlane.xlu0 %262 }
 0x106   : > { %10497 = vst [vmem:[#allocation55_spill] sm:$0xff] %v7866_v58  ;;  %10498 = vst [vmem:[#allocation56_spill] sm:$0xff] %v7871_v6  ;;  %v7883_v55 = vsub.f32 %v7458_v14, %v318_v40  ;;  %425 = vadd.xlane.f32.xlu1 %v380_v61  ;;  %411 = vadd.xlane.f32.xlu0 %v373_v42  ;;  %v10506_v14 = vand.u32 4294901760, %v7861_v0  ;;  %v10507_v41 = vand.u32 4294901760, %v7722_v36  ;;  %v10508_v52 = vand.u32 4294901760, %v7724_v44  ;;  %v7907_v61 = vld [vmem:[#allocation5 + $0x120] sm:$0xff] }
 0x107   : > { %v7880_v5 = vsub.f32 %v7826_v53, %v10499_v8  ;;  %v7889_v39 = vpack.c.bf16 %v10503_v49, %v10502_v54  ;;  %v273_v60 = vpop.xlane.xlu1 %272  ;;  %v10505_v8 = vand.u32 4294901760, %v7849_v57  ;;  %v376_v34 = vmul.f32 %v7866_v58, %v7866_v58 }
 0x108   : > { %10501 = vst [vmem:[#allocation58_spill] sm:$0xff] %v7883_v55  ;;  %v1234_v42 = vsub.f32 %v7861_v0, %v10506_v14  ;;  %v7905_v40 = vpack.c.bf16 %v10508_v52, %v10507_v41  ;;  %v320_v54 = vmul.f32 0.0078125, %v273_v60  ;;  %v382_v49 = vmul.f32 %v7883_v55, %v7883_v55  ;;  %v7914_v14 = vld [vmem:[#allocation5 + $0x138] sm:$0xff] }
 0x109   : > { %10500 = vst [vmem:[#allocation57_spill] sm:$0xff] %v7880_v5  ;;  %10504 = vst [vmem:[#allocation59_spill] sm:$0xff] %v7889_v39  ;;  %v1240_v51 = vsub.f32 %v7849_v57, %v10505_v8  ;;  %v375_v8 = vmul.f32 %v7871_v6, %v7871_v6  ;;  %5999 = vmatprep.subr.bf16.mxu1 %v7889_v39  ;;  %v10510_v44 = vand.u32 4294901760, %v7880_v5  ;;  %v10178_v60 = vand.u32 4294901760, %v7891_v1  ;;  %v633_v6 = vld [vmem:[#allocation5 + $0x150] sm:$0xff] }
 0x10a   : > { %10509 = vst [vmem:[#allocation60_spill] sm:$0xff] %v7905_v40  ;;  %v1235_v12 = vand.u32 4294901760, %v1234_v42  ;;  %6001 = vmatpush1.bf16.msra.mxu1 %v7905_v40  ;;  %v7922_v52 = vsub.f32 %v7466_v16, %v320_v54  ;;  %429 = vadd.xlane.f32.xlu1 %v382_v49  ;;  %v10512_v39 = vand.u32 4294901760, %v7863_v45  ;;  %v7940_v54 = vld [vmem:[#allocation5 + $0x158] sm:$0xff]  ;;  %v7943_v49 = vsub.f32 %v7442_v10, %v314_v2 }
 0x10b   : > { %v1241_v36 = vand.u32 4294901760, %v1240_v51  ;;  %v1246_v41 = vsub.f32 %v7880_v5, %v10510_v44  ;;  %413 = vadd.xlane.f32.xlu0 %v374_v4  ;;  %v277_v44 = vpop.xlane.xlu1 %276  ;;  %v7937_v16 = vsub.f32 %v7891_v1, %v10178_v60  ;;  %v10519_v4 = vand.u32 4294901760, %v7907_v61 }
 0x10c   : > { %10511 = vst [vmem:[#allocation61_spill] sm:$0xff] %v7922_v52  ;;  %v7929_v51 = vsub.f32 %v7863_v45, %v10512_v39  ;;  %10516 = vst [vmem:[#allocation65_spill] sm:$0xff] %v7943_v49  ;;  %v322_v39 = vmul.f32 0.0078125, %v277_v44  ;;  %v384_v42 = vmul.f32 %v7922_v52, %v7922_v52  ;;  %v10522_v44 = vand.u32 4294901760, %v7914_v14  ;;  %v637_v52 = vld [vmem:[#allocation5 + $0x170] sm:$0xff] }
 0x10d   : > { %v7932_v55 = vpack.c.bf16 %v1241_v36, %v1229_v9  ;;  %v1247_v40 = vand.u32 4294901760, %v1246_v41  ;;  %10515 = vst [vmem:[#allocation64_spill] sm:$0xff] %v7937_v16  ;;  %v7948_v9 = vsub.f32 %v7445_v11, %v313_v35  ;;  %v7958_v10 = vsub.f32 %v7907_v61, %v10519_v4  ;;  %v267_v35 = vpop.xlane.xlu0 %266 }
 0x10e   : > { %10513 = vst [vmem:[#allocation62_spill] sm:$0xff] %v7929_v51  ;;  %v10182_v41 = vand.u32 4294901760, %v7929_v51  ;;  %v7961_v2 = vsub.f32 %v7474_v18, %v322_v39  ;;  %433 = vadd.xlane.f32.xlu1 %v384_v42  ;;  %v315_v11 = vmul.f32 0.0078125, %v263_v48  ;;  %v10524_v42 = vand.u32 4294901760, %v7937_v16 }
 0x10f   : > { %10514 = vst [vmem:[#allocation63_spill] sm:$0xff] %v7932_v55  ;;  %10517 = vst [vmem:[#allocation66_spill] sm:$0xff] %v7948_v9  ;;  %6035 = vmatprep.subr.bf16.mxu0 %v7932_v55  ;;  %v7951_v36 = vpack.c.bf16 %v1247_v40, %v1235_v12  ;;  %415 = vadd.xlane.f32.xlu0 %v375_v8  ;;  %v7966_v12 = vsub.f32 %v7914_v14, %v10522_v44  ;;  %v712_v40 = vand.u32 4294901760, %v7940_v54  ;;  %v7969_v60 = vpop.xlane.xlu1 %278  ;;  %v636_v8 = vld [vmem:[#allocation5 + $0x168] sm:$0xff] }
 0x110   : > { %10520 = vst [vmem:[#allocation68_spill] sm:$0xff] %v7958_v10  ;;  %10521 = vst [vmem:[#allocation69_spill] sm:$0xff] %v7961_v2  ;;  %v1252_v18 = vsub.f32 %v7929_v51, %v10182_v41  ;;  %v1264_v48 = vsub.f32 %v7937_v16, %v10524_v42  ;;  %v10525_v4 = vand.u32 4294901760, %v7756_v37  ;;  %v10526_v39 = vand.u32 4294901760, %v7778_v33 }
 0x111   : > { %10518 = vst [vmem:[#allocation67_spill] sm:$0xff] %v7951_v36  ;;  %10523 = vst [vmem:[#allocation70_spill] sm:$0xff] %v7966_v12  ;;  %6037 = vmatpush1.bf16.msra.mxu0 %v7951_v36  ;;  %v386_v58 = vmul.f32 %v7961_v2, %v7961_v2  ;;  %v377_v36 = vmul.f32 %v7948_v9, %v7948_v9  ;;  %v378_v41 = vmul.f32 %v7943_v49, %v7943_v49 }
 0x112   : > { %v7983_v44 = vpack.c.bf16 %v10526_v39, %v10525_v4  ;;  %v1253_v55 = vand.u32 4294901760, %v1252_v18  ;;  %v1265_v37 = vand.u32 4294901760, %v1264_v48  ;;  %v10528_v33 = vand.u32 4294901760, %v7958_v10 }
 0x113   : > { %v10529_v39 = vand.u32 4294901760, %v7784_v43  ;;  %v10530_v2 = vand.u32 4294901760, %v7826_v53  ;;  %437 = vadd.xlane.f32.xlu1 %v386_v58  ;;  %417 = vadd.xlane.f32.xlu0 %v376_v34  ;;  %v8003_v42 = vsub.f32 %v7453_v13, %v315_v11  ;;  %v10532_v18 = vand.u32 4294901760, %v7966_v12  ;;  %v271_v13 = vpop.xlane.xlu0 %270 }
 0x114   : > { %10527 = vst [vmem:[#allocation71_spill] sm:$0xff] %v7983_v44  ;;  %v1258_v4 = vsub.f32 %v7958_v10, %v10528_v33  ;;  %6003 = vmatprep.subr.bf16.mxu1 %v7983_v44  ;;  %v716_v49 = vand.u32 4294901760, %v637_v52  ;;  %v8009_v33 = vsub.f32 %v7940_v54, %v712_v40  ;;  %v281_v44 = vpop.xlane.xlu1 %280  ;;  %v8011_v50 = vpack.c.bf16 %v1265_v37, %v1253_v55 }
 0x115   : > { %v8000_v9 = vpack.c.bf16 %v10530_v2, %v10529_v39  ;;  %v1270_v48 = vsub.f32 %v7966_v12, %v10532_v18  ;;  %v714_v53 = vand.u32 4294901760, %v633_v6  ;;  %v718_v58 = vand.u32 4294901760, %v636_v8 }
 0x116   : > { %10533 = vst [vmem:[#allocation73_spill] sm:$0xff] %v8009_v33  ;;  %v1259_v43 = vand.u32 4294901760, %v1258_v4  ;;  %v324_v34 = vmul.f32 0.0078125, %v281_v44  ;;  %v317_v2 = vmul.f32 0.0078125, %v267_v35  ;;  %v10194_v39 = vand.u32 4294901760, %v8009_v33  ;;  %6039 = vmatprep.subr.bf16.mxu0 %v8011_v50 }
 0x117   : > { %10531 = vst [vmem:[#allocation72_spill] sm:$0xff] %v8000_v9  ;;  %6005 = vmatpush1.bf16.msra.mxu1 %v8000_v9  ;;  %v1271_v11 = vand.u32 4294901760, %v1270_v48  ;;  %v8016_v18 = vsub.f32 %v637_v52, %v716_v49  ;;  %v8018_v54 = vsub.f32 %v633_v6, %v714_v53  ;;  %v8020_v7 = vsub.f32 %v636_v8, %v718_v58 }
 0x118   : > { %v10537_v55 = vand.u32 4294901760, %v7863_v45  ;;  %v10538_v37 = vand.u32 4294901760, %v7891_v1  ;;  %v8029_v35 = vsub.f32 %v7486_v21, %v324_v34  ;;  %419 = vadd.xlane.f32.xlu0 %v377_v36  ;;  %v1276_v52 = vsub.f32 %v8009_v33, %v10194_v39  ;;  %v283_v6 = vpop.xlane.xlu1 %282 }
 0x119   : > { %10534 = vst [vmem:[#allocation74_spill] sm:$0xff] %v8016_v18  ;;  %10535 = vst [vmem:[#allocation75_spill] sm:$0xff] %v8018_v54  ;;  %v8031_v44 = vpack.c.bf16 %v1271_v11, %v1259_v43  ;;  %v10192_v8 = vand.u32 4294901760, %v8016_v18  ;;  %v10193_v48 = vand.u32 4294901760, %v8018_v54  ;;  %v10197_v45 = vand.u32 4294901760, %v8020_v7 }
 0x11a   : > { %10536 = vst [vmem:[#allocation76_spill] sm:$0xff] %v8020_v7  ;;  %v8026_v4 = vpack.c.bf16 %v10538_v37, %v10537_v55  ;;  %v10195_v1 = vmov 0.0   ;;  %v10540_v21 = vand.u32 4294901760, %v7907_v61  ;;  %v10541_v36 = vand.u32 4294901760, %v7914_v14 }
 0x11b   : > { %1329 = vmatprep.mubr.f32.mxu0 %v10195_v1  ;;  %v388_v34 = vmul.f32 %v8029_v35, %v8029_v35  ;;  %6041 = vmatpush1.bf16.msra.mxu0 %v8031_v44  ;;  %v1277_v11 = vand.u32 4294901760, %v1276_v52  ;;  %v8050_v55 = vpack.c.bf16 %v716_v49, %v712_v40  ;;  %v1288_v37 = vsub.f32 %v8016_v18, %v10192_v8 }
 0x11c   : > { %10539 = vst [vmem:[#allocation77_spill] sm:$0xff] %v8026_v4  ;;  %6007 = vmatprep.subr.bf16.mxu1 %v8026_v4  ;;  %v8045_v43 = vpack.c.bf16 %v10541_v36, %v10540_v21  ;;  %752 = vmatprep.mubr.f32.mxu1 %v10195_v1  ;;  %v1282_v61 = vsub.f32 %v8018_v54, %v10193_v48  ;;  %v319_v52 = vmul.f32 0.0078125, %v271_v13  ;;  %v275_v36 = vpop.xlane.xlu0 %274  ;;  %v285_v8 = vpop.xlane.xlu1 %284 }
 0x11d   : > { %10543 = vst [vmem:[#allocation79_spill] sm:$0xff] %v8050_v55  ;;  %v1294_v14 = vsub.f32 %v8020_v7, %v10197_v45  ;;  %v8063_v21 = vpack.c.bf16 %v718_v58, %v714_v53  ;;  %441 = vadd.xlane.f32.xlu1 %v388_v34  ;;  %421 = vadd.xlane.f32.xlu0 %v378_v41  ;;  %v1289_v48 = vand.u32 4294901760, %v1288_v37  ;;  %v326_v45 = vmul.f32 0.0078125, %v285_v8 }
 0x11e   : > { %10542 = vst [vmem:[#allocation78_spill] sm:$0xff] %v8045_v43  ;;  %6009 = vmatpush1.bf16.msra.mxu1 %v8045_v43  ;;  %v8066_v49 = vsub.f32 %v7461_v15, %v317_v2  ;;  %v379_v40 = vmul.f32 %v8003_v42, %v8003_v42  ;;  %v1283_v39 = vand.u32 4294901760, %v1282_v61  ;;  %v321_v43 = vmul.f32 0.0078125, %v275_v36 }
 0x11f   : > { %10544 = vst [vmem:[#allocation80_spill] sm:$0xff] %v8063_v21  ;;  %v1295_v1 = vand.u32 4294901760, %v1294_v14  ;;  %6011 = vmatprep.subr.bf16.mxu1 %v8050_v55  ;;  %v8071_v53 = vpack.c.bf16 %v1289_v48, %v1277_v11  ;;  %v8077_v15 = vsub.f32 %v7494_v23, %v326_v45  ;;  %v8080_v41 = vsub.f32 %v7469_v17, %v319_v52 }
 0x120   : > { %v381_v2 = vmul.f32 %v8066_v49, %v8066_v49  ;;  %v287_v13 = vpop.xlane.xlu1 %286  ;;  %v8090_v23 = vsub.f32 %v7477_v19, %v321_v43  ;;  %v323_v8 = vmul.f32 0.0078125, %v7969_v60  ;;  %v325_v34 = vmul.f32 0.0078125, %v283_v6 }
 0x121   : > { %v8073_v58 = vpack.c.bf16 %v1295_v1, %v1283_v39  ;;  %423 = vadd.xlane.f32.xlu0 %v379_v40  ;;  %6043 = vmatprep.subr.bf16.mxu0 %v8071_v53  ;;  %v390_v39 = vmul.f32 %v8077_v15, %v8077_v15  ;;  %v383_v17 = vmul.f32 %v8080_v41, %v8080_v41  ;;  %v327_v61 = vmul.f32 0.0078125, %v287_v13 }
 0x122   : > { %6013 = vmatpush1.bf16.msra.mxu1 %v8063_v21  ;;  %v385_v45 = vmul.f32 %v8090_v23, %v8090_v23  ;;  %v8098_v1 = vsub.f32 %v7482_v20, %v323_v8  ;;  %v6046_v19 = vpack.c.bf16 %v7531_v47, %v7529_v46  ;;  %v8108_v37 = vsub.f32 %v7490_v22, %v325_v34 }
 0x123   : > { %6366 = vmatprep.subr.bf16.mxu1 %v7585_v63  ;;  %6045 = vmatpush1.bf16.msra.mxu0 %v8073_v58  ;;  %v8113_v14 = vsub.f32 %v7498_v24, %v327_v61 }
 0x124   : > { %445 = vadd.xlane.f32.xlu1 %v390_v39  ;;  %v289_v48 = vpop.xlane.xlu1 %288  ;;  %6047 = vmatprep.subr.bf16.mxu0 %v6046_v19  ;;  %v387_v20 = vmul.f32 %v8098_v1, %v8098_v1  ;;  %v389_v22 = vmul.f32 %v8108_v37, %v8108_v37 }
 0x125   : > { %427 = vadd.xlane.f32.xlu0 %v381_v2  ;;  %v328_v63 = vmul.f32 0.0078125, %v289_v48  ;;  %v391_v24 = vmul.f32 %v8113_v14, %v8113_v14 }
 0x127   : > { %v8101_v11 = vsub.f32 %v7502_v25, %v328_v63 }
 0x128   : > { %v291_v60 = vpop.xlane.xlu1 %290 }
 0x129   : > { %431 = vadd.xlane.f32.xlu0 %v383_v17  ;;  %v392_v43 = vmul.f32 %v8101_v11, %v8101_v11  ;;  %v329_v40 = vmul.f32 0.0078125, %v291_v60 }
 0x12b   : > { %449 = vadd.xlane.f32.xlu1 %v392_v43  ;;  %v8123_v13 = vsub.f32 %v7506_v26, %v329_v40 }
 0x12c   : > { %v293_v25 = vpop.xlane.xlu1 %292 }
 0x12d   : > { %435 = vadd.xlane.f32.xlu0 %v385_v45  ;;  %v330_v6 = vmul.f32 0.0078125, %v293_v25  ;;  %v393_v63 = vmul.f32 %v8123_v13, %v8123_v13 }
 0x12f   : > { %v8116_v52 = vsub.f32 %v7510_v27, %v330_v6  ;;  %v10552_v6 = vld [vmem:[#allocation35_spill] sm:$0xff] }
 0x130   : > { %v295_v36 = vpop.xlane.xlu1 %294 }
 0x131   : > { %439 = vadd.xlane.f32.xlu0 %v387_v20  ;;  %v394_v2 = vmul.f32 %v8116_v52, %v8116_v52  ;;  %v331_v39 = vmul.f32 0.0078125, %v295_v36 }
 0x133   : > { %453 = vadd.xlane.f32.xlu1 %v394_v2  ;;  %v8128_v17 = vsub.f32 %v7514_v28, %v331_v39 }
 0x134   : > { %v297_v8 = vpop.xlane.xlu1 %296 }
 0x135   : > { %443 = vadd.xlane.f32.xlu0 %v389_v22  ;;  %v332_v27 = vmul.f32 0.0078125, %v297_v8  ;;  %v395_v28 = vmul.f32 %v8128_v17, %v8128_v17 }
 0x137   : > { %v8131_v48 = vsub.f32 %v7518_v29, %v332_v27 }
 0x138   : > { %v299_v26 = vpop.xlane.xlu1 %298 }
 0x139   : > { %447 = vadd.xlane.f32.xlu0 %v391_v24  ;;  %v333_v45 = vmul.f32 0.0078125, %v299_v26  ;;  %v396_v34 = vmul.f32 %v8131_v48, %v8131_v48 }
 0x13b   : > { %v8138_v19 = vsub.f32 %v7522_v30, %v333_v45  ;;  %457 = vadd.xlane.f32.xlu1 %v396_v34 }
 0x13c   : > { %v301_v60 = vpop.xlane.xlu1 %300 }
 0x13d   : > { %451 = vadd.xlane.f32.xlu0 %v393_v63  ;;  %v334_v29 = vmul.f32 0.0078125, %v301_v60  ;;  %v397_v61 = vmul.f32 %v8138_v19, %v8138_v19 }
 0x13f   : > { %v8143_v43 = vsub.f32 %v7526_v31, %v334_v29  ;;  %v10546_v29 = vld [vmem:[#allocation33_spill] sm:$0xff] }
 0x141   : > { %10545 = vst [vmem:[#allocation81_spill] sm:$0xff] %v8143_v43  ;;  %455 = vadd.xlane.f32.xlu0 %v395_v28  ;;  %v398_v20 = vmul.f32 %v8143_v43, %v8143_v43  ;;  %v10579_v43 = vld [vmem:[#allocation41_spill] sm:$0xff] }
 0x143   : > { %461 = vadd.xlane.f32.xlu1 %v398_v20 }
 0x145   : > { %459 = vadd.xlane.f32.xlu0 %v397_v61 }
 0x17b   : > { %v400_v22 = vpop.xlane.xlu0 %399 }
 0x17c   : > { %v463_v36 = vmul.f32 0.0078125, %v400_v22  ;;  %v10547_v22 = vld [vmem:[#allocation11_spill] sm:$0xff] }
 0x17e   : > { %v495_v2 = vadd.f32 1e-05, %v463_v36  ;;  %v10548_v36 = vld [vmem:[#allocation12_spill] sm:$0xff] }
 0x17f   : > { %v402_v39 = vpop.xlane.xlu0 %401  ;;  %v6048_v31 = vpack.c.bf16 %v10548_v36, %v10547_v22 }
 0x180   : > { %7024 = vrsqrt.f32 %v495_v2  ;;  %v464_v24 = vmul.f32 0.0078125, %v402_v39  ;;  %v10550_v39 = vld [vmem:[#allocation13_spill] sm:$0xff] }
 0x182   : > { %v496_v8 = vadd.f32 1e-05, %v464_v24  ;;  %v10551_v24 = vld [vmem:[#allocation14_spill] sm:$0xff] }
 0x183   : > { %v404_v27 = vpop.xlane.xlu0 %403 }
 0x184   : > { %7026 = vrsqrt.f32 %v496_v8  ;;  %v465_v63 = vmul.f32 0.0078125, %v404_v27  ;;  %v6050_v8 = vpack.c.bf16 %v10551_v24, %v10550_v39 }
 0x186   : > { %v497_v26 = vadd.f32 1e-05, %v465_v63 }
 0x187   : > { %v406_v45 = vpop.xlane.xlu0 %405 }
 0x188   : > { %7028 = vrsqrt.f32 %v497_v26  ;;  %v466_v34 = vmul.f32 0.0078125, %v406_v45 }
 0x18a   : > { %v7025_v28 = vpop.eup %7024  ;;  %v498_v60 = vadd.f32 1e-05, %v466_v34 }
 0x18b   : > { %v559_v61 = vmul.f32 %v7025_v28, %v10546_v29  ;;  %v408_v20 = vpop.xlane.xlu0 %407  ;;  %v10555_v29 = vld [vmem:[#allocation15_spill] sm:$0xff] }
 0x18c   : > { %7030 = vrsqrt.f32 %v498_v60  ;;  %v467_v40 = vmul.f32 0.0078125, %v408_v20  ;;  %v10554_v60 = vmov 0.0   ;;  %v10556_v20 = vld [vmem:[#allocation16_spill] sm:$0xff] }
 0x18d   : > { %v8162_v2 = vand.u32 4294901760, %v559_v61  ;;  %v6052_v25 = vpack.c.bf16 %v10556_v20, %v10555_v29 }
 0x18e   : > { %v7027_v27 = vpop.eup %7026  ;;  %v499_v63 = vadd.f32 1e-05, %v467_v40 }
 0x18f   : > { %10549 = vst [vmem:[#allocation33_spill] sm:$0xff] %v8162_v2  ;;  %v560_v26 = vmul.f32 %v7027_v27, %v10552_v6  ;;  %1331 = vmatmul.mubr.f32.vlgmr.msra.gmra.mrb[0].mxu0 %v8162_v2  ;;  %v410_v45 = vpop.xlane.xlu0 %409  ;;  %v8169_v34 = vsub.f32 %v559_v61, %v8162_v2  ;;  %v10559_v6 = vld [vmem:[#allocation23_spill] sm:$0xff]  ;;  %v10560_v27 = vld [vmem:[#allocation25_spill] sm:$0xff]  ;;  %v10561_v2 = vld [vmem:[#allocation34_spill] sm:$0xff] }
 0x190   : > { %7032 = vrsqrt.f32 %v499_v63  ;;  %v468_v28 = vmul.f32 0.0078125, %v410_v45  ;;  %1336 = vmatprep.mubr.f32.mxu0 %v10554_v60  ;;  %6049 = vmatpush1.bf16.msra.mxu0 %v6048_v31  ;;  %v6054_v24 = vpack.c.bf16 %v10560_v27, %v10559_v6  ;;  %v10566_v6 = vld [vmem:[#allocation26_spill] sm:$0xff] }
 0x191   : > { %10553 = vst [vmem:[#allocation35_spill] sm:$0xff] %v8169_v34  ;;  %v8174_v30 = vand.u32 4294901760, %v560_v26  ;;  %v8177_v40 = vand.u32 4294901760, %v8169_v34  ;;  %6051 = vmatprep.subr.bf16.mxu0 %v6050_v8 }
 0x192   : > { %v7029_v39 = vpop.eup %7028  ;;  %v500_v61 = vadd.f32 1e-05, %v468_v28 }
 0x193   : > { %10557 = vst [vmem:[#allocation82_spill] sm:$0xff] %v8174_v30  ;;  %10558 = vst [vmem:[#allocation83_spill] sm:$0xff] %v8177_v40  ;;  %v561_v63 = vmul.f32 %v7029_v39, %v10561_v2  ;;  %1338 = vmatmul.mubr.f32.gmra.mrb[2].mxu0 %v8174_v30  ;;  %v412_v45 = vpop.xlane.xlu0 %411  ;;  %v756_v31 = vsub.f32 %v8169_v34, %v8177_v40  ;;  %v8186_v20 = vsub.f32 %v560_v26, %v8174_v30  ;;  %v10567_v40 = vld [vmem:[#allocation27_spill] sm:$0xff]  ;;  %v10568_v26 = vld [vmem:[#allocation36_spill] sm:$0xff] }
 0x194   : > { %7034 = vrsqrt.f32 %v500_v61  ;;  %v469_v29 = vmul.f32 0.0078125, %v412_v45  ;;  %1343 = vmatprep.mubr.f32.mxu0 %v10554_v60  ;;  %6053 = vmatpush1.bf16.msra.mxu0 %v6052_v25  ;;  %v6056_v36 = vpack.c.bf16 %v10567_v40, %v10566_v6  ;;  %v10572_v40 = vld [vmem:[#allocation29_spill] sm:$0xff] }
 0x195   : > { %10562 = vst [vmem:[#allocation34_spill] sm:$0xff] %v8186_v20  ;;  %v8189_v8 = vand.u32 4294901760, %v561_v63  ;;  %v8191_v27 = vand.u32 4294901760, %v756_v31  ;;  %v8194_v2 = vand.u32 4294901760, %v8186_v20  ;;  %6055 = vmatprep.subr.bf16.mxu0 %v6054_v24  ;;  %v10570_v31 = vld [vmem:[#allocation19_spill] sm:$0xff] }
 0x196   : > { %v7031_v39 = vpop.eup %7030  ;;  %v501_v28 = vadd.f32 1e-05, %v469_v29  ;;  %v10571_v29 = vld [vmem:[#allocation28_spill] sm:$0xff] }
 0x197   : > { %10563 = vst [vmem:[#allocation84_spill] sm:$0xff] %v8189_v8  ;;  %10564 = vst [vmem:[#allocation85_spill] sm:$0xff] %v8191_v27  ;;  %v562_v30 = vmul.f32 %v7031_v39, %v10568_v26  ;;  %758 = vmatmul.mubr.f32.vlgmr.msra.gmra.mrb[0].mxu1 %v8191_v27  ;;  %1345 = vmatmul.mubr.f32.gmra.mrb[4].mxu0 %v8189_v8  ;;  %v767_v61 = vsub.f32 %v8186_v20, %v8194_v2 }
 0x198   : > { %10565 = vst [vmem:[#allocation86_spill] sm:$0xff] %v8194_v2  ;;  %v414_v25 = vpop.xlane.xlu0 %413  ;;  %v8204_v45 = vsub.f32 %v561_v63, %v8189_v8  ;;  %6374 = vmatpush1.bf16.msra.mxu1 %v10570_v31  ;;  %763 = vmatprep.mubr.f32.mxu1 %v10554_v60  ;;  %v6058_v6 = vpack.c.bf16 %v10572_v40, %v10571_v29  ;;  %7036 = vrsqrt.f32 %v501_v28  ;;  %v10576_v63 = vld [vmem:[#allocation20_spill] sm:$0xff]  ;;  %v10578_v2 = vld [vmem:[#allocation38_spill] sm:$0xff] }
 0x199   : > { %v470_v24 = vmul.f32 0.0078125, %v414_v25  ;;  %v8210_v39 = vand.u32 4294901760, %v562_v30  ;;  %1350 = vmatprep.mubr.f32.mxu0 %v10554_v60  ;;  %v8213_v26 = vand.u32 4294901760, %v767_v61  ;;  %6367 = vmatprep.subr.bf16.mxu1 %v10576_v63  ;;  %v10577_v25 = vld [vmem:[#allocation37_spill] sm:$0xff] }
 0x19a   : > { %10569 = vst [vmem:[#allocation36_spill] sm:$0xff] %v8204_v45  ;;  %v8216_v27 = vand.u32 4294901760, %v8204_v45  ;;  %v7033_v8 = vpop.eup %7032  ;;  %6057 = vmatpush1.bf16.msra.mxu0 %v6056_v36  ;;  %v6060_v22 = vpack.c.bf16 %v10578_v2, %v10577_v25  ;;  %v10581_v36 = vld [vmem:[#allocation39_spill] sm:$0xff] }
 0x19b   : > { %10573 = vst [vmem:[#allocation19_spill] sm:$0xff] %v8210_v39  ;;  %10574 = vst [vmem:[#allocation87_spill] sm:$0xff] %v8213_v26  ;;  %v502_v31 = vadd.f32 1e-05, %v470_v24  ;;  %v563_v40 = vmul.f32 %v7033_v8, %v10579_v43  ;;  %769 = vmatmul.mubr.f32.gmra.mrb[2].mxu1 %v8213_v26  ;;  %1352 = vmatmul.mubr.f32.gmra.mrb[6].mxu0 %v8210_v39  ;;  %v8227_v29 = vsub.f32 %v562_v30, %v8210_v39  ;;  %v10582_v24 = vld [vmem:[#allocation40_spill] sm:$0xff]  ;;  %v426_v8 = vpop.xlane.xlu1 %425  ;;  %v10585_v39 = vld [vmem:[#allocation30_spill] sm:$0xff] }
 0x19c   : > { %10575 = vst [vmem:[#allocation88_spill] sm:$0xff] %v8216_v27  ;;  %v416_v28 = vpop.xlane.xlu0 %415  ;;  %v778_v61 = vsub.f32 %v8204_v45, %v8216_v27  ;;  %774 = vmatprep.mubr.f32.mxu1 %v10554_v60  ;;  %1357 = vmatprep.mubr.f32.mxu0 %v10554_v60  ;;  %v6062_v2 = vpack.c.bf16 %v10582_v24, %v10581_v36  ;;  %v10584_v27 = vld [vmem:[#allocation22_spill] sm:$0xff] }
 0x19d   : > { %10580 = vst [vmem:[#allocation20_spill] sm:$0xff] %v8227_v29  ;;  %v471_v63 = vmul.f32 0.0078125, %v416_v28  ;;  %v8233_v43 = vand.u32 4294901760, %v563_v40  ;;  %7038 = vrsqrt.f32 %v502_v31  ;;  %v8238_v26 = vand.u32 4294901760, %v8227_v29  ;;  %6375 = vmatpush1.bf16.msra.mxu1 %v10584_v27  ;;  %6059 = vmatprep.subr.bf16.mxu0 %v6058_v6 }
 0x19e   : > { %v8235_v25 = vand.u32 4294901760, %v778_v61  ;;  %v7035_v30 = vpop.eup %7034  ;;  %6061 = vmatpush1.bf16.msra.mxu0 %v6060_v22  ;;  %6368 = vmatprep.subr.bf16.mxu1 %v10585_v39  ;;  %v6064_v24 = vpack.c.bf16 %v7774_v32, %v7769_v59  ;;  %v476_v27 = vmul.f32 0.0078125, %v426_v8  ;;  %v10665_v32 = vld [vmem:[#allocation21_spill] sm:$0xff] }
 0x19f   : > { %10583 = vst [vmem:[#allocation41_spill] sm:$0xff] %v8233_v43  ;;  %v503_v28 = vadd.f32 1e-05, %v471_v63  ;;  %v564_v36 = vmul.f32 %v7035_v30, %v7754_v56  ;;  %1359 = vmatmul.mubr.f32.gmra.mrb[8].mxu0 %v8233_v43  ;;  %v789_v61 = vsub.f32 %v8227_v29, %v8238_v26  ;;  %v8250_v6 = vsub.f32 %v563_v40, %v8233_v43  ;;  %v10589_v40 = vld [vmem:[#allocation31_spill] sm:$0xff] }
 0x1a0   : > { %780 = vmatmul.mubr.f32.gmra.mrb[4].mxu1 %v8235_v25  ;;  %v418_v31 = vpop.xlane.xlu0 %417  ;;  %1364 = vmatprep.mubr.f32.mxu0 %v10554_v60  ;;  %v6066_v56 = vpack.c.bf16 %v7849_v57, %v7820_v62 }
 0x1a1   : > { %10586 = vst [vmem:[#allocation22_spill] sm:$0xff] %v8250_v6  ;;  %v472_v22 = vmul.f32 0.0078125, %v418_v31  ;;  %785 = vmatprep.mubr.f32.mxu1 %v10554_v60  ;;  %v8256_v39 = vand.u32 4294901760, %v564_v36  ;;  %7040 = vrsqrt.f32 %v503_v28  ;;  %v8258_v63 = vand.u32 4294901760, %v789_v61  ;;  %6063 = vmatprep.subr.bf16.mxu0 %v6062_v2  ;;  %v10590_v31 = vld [vmem:[#allocation32_spill] sm:$0xff] }
 0x1a2   : > { %v8261_v30 = vand.u32 4294901760, %v8250_v6  ;;  %6376 = vmatpush1.bf16.msra.mxu1 %v10589_v40  ;;  %6065 = vmatpush1.bf16.msra.mxu0 %v6064_v24  ;;  %v7037_v43 = vpop.eup %7036  ;;  %v508_v24 = vadd.f32 1e-05, %v476_v27 }
 0x1a3   : > { %10587 = vst [vmem:[#allocation30_spill] sm:$0xff] %v8256_v39  ;;  %v504_v8 = vadd.f32 1e-05, %v472_v22  ;;  %6369 = vmatprep.subr.bf16.mxu1 %v10590_v31  ;;  %1366 = vmatmul.mubr.f32.gmra.mrb[10].mxu0 %v8256_v39  ;;  %v8270_v61 = vsub.f32 %v564_v36, %v8256_v39  ;;  %v565_v2 = vmul.f32 %v7037_v43, %v7782_v38  ;;  %v430_v36 = vpop.xlane.xlu1 %429 }
 0x1a4   : > { %10588 = vst [vmem:[#allocation89_spill] sm:$0xff] %v8261_v30  ;;  %791 = vmatmul.mubr.f32.gmra.mrb[6].mxu1 %v8258_v63  ;;  %v800_v28 = vsub.f32 %v8250_v6, %v8261_v30  ;;  %1371 = vmatprep.mubr.f32.mxu0 %v10554_v60  ;;  %v10594_v38 = vpack.c.bf16 %v7880_v5, %v7861_v0 }
 0x1a5   : > { %v420_v57 = vpop.xlane.xlu0 %419  ;;  %10591 = vst [vmem:[#allocation31_spill] sm:$0xff] %v8270_v61  ;;  %796 = vmatprep.mubr.f32.mxu1 %v10554_v60  ;;  %7042 = vrsqrt.f32 %v504_v8  ;;  %v8278_v40 = vand.u32 4294901760, %v8270_v61  ;;  %6067 = vmatprep.subr.bf16.mxu0 %v6066_v56  ;;  %v8281_v31 = vand.u32 4294901760, %v565_v2  ;;  %v10597_v56 = vld [vmem:[#allocation46_spill] sm:$0xff] }
 0x1a6   : > { %v473_v62 = vmul.f32 0.0078125, %v420_v57  ;;  %v8275_v22 = vand.u32 4294901760, %v800_v28  ;;  %6377 = vmatpush1.bf16.msra.mxu1 %v7776_v3  ;;  %6069 = vmatpush1.bf16.msra.mxu0 %v10594_v38  ;;  %v10595_v57 = vld [vmem:[#allocation45_spill] sm:$0xff]  ;;  %v10596_v3 = vpack.c.bf16 %v7937_v16, %v7929_v51  ;;  %v478_v16 = vmul.f32 0.0078125, %v430_v36  ;;  %v10608_v51 = vld [vmem:[#allocation67_spill] sm:$0xff] }
 0x1a7   : > { %10592 = vst [vmem:[#allocation32_spill] sm:$0xff] %v8278_v40  ;;  %10593 = vst [vmem:[#allocation90_spill] sm:$0xff] %v8281_v31  ;;  %6370 = vmatprep.subr.bf16.mxu1 %v10595_v57  ;;  %v7039_v43 = vpop.eup %7038  ;;  %v811_v8 = vsub.f32 %v8270_v61, %v8278_v40  ;;  %1373 = vmatmul.mubr.f32.gmra.mrb[12].mxu0 %v8281_v31  ;;  %v8300_v57 = vsub.f32 %v565_v2, %v8281_v31  ;;  %v10600_v40 = vld [vmem:[#allocation53_spill] sm:$0xff]  ;;  %v10606_v31 = vld [vmem:[#allocation56_spill] sm:$0xff] }
 0x1a8   : > { %v505_v39 = vadd.f32 1e-05, %v473_v62  ;;  %802 = vmatmul.mubr.f32.gmra.mrb[8].mxu1 %v8275_v22  ;;  %6071 = vmatprep.subr.bf16.mxu0 %v10596_v3  ;;  %v566_v28 = vmul.f32 %v7039_v43, %v10597_v56  ;;  %v8311_v56 = vld [vmem:[#allocation5 + $0x28] sm:$0xff]  ;;  %v10605_v36 = vpack.c.bf16 %v8016_v18, %v8009_v33 }
 0x1a9   : > { %807 = vmatprep.mubr.f32.mxu1 %v10554_v60  ;;  %1378 = vmatprep.mubr.f32.mxu0 %v10554_v60  ;;  %v8297_v38 = vand.u32 4294901760, %v811_v8  ;;  %10599 = vst [vmem:[#allocation46_spill] sm:$0xff] %v8300_v57 }
 0x1aa   : > { %v422_v27 = vpop.xlane.xlu0 %421  ;;  %7044 = vrsqrt.f32 %v505_v39  ;;  %6378 = vmatpush1.bf16.msra.mxu1 %v10600_v40  ;;  %v8303_v3 = vand.u32 4294901760, %v566_v28  ;;  %v10602_v39 = vpack.c.bf16 %v7966_v12, %v7958_v10  ;;  %v8315_v40 = vand.u32 4294901760, %v8300_v57 }
 0x1ab   : > { %v474_v62 = vmul.f32 0.0078125, %v422_v27  ;;  %7046 = vrsqrt.f32 %v508_v24  ;;  %10598 = vst [vmem:[#allocation45_spill] sm:$0xff] %v8297_v38  ;;  %v10603_v27 = vld [vmem:[#allocation63_spill] sm:$0xff]  ;;  %v8309_v24 = vld [vmem:[#allocation5 + $0x10] sm:$0xff]  ;;  %v7041_v8 = vpop.eup %7040 }
 0x1ac   : > { %10601 = vst [vmem:[#allocation53_spill] sm:$0xff] %v8303_v3  ;;  %6073 = vmatpush1.bf16.msra.mxu0 %v10602_v39  ;;  %6371 = vmatprep.subr.bf16.mxu1 %v10603_v27  ;;  %10604 = vst [vmem:[#allocation63_spill] sm:$0xff] %v8315_v40  ;;  %v567_v39 = vmul.f32 %v7041_v8, %v10606_v31  ;;  %v8324_v12 = vsub.f32 %v566_v28, %v8303_v3  ;;  %v510_v8 = vadd.f32 1e-05, %v478_v16  ;;  %v10614_v16 = vld [vmem:[#allocation55_spill] sm:$0xff] }
 0x1ad   : > { %v506_v43 = vadd.f32 1e-05, %v474_v62  ;;  %813 = vmatmul.mubr.f32.gmra.mrb[10].mxu1 %v8297_v38  ;;  %6075 = vmatprep.subr.bf16.mxu0 %v10605_v36  ;;  %v434_v62 = vpop.xlane.xlu1 %433  ;;  %v822_v10 = vsub.f32 %v8300_v57, %v8315_v40  ;;  %v10611_v28 = vpack.c.bf16 %v8020_v7, %v8018_v54  ;;  %v10613_v40 = vld [vmem:[#allocation17_spill] sm:$0xff]  ;;  %v10620_v7 = vld [vmem:[#allocation66_spill] sm:$0xff] }
 0x1ae   : > { %v424_v2 = vpop.xlane.xlu0 %423  ;;  %1380 = vmatmul.mubr.f32.gmra.mrb[14].mxu0 %v8303_v3  ;;  %818 = vmatprep.mubr.f32.mxu1 %v10554_v60  ;;  %10607 = vst [vmem:[#allocation56_spill] sm:$0xff] %v8324_v12  ;;  %v8332_v18 = vand.u32 4294901760, %v567_v39  ;;  %v8335_v33 = vand.u32 4294901760, %v8324_v12  ;;  %v480_v3 = vmul.f32 0.0078125, %v434_v62 }
 0x1af   : > { %v475_v27 = vmul.f32 0.0078125, %v424_v2  ;;  %7048 = vrsqrt.f32 %v506_v43  ;;  %1385 = vmatprep.mubr.f32.mxu0 %v10554_v60  ;;  %6379 = vmatpush1.bf16.msra.mxu1 %v10608_v51  ;;  %v7043_v43 = vpop.eup %7042  ;;  %v8341_v51 = vand.u32 4294901760, %v822_v10 }
 0x1b0   : > { %10609 = vst [vmem:[#allocation67_spill] sm:$0xff] %v8332_v18  ;;  %10610 = vst [vmem:[#allocation91_spill] sm:$0xff] %v8335_v33  ;;  %6077 = vmatpush1.bf16.msra.mxu0 %v10611_v28  ;;  %6372 = vmatprep.subr.bf16.mxu1 %v8011_v50  ;;  %v568_v31 = vmul.f32 %v7043_v43, %v10614_v16  ;;  %v833_v50 = vsub.f32 %v8324_v12, %v8335_v33  ;;  %v512_v33 = vadd.f32 1e-05, %v480_v3  ;;  %v10625_v3 = vld [vmem:[#allocation50_spill] sm:$0xff] }
 0x1b1   : > { %v507_v2 = vadd.f32 1e-05, %v475_v27  ;;  %10612 = vst [vmem:[#allocation92_spill] sm:$0xff] %v8341_v51  ;;  %6079 = vmatprep.subr.bf16.mxu0 %v10613_v40  ;;  %824 = vmatmul.mubr.f32.gmra.mrb[12].mxu1 %v8341_v51  ;;  %v8351_v62 = vsub.f32 %v567_v39, %v8332_v18  ;;  %v10647_v51 = vld [vmem:[#allocation61_spill] sm:$0xff] }
 0x1b2   : > { %v428_v36 = vpop.xlane.xlu0 %427  ;;  %1387 = vmatmul.mubr.f32.gmra.mrb[16].mxu0 %v8332_v18  ;;  %v8353_v28 = vand.u32 4294901760, %v568_v31  ;;  %829 = vmatprep.mubr.f32.mxu1 %v10554_v60  ;;  %v8364_v18 = vand.u32 4294901760, %v833_v50 }
 0x1b3   : > { %7050 = vrsqrt.f32 %v507_v2  ;;  %v477_v27 = vmul.f32 0.0078125, %v428_v36  ;;  %1392 = vmatprep.mubr.f32.mxu0 %v10554_v60  ;;  %10615 = vst [vmem:[#allocation55_spill] sm:$0xff] %v8351_v62  ;;  %6380 = vmatpush1.bf16.msra.mxu1 %v8031_v44  ;;  %v10617_v36 = vand.u32 4294901760, %v8309_v24  ;;  %v10618_v2 = vand.u32 4294901760, %v8311_v56 }
 0x1b4   : > { %v7045_v10 = vpop.eup %7044  ;;  %7052 = vrsqrt.f32 %v510_v8  ;;  %10616 = vst [vmem:[#allocation93_spill] sm:$0xff] %v8353_v28  ;;  %10621 = vst [vmem:[#allocation66_spill] sm:$0xff] %v8364_v18  ;;  %v8367_v54 = vand.u32 4294901760, %v8351_v62  ;;  %6373 = vmatprep.subr.bf16.mxu1 %v8071_v53 }
 0x1b5   : > { %v509_v40 = vadd.f32 1e-05, %v477_v27  ;;  %v8361_v43 = vpack.c.bf16 %v10618_v2, %v10617_v36  ;;  %v7047_v16 = vpop.eup %7046  ;;  %v569_v39 = vmul.f32 %v7045_v10, %v10620_v7  ;;  %v8372_v27 = vsub.f32 %v568_v31, %v8353_v28  ;;  %835 = vmatmul.mubr.f32.gmra.mrb[14].mxu1 %v8364_v18  ;;  %v438_v10 = vpop.xlane.xlu1 %437 }
 0x1b6   : > { %v432_v8 = vpop.xlane.xlu0 %431  ;;  %10622 = vst [vmem:[#allocation95_spill] sm:$0xff] %v8367_v54  ;;  %1394 = vmatmul.mubr.f32.gmra.mrb[18].mxu0 %v8353_v28  ;;  %v844_v7 = vsub.f32 %v8351_v62, %v8367_v54  ;;  %v572_v50 = vmul.f32 %v7047_v16, %v10625_v3  ;;  %840 = vmatprep.mubr.f32.mxu1 %v10554_v60  ;;  %v10629_v16 = vld [vmem:[#allocation65_spill] sm:$0xff]  ;;  %v482_v54 = vmul.f32 0.0078125, %v438_v10 }
 0x1b7   : > { %10619 = vst [vmem:[#allocation94_spill] sm:$0xff] %v8361_v43  ;;  %v479_v44 = vmul.f32 0.0078125, %v432_v8  ;;  %10623 = vst [vmem:[#allocation96_spill] sm:$0xff] %v8372_v27  ;;  %v8374_v36 = vand.u32 4294901760, %v569_v39  ;;  %7054 = vrsqrt.f32 %v509_v40  ;;  %1399 = vmatprep.mubr.f32.mxu0 %v10554_v60  ;;  %v8383_v2 = vand.u32 4294901760, %v8372_v27  ;;  %6381 = vmatpush1.bf16.msra.mxu1 %v8073_v58 }
 0x1b8   : > { %7056 = vrsqrt.f32 %v512_v33  ;;  %v8386_v40 = vand.u32 4294901760, %v844_v7  ;;  %6175 = vmatprep.subr.bf16.mxu1 %v8361_v43  ;;  %v8401_v7 = vand.u32 4294901760, %v572_v50 }
 0x1b9   : > { %10624 = vst [vmem:[#allocation97_spill] sm:$0xff] %v8374_v36  ;;  %v511_v53 = vadd.f32 1e-05, %v479_v44  ;;  %10626 = vst [vmem:[#allocation50_spill] sm:$0xff] %v8383_v2  ;;  %v7049_v31 = vpop.eup %7048  ;;  %v8389_v28 = vsub.f32 %v569_v39, %v8374_v36  ;;  %v855_v33 = vsub.f32 %v8372_v27, %v8383_v2  ;;  %v442_v5 = vpop.xlane.xlu1 %441 }
 0x1ba   : > { %10627 = vst [vmem:[#allocation98_spill] sm:$0xff] %v8386_v40  ;;  %v436_v8 = vpop.xlane.xlu0 %435  ;;  %v570_v3 = vmul.f32 %v7049_v31, %v10629_v16  ;;  %1401 = vmatmul.mubr.f32.gmra.mrb[20].mxu0 %v8374_v36  ;;  %846 = vmatmul.mubr.f32.gmra.mrb[16].mxu1 %v8386_v40  ;;  %10631 = vst [vmem:[#allocation100_spill] sm:$0xff] %v8401_v7  ;;  %v514_v40 = vadd.f32 1e-05, %v482_v54 }
 0x1bb   : > { %10628 = vst [vmem:[#allocation99_spill] sm:$0xff] %v8389_v28  ;;  %7058 = vrsqrt.f32 %v511_v53  ;;  %v481_v44 = vmul.f32 0.0078125, %v436_v8  ;;  %1406 = vmatprep.mubr.f32.mxu0 %v10554_v60  ;;  %v8399_v58 = vand.u32 4294901760, %v8389_v28  ;;  %851 = vmatprep.mubr.f32.mxu1 %v10554_v60  ;;  %v8407_v31 = vand.u32 4294901760, %v855_v33 }
 0x1bc   : > { %v8403_v18 = vand.u32 4294901760, %v570_v3 }
 0x1bd   : > { %10630 = vst [vmem:[#allocation65_spill] sm:$0xff] %v8399_v58  ;;  %v7051_v39 = vpop.eup %7050  ;;  %v513_v53 = vadd.f32 1e-05, %v481_v44  ;;  %10633 = vst [vmem:[#allocation102_spill] sm:$0xff] %v8407_v31  ;;  %v866_v16 = vsub.f32 %v8389_v28, %v8399_v58 }
 0x1be   : > { %10632 = vst [vmem:[#allocation101_spill] sm:$0xff] %v8403_v18  ;;  %v571_v10 = vmul.f32 %v7051_v39, %v8003_v42  ;;  %v440_v8 = vpop.xlane.xlu0 %439  ;;  %v7053_v36 = vpop.eup %7052  ;;  %1408 = vmatmul.mubr.f32.gmra.mrb[22].mxu0 %v8403_v18  ;;  %v8413_v2 = vsub.f32 %v570_v3, %v8403_v18  ;;  %857 = vmatmul.mubr.f32.gmra.mrb[18].mxu1 %v8407_v31  ;;  %v10639_v39 = vld [vmem:[#allocation58_spill] sm:$0xff]  ;;  %v484_v31 = vmul.f32 0.0078125, %v442_v5 }
 0x1bf   : > { %1413 = vmatprep.mubr.f32.mxu0 %v10554_v60  ;;  %v8419_v42 = vand.u32 4294901760, %v866_v16  ;;  %7060 = vrsqrt.f32 %v513_v53  ;;  %v483_v44 = vmul.f32 0.0078125, %v440_v8  ;;  %862 = vmatprep.mubr.f32.mxu1 %v10554_v60  ;;  %v8426_v3 = vsub.f32 %v572_v50, %v8401_v7 }
 0x1c0   : > { %10634 = vst [vmem:[#allocation103_spill] sm:$0xff] %v8413_v2  ;;  %v8415_v0 = vand.u32 4294901760, %v571_v10  ;;  %v8423_v33 = vand.u32 4294901760, %v8413_v2  ;;  %v574_v18 = vmul.f32 %v7053_v36, %v10639_v39  ;;  %7062 = vrsqrt.f32 %v514_v40 }
 0x1c1   : > { %10636 = vst [vmem:[#allocation105_spill] sm:$0xff] %v8419_v42  ;;  %10638 = vst [vmem:[#allocation107_spill] sm:$0xff] %v8426_v3  ;;  %v7055_v54 = vpop.eup %7054  ;;  %v515_v5 = vadd.f32 1e-05, %v483_v44 }
 0x1c2   : > { %10635 = vst [vmem:[#allocation104_spill] sm:$0xff] %v8415_v0  ;;  %10637 = vst [vmem:[#allocation106_spill] sm:$0xff] %v8423_v33  ;;  %v8430_v58 = vsub.f32 %v571_v10, %v8415_v0  ;;  %v573_v16 = vmul.f32 %v7055_v54, %v8066_v49  ;;  %1415 = vmatmul.mubr.f32.gmra.mrb[24].mxu0 %v8415_v0  ;;  %v7057_v53 = vpop.eup %7056  ;;  %868 = vmatmul.mubr.f32.gmra.mrb[20].mxu1 %v8419_v42  ;;  %v8445_v49 = vand.u32 4294901760, %v8426_v3  ;;  %v444_v39 = vpop.xlane.xlu0 %443 }
 0x1c3   : > { %1420 = vmatprep.mubr.f32.mxu0 %v10554_v60  ;;  %v877_v50 = vsub.f32 %v8413_v2, %v8423_v33  ;;  %873 = vmatprep.mubr.f32.mxu1 %v10554_v60  ;;  %v8447_v40 = vand.u32 4294901760, %v574_v18  ;;  %v516_v42 = vadd.f32 1e-05, %v484_v31  ;;  %v576_v38 = vmul.f32 %v7057_v53, %v10647_v51 }
 0x1c4   : > { %10640 = vst [vmem:[#allocation58_spill] sm:$0xff] %v8430_v58  ;;  %v8439_v8 = vand.u32 4294901760, %v8430_v58  ;;  %v8441_v10 = vand.u32 4294901760, %v573_v16  ;;  %10643 = vst [vmem:[#allocation110_spill] sm:$0xff] %v8445_v49  ;;  %7064 = vrsqrt.f32 %v515_v5  ;;  %v899_v31 = vsub.f32 %v8426_v3, %v8445_v49 }
 0x1c5   : > { %v7059_v36 = vpop.eup %7058  ;;  %10644 = vst [vmem:[#allocation111_spill] sm:$0xff] %v8447_v40  ;;  %v8450_v0 = vand.u32 4294901760, %v877_v50  ;;  %v485_v50 = vmul.f32 0.0078125, %v444_v39  ;;  %v8472_v51 = vsub.f32 %v574_v18, %v8447_v40  ;;  %7066 = vrsqrt.f32 %v516_v42 }
 0x1c6   : > { %10641 = vst [vmem:[#allocation108_spill] sm:$0xff] %v8439_v8  ;;  %10642 = vst [vmem:[#allocation109_spill] sm:$0xff] %v8441_v10  ;;  %v575_v54 = vmul.f32 %v7059_v36, %v8080_v41  ;;  %v888_v33 = vsub.f32 %v8430_v58, %v8439_v8  ;;  %1422 = vmatmul.mubr.f32.gmra.mrb[26].mxu0 %v8401_v7  ;;  %v8456_v44 = vsub.f32 %v573_v16, %v8441_v10  ;;  %v446_v41 = vpop.xlane.xlu1 %445  ;;  %v448_v8 = vpop.xlane.xlu0 %447 }
 0x1c7   : > { %10645 = vst [vmem:[#allocation112_spill] sm:$0xff] %v8450_v0  ;;  %879 = vmatmul.mubr.f32.gmra.mrb[22].mxu1 %v8450_v0  ;;  %1427 = vmatprep.mubr.f32.mxu0 %v10554_v60  ;;  %10651 = vst [vmem:[#allocation116_spill] sm:$0xff] %v8472_v51  ;;  %v486_v5 = vmul.f32 0.0078125, %v446_v41  ;;  %v517_v39 = vadd.f32 1e-05, %v485_v50  ;;  %v8480_v7 = vand.u32 4294901760, %v899_v31 }
 0x1c8   : > { %10646 = vst [vmem:[#allocation113_spill] sm:$0xff] %v8456_v44  ;;  %v8461_v30 = vand.u32 4294901760, %v888_v33  ;;  %884 = vmatprep.mubr.f32.mxu1 %v10554_v60  ;;  %v8466_v36 = vand.u32 4294901760, %v575_v54  ;;  %v8469_v16 = vand.u32 4294901760, %v8456_v44  ;;  %v8475_v33 = vand.u32 4294901760, %v576_v38 }
 0x1c9   : > { %v7061_v53 = vpop.eup %7060  ;;  %10653 = vst [vmem:[#allocation118_spill] sm:$0xff] %v8480_v7  ;;  %v518_v50 = vadd.f32 1e-05, %v486_v5  ;;  %7068 = vrsqrt.f32 %v517_v39 }
 0x1ca   : > { %10648 = vst [vmem:[#allocation61_spill] sm:$0xff] %v8461_v30  ;;  %10649 = vst [vmem:[#allocation114_spill] sm:$0xff] %v8466_v36  ;;  %1429 = vmatmul.mubr.f32.gmra.mrb[28].mxu0 %v8441_v10  ;;  %v7063_v49 = vpop.eup %7062  ;;  %v577_v18 = vmul.f32 %v7061_v53, %v8090_v23  ;;  %v910_v42 = vsub.f32 %v8456_v44, %v8469_v16  ;;  %v8486_v10 = vand.u32 4294901760, %v8472_v51  ;;  %v10657_v23 = vld [vmem:[#allocation69_spill] sm:$0xff] }
 0x1cb   : > { %10650 = vst [vmem:[#allocation115_spill] sm:$0xff] %v8469_v16  ;;  %10652 = vst [vmem:[#allocation117_spill] sm:$0xff] %v8475_v33  ;;  %890 = vmatmul.mubr.f32.gmra.mrb[24].mxu1 %v8461_v30  ;;  %1434 = vmatprep.mubr.f32.mxu0 %v10554_v60  ;;  %v8489_v41 = vsub.f32 %v575_v54, %v8466_v36  ;;  %v8495_v31 = vsub.f32 %v576_v38, %v8475_v33  ;;  %v450_v30 = vpop.xlane.xlu1 %449  ;;  %v487_v16 = vmul.f32 0.0078125, %v448_v8 }
 0x1cc   : > { %895 = vmatprep.mubr.f32.mxu1 %v10554_v60  ;;  %10654 = vst [vmem:[#allocation119_spill] sm:$0xff] %v8486_v10  ;;  %v578_v53 = vmul.f32 %v7063_v49, %v10657_v23  ;;  %v8499_v0 = vand.u32 4294901760, %v577_v18  ;;  %v8501_v54 = vand.u32 4294901760, %v910_v42  ;;  %v921_v5 = vsub.f32 %v8472_v51, %v8486_v10  ;;  %v10663_v23 = vld [vmem:[#allocation18_spill] sm:$0xff] }
 0x1cd   : > { %10655 = vst [vmem:[#allocation120_spill] sm:$0xff] %v8489_v41  ;;  %10656 = vst [vmem:[#allocation121_spill] sm:$0xff] %v8495_v31  ;;  %7070 = vrsqrt.f32 %v518_v50  ;;  %v488_v38 = vmul.f32 0.0078125, %v450_v30  ;;  %v8512_v8 = vand.u32 4294901760, %v8495_v31  ;;  %v519_v42 = vadd.f32 1e-05, %v487_v16 }
 0x1ce   : > { %1436 = vmatmul.mubr.f32.gmra.mrb[30].mxu0 %v8447_v40  ;;  %10658 = vst [vmem:[#allocation69_spill] sm:$0xff] %v8499_v0  ;;  %10659 = vst [vmem:[#allocation122_spill] sm:$0xff] %v8501_v54  ;;  %v8506_v40 = vand.u32 4294901760, %v8489_v41  ;;  %v8514_v39 = vand.u32 4294901760, %v578_v53  ;;  %v8519_v50 = vand.u32 4294901760, %v921_v5 }
 0x1cf   : > { %901 = vmatmul.mubr.f32.gmra.mrb[26].mxu1 %v8480_v7  ;;  %1682 = vmatprep.mubr.f32.mxu0 %v10554_v60  ;;  %v7065_v7 = vpop.eup %7064  ;;  %10661 = vst [vmem:[#allocation124_spill] sm:$0xff] %v8512_v8  ;;  %v520_v59 = vadd.f32 1e-05, %v488_v38  ;;  %7072 = vrsqrt.f32 %v519_v42  ;;  %v10673_v42 = vand.u32 4294901760, %v8311_v56 }
 0x1d0   : > { %906 = vmatprep.mubr.f32.mxu1 %v10554_v60  ;;  %10660 = vst [vmem:[#allocation123_spill] sm:$0xff] %v8506_v40  ;;  %v7067_v49 = vpop.eup %7066  ;;  %10662 = vst [vmem:[#allocation125_spill] sm:$0xff] %v8514_v39  ;;  %v579_v10 = vmul.f32 %v7065_v7, %v8098_v1  ;;  %v932_v30 = vsub.f32 %v8489_v41, %v8506_v40  ;;  %v943_v1 = vsub.f32 %v8495_v31, %v8512_v8  ;;  %v454_v7 = vpop.xlane.xlu1 %453 }
 0x1d1   : > { %v580_v16 = vmul.f32 %v7067_v49, %v8029_v35  ;;  %v10668_v35 = vand.u32 4294901760, %v8309_v24  ;;  %7074 = vrsqrt.f32 %v520_v59 }
 0x1d2   : > { %1685 = vmatmul.mubr.f32.vlgmr.msra.gmra.mrb[0].mxu0 %v8169_v34  ;;  %v452_v34 = vpop.xlane.xlu0 %451  ;;  %v8543_v49 = vand.u32 4294901760, %v579_v10 }
 0x1d3   : > { %912 = vmatmul.mubr.f32.gmra.mrb[28].mxu1 %v8501_v54  ;;  %1690 = vmatprep.mubr.f32.mxu0 %v10554_v60  ;;  %v8524_v54 = vsub.f32 %v577_v18, %v8499_v0  ;;  %v489_v5 = vmul.f32 0.0078125, %v452_v34  ;;  %v8535_v18 = vsub.f32 %v578_v53, %v8514_v39  ;;  %v8541_v38 = vsub.f32 %v8309_v24, %v10668_v35  ;;  %v10672_v34 = vld [vmem:[#allocation44_spill] sm:$0xff] }
 0x1d4   : > { %917 = vmatprep.mubr.f32.mxu1 %v10554_v60  ;;  %6081 = vmatpush1.bf16.msra.mxu0 %v10663_v23  ;;  %10669 = vst [vmem:[#allocation128_spill] sm:$0xff] %v8543_v49  ;;  %v8554_v53 = vsub.f32 %v8311_v56, %v10673_v42  ;;  %v8557_v8 = vand.u32 4294901760, %v580_v16  ;;  %v490_v24 = vmul.f32 0.0078125, %v454_v7  ;;  %v8562_v35 = vand.u32 4294901760, %v943_v1 }
 0x1d5   : > { %10664 = vst [vmem:[#allocation126_spill] sm:$0xff] %v8524_v54  ;;  %6083 = vmatprep.subr.bf16.mxu0 %v10665_v32  ;;  %10666 = vst [vmem:[#allocation127_spill] sm:$0xff] %v8535_v18  ;;  %v10667_v32 = vld [vmem:[#allocation24_spill] sm:$0xff]  ;;  %v8548_v23 = vand.u32 4294901760, %v8524_v54  ;;  %v8569_v59 = vand.u32 4294901760, %v8535_v18  ;;  %v8572_v7 = vsub.f32 %v579_v10, %v8543_v49  ;;  %v10680_v10 = vld [vmem:[#allocation51_spill] sm:$0xff] }
 0x1d6   : > { %1693 = vmatmul.mubr.f32.gmra.mrb[2].mxu0 %v8186_v20  ;;  %v8545_v20 = vand.u32 4294901760, %v932_v30  ;;  %v521_v30 = vadd.f32 1e-05, %v489_v5  ;;  %10674 = vst [vmem:[#allocation131_spill] sm:$0xff] %v8562_v35  ;;  %v456_v40 = vpop.xlane.xlu0 %455  ;;  %v10678_v5 = vld [vmem:[#allocation49_spill] sm:$0xff] }
 0x1d7   : > { %923 = vmatmul.mubr.f32.gmra.mrb[30].mxu1 %v8519_v50  ;;  %1698 = vmatprep.mubr.f32.mxu0 %v10554_v60  ;;  %10671 = vst [vmem:[#allocation130_spill] sm:$0xff] %v8548_v23  ;;  %10676 = vst [vmem:[#allocation132_spill] sm:$0xff] %v8569_v59  ;;  %v522_v1 = vadd.f32 1e-05, %v490_v24  ;;  %v965_v24 = vsub.f32 %v8535_v18, %v8569_v59 }
 0x1d8   : > { %928 = vmatprep.mubr.f32.mxu1 %v10554_v60  ;;  %6085 = vmatpush1.bf16.msra.mxu0 %v10667_v32  ;;  %10670 = vst [vmem:[#allocation129_spill] sm:$0xff] %v8545_v20  ;;  %v7069_v32 = vpop.eup %7068  ;;  %10677 = vst [vmem:[#allocation133_spill] sm:$0xff] %v8572_v7  ;;  %7076 = vrsqrt.f32 %v521_v30 }
 0x1d9   : > { %6087 = vmatprep.subr.bf16.mxu0 %v10672_v34  ;;  %v10675_v34 = vld [vmem:[#allocation47_spill] sm:$0xff]  ;;  %v7071_v56 = vpop.eup %7070  ;;  %v581_v42 = vmul.f32 %v7069_v32, %v8108_v37  ;;  %v8579_v32 = vsub.f32 %v580_v16, %v8557_v8  ;;  %7078 = vrsqrt.f32 %v522_v1  ;;  %v8605_v1 = vand.u32 4294901760, %v965_v24 }
 0x1da   : > { %1701 = vmatmul.mubr.f32.gmra.mrb[4].mxu0 %v8204_v45  ;;  %v954_v45 = vsub.f32 %v8524_v54, %v8548_v23  ;;  %v582_v37 = vmul.f32 %v7071_v56, %v8077_v15  ;;  %v491_v23 = vmul.f32 0.0078125, %v456_v40  ;;  %v10683_v16 = vld [vmem:[#allocation59_spill] sm:$0xff]  ;;  %v7073_v15 = vpop.eup %7072 }
 0x1db   : > { %934 = vmatmul.mubr.f32.gmra.mrb[32].mxu1 %v8545_v20  ;;  %1706 = vmatprep.mubr.f32.mxu0 %v10554_v60  ;;  %10679 = vst [vmem:[#allocation134_spill] sm:$0xff] %v8579_v32  ;;  %v583_v59 = vmul.f32 %v7073_v15, %v8113_v14  ;;  %v10687_v20 = vld [vmem:[#allocation71_spill] sm:$0xff] }
 0x1dc   : > { %939 = vmatprep.mubr.f32.mxu1 %v10554_v60  ;;  %6089 = vmatpush1.bf16.msra.mxu0 %v10675_v34  ;;  %v458_v34 = vpop.xlane.xlu1 %457  ;;  %v8600_v30 = vand.u32 4294901760, %v582_v37  ;;  %v523_v56 = vadd.f32 1e-05, %v491_v23 }
 0x1dd   : > { %6091 = vmatprep.subr.bf16.mxu0 %v10678_v5  ;;  %v8584_v5 = vand.u32 4294901760, %v581_v42  ;;  %v492_v40 = vmul.f32 0.0078125, %v458_v34 }
 0x1de   : > { %1709 = vmatmul.mubr.f32.gmra.mrb[6].mxu0 %v8227_v29  ;;  %v8586_v29 = vand.u32 4294901760, %v954_v45  ;;  %v8598_v45 = vand.u32 4294901760, %v8579_v32  ;;  %7080 = vrsqrt.f32 %v523_v56 }
 0x1df   : > { %945 = vmatmul.mubr.f32.gmra.mrb[34].mxu1 %v8562_v35  ;;  %1714 = vmatprep.mubr.f32.mxu0 %v10554_v60  ;;  %v8591_v35 = vand.u32 4294901760, %v8572_v7  ;;  %v524_v23 = vadd.f32 1e-05, %v492_v40 }
 0x1e0   : > { %950 = vmatprep.mubr.f32.mxu1 %v10554_v60  ;;  %6093 = vmatpush1.bf16.msra.mxu0 %v10680_v10  ;;  %10681 = vst [vmem:[#allocation135_spill] sm:$0xff] %v8586_v29  ;;  %10684 = vst [vmem:[#allocation137_spill] sm:$0xff] %v8598_v45  ;;  %v10685_v10 = vld [vmem:[#allocation60_spill] sm:$0xff]  ;;  %v987_v14 = vsub.f32 %v8579_v32, %v8598_v45  ;;  %v462_v40 = vpop.xlane.xlu1 %461 }
 0x1e1   : > { %10682 = vst [vmem:[#allocation136_spill] sm:$0xff] %v8591_v35  ;;  %6095 = vmatprep.subr.bf16.mxu0 %v10683_v16  ;;  %v7075_v16 = vpop.eup %7074  ;;  %v976_v34 = vsub.f32 %v8572_v7, %v8591_v35  ;;  %7082 = vrsqrt.f32 %v524_v23  ;;  %v8831_v35 = vld [vmem:[#allocation5 + $0xd0] sm:$0xff] }
 0x1e2   : > { %1717 = vmatmul.mubr.f32.gmra.mrb[8].mxu0 %v8250_v6  ;;  %v460_v6 = vpop.xlane.xlu0 %459  ;;  %v584_v24 = vmul.f32 %v7075_v16, %v8101_v11  ;;  %v7077_v11 = vpop.eup %7076  ;;  %v494_v16 = vmul.f32 0.0078125, %v462_v40  ;;  %v10694_v40 = vand.u32 4294901760, %v7531_v47 }
 0x1e3   : > { %956 = vmatmul.mubr.f32.gmra.mrb[36].mxu1 %v8586_v29  ;;  %1722 = vmatprep.mubr.f32.mxu0 %v10554_v60  ;;  %v8610_v29 = vsub.f32 %v581_v42, %v8584_v5  ;;  %v493_v15 = vmul.f32 0.0078125, %v460_v6  ;;  %v8621_v42 = vsub.f32 %v582_v37, %v8600_v30  ;;  %v8635_v6 = vand.u32 4294901760, %v987_v14 }
 0x1e4   : > { %961 = vmatprep.mubr.f32.mxu1 %v10554_v60  ;;  %6097 = vmatpush1.bf16.msra.mxu0 %v10685_v10  ;;  %v8626_v10 = vand.u32 4294901760, %v976_v34  ;;  %v8637_v37 = vand.u32 4294901760, %v584_v24  ;;  %v585_v23 = vmul.f32 %v7077_v11, %v8123_v13  ;;  %v526_v11 = vadd.f32 1e-05, %v494_v16 }
 0x1e5   : > { %10686 = vst [vmem:[#allocation138_spill] sm:$0xff] %v8610_v29  ;;  %6099 = vmatprep.subr.bf16.mxu0 %v10687_v20  ;;  %10688 = vst [vmem:[#allocation139_spill] sm:$0xff] %v8621_v42  ;;  %v8624_v20 = vand.u32 4294901760, %v583_v59  ;;  %v525_v56 = vadd.f32 1e-05, %v493_v15  ;;  %v8641_v34 = vand.u32 4294901760, %v8621_v42 }
 0x1e6   : > { %1725 = vmatmul.mubr.f32.gmra.mrb[10].mxu0 %v8270_v61  ;;  %v8629_v61 = vand.u32 4294901760, %v8610_v29  ;;  %v10693_v15 = vand.u32 4294901760, %v7529_v46  ;;  %v8663_v46 = vand.u32 4294901760, %v585_v23 }
 0x1e7   : > { %967 = vmatmul.mubr.f32.gmra.mrb[38].mxu1 %v8605_v1  ;;  %1730 = vmatprep.mubr.f32.mxu0 %v10554_v60  ;;  %10690 = vst [vmem:[#allocation141_spill] sm:$0xff] %v8641_v34  ;;  %v8648_v14 = vsub.f32 %v583_v59, %v8624_v20  ;;  %7084 = vrsqrt.f32 %v525_v56  ;;  %v1009_v59 = vsub.f32 %v8621_v42, %v8641_v34  ;;  %v611_v34 = vld [vmem:[#allocation5 + $0xa0] sm:$0xff] }
 0x1e8   : > { %972 = vmatprep.mubr.f32.mxu1 %v10554_v60  ;;  %6101 = vmatpush1.bf16.msra.mxu0 %v8000_v9  ;;  %10689 = vst [vmem:[#allocation140_spill] sm:$0xff] %v8629_v61  ;;  %v7079_v9 = vpop.eup %7078  ;;  %v6110_v45 = vpack.c.bf16 %v10694_v40, %v10693_v15  ;;  %v8671_v40 = vsub.f32 %v584_v24, %v8637_v37  ;;  %7086 = vrsqrt.f32 %v526_v11 }
 0x1e9   : > { %6103 = vmatprep.subr.bf16.mxu0 %v8026_v4  ;;  %v10691_v4 = vld [vmem:[#allocation78_spill] sm:$0xff]  ;;  %10692 = vst [vmem:[#allocation142_spill] sm:$0xff] %v8648_v14  ;;  %v586_v13 = vmul.f32 %v7079_v9, %v8116_v52  ;;  %v8668_v15 = vand.u32 4294901760, %v8648_v14  ;;  %v7081_v9 = vpop.eup %7080 }
 0x1ea   : > { %1733 = vmatmul.mubr.f32.gmra.mrb[12].mxu0 %v8300_v57  ;;  %v998_v57 = vsub.f32 %v8610_v29, %v8629_v61  ;;  %10696 = vst [vmem:[#allocation144_spill] sm:$0xff] %v8671_v40  ;;  %v587_v56 = vmul.f32 %v7081_v9, %v8128_v17  ;;  %v8685_v24 = vand.u32 4294901760, %v8671_v40  ;;  %v614_v61 = vld [vmem:[#allocation5 + $0xb8] sm:$0xff] }
 0x1eb   : > { %978 = vmatmul.mubr.f32.gmra.mrb[40].mxu1 %v8626_v10  ;;  %1738 = vmatprep.mubr.f32.mxu0 %v10554_v60  ;;  %10695 = vst [vmem:[#allocation143_spill] sm:$0xff] %v8668_v15  ;;  %v8676_v52 = vand.u32 4294901760, %v586_v13  ;;  %v7083_v16 = vpop.eup %7082 }
 0x1ec   : > { %983 = vmatprep.mubr.f32.mxu1 %v10554_v60  ;;  %6105 = vmatpush1.bf16.msra.mxu0 %v10691_v4  ;;  %v8665_v47 = vand.u32 4294901760, %v998_v57  ;;  %v8679_v57 = vand.u32 4294901760, %v1009_v59  ;;  %10697 = vst [vmem:[#allocation145_spill] sm:$0xff] %v8685_v24  ;;  %v588_v11 = vmul.f32 %v7083_v16, %v8131_v48  ;;  %v8698_v59 = vand.u32 4294901760, %v587_v56 }
 0x1ed   : > { %6107 = vmatprep.subr.bf16.mxu0 %v8050_v55  ;;  %v8696_v17 = vsub.f32 %v586_v13, %v8676_v52 }
 0x1ee   : > { %1741 = vmatmul.mubr.f32.gmra.mrb[14].mxu0 %v8324_v12  ;;  %10700 = vst [vmem:[#allocation148_spill] sm:$0xff] %v8698_v59  ;;  %v8710_v48 = vand.u32 4294901760, %v588_v11 }
 0x1ef   : > { %989 = vmatmul.mubr.f32.gmra.mrb[42].mxu1 %v8635_v6  ;;  %1746 = vmatprep.mubr.f32.mxu0 %v10554_v60  ;;  %10699 = vst [vmem:[#allocation147_spill] sm:$0xff] %v8696_v17  ;;  %v8714_v13 = vand.u32 4294901760, %v8696_v17 }
 0x1f0   : > { %994 = vmatprep.mubr.f32.mxu1 %v10554_v60  ;;  %6109 = vmatpush1.bf16.msra.mxu0 %v8063_v21  ;;  %v8688_v21 = vsub.f32 %v585_v23, %v8663_v46  ;;  %v1031_v23 = vsub.f32 %v8671_v40, %v8685_v24  ;;  %10703 = vst [vmem:[#allocation151_spill] sm:$0xff] %v8710_v48 }
 0x1f1   : > { %6111 = vmatprep.subr.bf16.mxu0 %v6110_v45  ;;  %v1020_v45 = vsub.f32 %v8648_v14, %v8668_v15  ;;  %v7085_v4 = vpop.eup %7084  ;;  %10704 = vst [vmem:[#allocation152_spill] sm:$0xff] %v8714_v13 }
 0x1f2   : > { %1749 = vmatmul.mubr.f32.gmra.mrb[16].mxu0 %v8351_v62  ;;  %10698 = vst [vmem:[#allocation146_spill] sm:$0xff] %v8688_v21  ;;  %v8705_v55 = vand.u32 4294901760, %v8688_v21  ;;  %v589_v16 = vmul.f32 %v7085_v4, %v8138_v19  ;;  %v7087_v62 = vpop.eup %7086  ;;  %v1053_v4 = vsub.f32 %v8696_v17, %v8714_v13  ;;  %v8731_v19 = vsub.f32 %v588_v11, %v8710_v48 }
 0x1f3   : > { %1000 = vmatmul.mubr.f32.gmra.mrb[44].mxu1 %v8665_v47  ;;  %1754 = vmatprep.mubr.f32.mxu0 %v10554_v60  ;;  %v8700_v9 = vand.u32 4294901760, %v1020_v45  ;;  %v8717_v45 = vand.u32 4294901760, %v1031_v23  ;;  %v10708_v23 = vld [vmem:[#allocation81_spill] sm:$0xff] }
 0x1f4   : > { %1005 = vmatprep.mubr.f32.mxu1 %v10554_v60  ;;  %10702 = vst [vmem:[#allocation150_spill] sm:$0xff] %v8705_v55  ;;  %10707 = vst [vmem:[#allocation155_spill] sm:$0xff] %v8731_v19  ;;  %v590_v12 = vmul.f32 %v7087_v62, %v10708_v23  ;;  %v8745_v13 = vand.u32 4294901760, %v1053_v4 }
 0x1f5   : > { %10701 = vst [vmem:[#allocation149_spill] sm:$0xff] %v8700_v9  ;;  %10705 = vst [vmem:[#allocation153_spill] sm:$0xff] %v8717_v45 }
 0x1f6   : > { %1757 = vmatmul.mubr.f32.gmra.mrb[18].mxu0 %v8372_v27  ;;  %v1042_v27 = vsub.f32 %v8688_v21, %v8705_v55  ;;  %v8734_v55 = vand.u32 4294901760, %v589_v16  ;;  %10711 = vst [vmem:[#allocation157_spill] sm:$0xff] %v8745_v13  ;;  %v8747_v11 = vand.u32 4294901760, %v590_v12 }
 0x1f7   : > { %1011 = vmatmul.mubr.f32.gmra.mrb[46].mxu1 %v8679_v57  ;;  %1762 = vmatprep.mubr.f32.mxu0 %v10554_v60 }
 0x1f8   : > { %1016 = vmatprep.mubr.f32.mxu1 %v10554_v60  ;;  %10712 = vst [vmem:[#allocation158_spill] sm:$0xff] %v8747_v11  ;;  %v8755_v23 = vsub.f32 %v589_v16, %v8734_v55  ;;  %v8769_v24 = vsub.f32 %v590_v12, %v8747_v11 }
 0x1fa   : > { %1765 = vmatmul.mubr.f32.gmra.mrb[20].mxu0 %v8389_v28  ;;  %v8722_v28 = vsub.f32 %v587_v56, %v8698_v59  ;;  %v8736_v56 = vand.u32 4294901760, %v1042_v27  ;;  %v8752_v27 = vand.u32 4294901760, %v8731_v19  ;;  %10714 = vst [vmem:[#allocation160_spill] sm:$0xff] %v8755_v23  ;;  %10717 = vst [vmem:[#allocation163_spill] sm:$0xff] %v8769_v24 }
 0x1fb   : > { %1022 = vmatmul.mubr.f32.gmra.mrb[48].mxu1 %v8700_v9  ;;  %1770 = vmatprep.mubr.f32.mxu0 %v10554_v60 }
 0x1fc   : > { %1027 = vmatprep.mubr.f32.mxu1 %v10554_v60  ;;  %10706 = vst [vmem:[#allocation154_spill] sm:$0xff] %v8722_v28  ;;  %10709 = vst [vmem:[#allocation81_spill] sm:$0xff] %v8736_v56 }
 0x1fd   : > { %10713 = vst [vmem:[#allocation159_spill] sm:$0xff] %v8752_v27 }
 0x1fe   : > { %1773 = vmatmul.mubr.f32.gmra.mrb[22].mxu0 %v8413_v2  ;;  %v8739_v2 = vand.u32 4294901760, %v8722_v28 }
 0x1ff   : > { %1033 = vmatmul.mubr.f32.gmra.mrb[50].mxu1 %v8717_v45  ;;  %1778 = vmatprep.mubr.f32.mxu0 %v10554_v60  ;;  %v10729_v45 = vand.u32 4294901760, %v8554_v53 }
 0x200   : > { %1038 = vmatprep.mubr.f32.mxu1 %v10554_v60  ;;  %10710 = vst [vmem:[#allocation156_spill] sm:$0xff] %v8739_v2  ;;  %v1064_v62 = vsub.f32 %v8722_v28, %v8739_v2  ;;  %v8766_v2 = vand.u32 4294901760, %v8755_v23 }
 0x202   : > { %1781 = vmatmul.mubr.f32.gmra.mrb[24].mxu0 %v8430_v58  ;;  %v8761_v4 = vand.u32 4294901760, %v1064_v62  ;;  %v1075_v58 = vsub.f32 %v8731_v19, %v8752_v27  ;;  %10716 = vst [vmem:[#allocation162_spill] sm:$0xff] %v8766_v2  ;;  %v1086_v62 = vsub.f32 %v8755_v23, %v8766_v2  ;;  %v8793_v2 = vld [vmem:[#allocation5 + $0x58] sm:$0xff] }
 0x203   : > { %1044 = vmatmul.mubr.f32.gmra.mrb[52].mxu1 %v8736_v56  ;;  %1786 = vmatprep.mubr.f32.mxu0 %v10554_v60  ;;  %v10344_v27 = vand.u32 4294901760, %v8793_v2  ;;  %v8877_v56 = vld [vmem:[#allocation5 + $0x178] sm:$0xff] }
 0x204   : > { %1049 = vmatprep.mubr.f32.mxu1 %v10554_v60  ;;  %10715 = vst [vmem:[#allocation161_spill] sm:$0xff] %v8761_v4  ;;  %v8775_v16 = vand.u32 4294901760, %v1075_v58  ;;  %v8786_v12 = vand.u32 4294901760, %v1086_v62 }
 0x206   : > { %1789 = vmatmul.mubr.f32.gmra.mrb[26].mxu0 %v8426_v3  ;;  %10718 = vst [vmem:[#allocation164_spill] sm:$0xff] %v8775_v16  ;;  %v8780_v3 = vand.u32 4294901760, %v8769_v24  ;;  %10720 = vst [vmem:[#allocation166_spill] sm:$0xff] %v8786_v12 }
 0x207   : > { %1055 = vmatmul.mubr.f32.gmra.mrb[54].mxu1 %v8745_v13  ;;  %1794 = vmatprep.mubr.f32.mxu0 %v10554_v60 }
 0x208   : > { %1060 = vmatprep.mubr.f32.mxu1 %v10554_v60  ;;  %10719 = vst [vmem:[#allocation165_spill] sm:$0xff] %v8780_v3  ;;  %v1097_v58 = vsub.f32 %v8769_v24, %v8780_v3  ;;  %v8803_v3 = vld [vmem:[#allocation5 + $0x70] sm:$0xff] }
 0x209   : > { %v10352_v15 = vand.u32 4294901760, %v8803_v3 }
 0x20a   : > { %1797 = vmatmul.mubr.f32.gmra.mrb[28].mxu0 %v8456_v44  ;;  %v8791_v44 = vld [vmem:[#allocation5 + $0x40] sm:$0xff] }
 0x20b   : > { %1066 = vmatmul.mubr.f32.gmra.mrb[56].mxu1 %v8761_v4  ;;  %1802 = vmatprep.mubr.f32.mxu0 %v10554_v60  ;;  %v10345_v62 = vand.u32 4294901760, %v8791_v44 }
 0x20c   : > { %1071 = vmatprep.mubr.f32.mxu1 %v10554_v60 }
 0x20e   : > { %1805 = vmatmul.mubr.f32.gmra.mrb[30].mxu0 %v8472_v51  ;;  %v8798_v51 = vand.u32 4294901760, %v1097_v58  ;;  %v8814_v58 = vpack.c.bf16 %v10344_v27, %v10345_v62  ;;  %v3049_v62 = vand.u32 4294901760, %v611_v34 }
 0x20f   : > { %1077 = vmatmul.mubr.f32.gmra.mrb[58].mxu1 %v8775_v16  ;;  %1810 = vmatprep.mubr.f32.mxu0 %v10554_v60  ;;  %v8860_v16 = vld [vmem:[#allocation5 + $0x148] sm:$0xff] }
 0x210   : > { %1082 = vmatprep.mubr.f32.mxu1 %v10554_v60  ;;  %10721 = vst [vmem:[#allocation167_spill] sm:$0xff] %v8798_v51  ;;  %10722 = vst [vmem:[#allocation168_spill] sm:$0xff] %v8814_v58  ;;  %v8899_v9 = vsub.f32 %v611_v34, %v3049_v62 }
 0x212   : > { %1813 = vmatmul.mubr.f32.gmra.mrb[32].mxu0 %v8489_v41  ;;  %v8805_v41 = vld [vmem:[#allocation5 + $0x88] sm:$0xff]  ;;  %10730 = vst [vmem:[#allocation174_spill] sm:$0xff] %v8899_v9 }
 0x213   : > { %1088 = vmatmul.mubr.f32.gmra.mrb[60].mxu1 %v8786_v12  ;;  %1818 = vmatprep.mubr.f32.mxu0 %v10554_v60  ;;  %v8858_v12 = vld [vmem:[#allocation5 + $0x130] sm:$0xff] }
 0x214   : > { %1093 = vmatprep.mubr.f32.mxu1 %v10554_v60 }
 0x216   : > { %1821 = vmatmul.mubr.f32.gmra.mrb[34].mxu0 %v8495_v31  ;;  %v10351_v31 = vand.u32 4294901760, %v8805_v41 }
 0x217   : > { %1099 = vmatmul.mubr.f32.gmra.mrb[62].mxu1 %v8798_v51  ;;  %1826 = vmatprep.mubr.f32.mxu0 %v10554_v60  ;;  %v8847_v51 = vld [vmem:[#allocation5 + $0x118] sm:$0xff] }
 0x218   : > { %1441 = vmatprep.mubr.f32.mxu1 %v10554_v60  ;;  %v8828_v27 = vpack.c.bf16 %v10351_v31, %v10352_v15  ;;  %v3055_v15 = vand.u32 4294901760, %v8831_v35 }
 0x21a   : > { %1829 = vmatmul.mubr.f32.gmra.mrb[36].mxu0 %v8524_v54  ;;  %10723 = vst [vmem:[#allocation169_spill] sm:$0xff] %v8828_v27  ;;  %v3052_v54 = vand.u32 4294901760, %v614_v61 }
 0x21b   : > { %1443 = vmatmul.mubr.f32.vlgmr.msra.gmra.mrb[32].mxu1 %v8466_v36  ;;  %1834 = vmatprep.mubr.f32.mxu0 %v10554_v60  ;;  %v8833_v36 = vld [vmem:[#allocation5 + $0xe8] sm:$0xff] }
 0x21c   : > { %6177 = vmatpush3.bf16.msra.mxu1 %v8361_v43  ;;  %1448 = vmatprep.mubr.f32.mxu1 %v10554_v60  ;;  %v8840_v31 = vpack.c.bf16 %v3052_v54, %v3049_v62  ;;  %v8845_v43 = vld [vmem:[#allocation5 + $0x100] sm:$0xff]  ;;  %v8928_v62 = vsub.f32 %v8831_v35, %v3055_v15 }
 0x21d   : > { %6179 = vmatprep.subr.bf16.mxu1 %v8814_v58 }
 0x21e   : > { %1837 = vmatmul.mubr.f32.gmra.mrb[38].mxu0 %v8535_v18  ;;  %10724 = vst [vmem:[#allocation170_spill] sm:$0xff] %v8840_v31  ;;  %v3058_v18 = vand.u32 4294901760, %v8833_v36 }
 0x21f   : > { %1450 = vmatmul.mubr.f32.gmra.mrb[34].mxu1 %v8475_v33  ;;  %1842 = vmatprep.mubr.f32.mxu0 %v10554_v60  ;;  %v3061_v33 = vand.u32 4294901760, %v8845_v43 }
 0x220   : > { %1455 = vmatprep.mubr.f32.mxu1 %v10554_v60  ;;  %6181 = vmatpush3.bf16.msra.mxu1 %v8814_v58  ;;  %v8854_v58 = vpack.c.bf16 %v3058_v18, %v3055_v15 }
 0x221   : > { %6183 = vmatprep.subr.bf16.mxu1 %v8828_v27 }
 0x222   : > { %1845 = vmatmul.mubr.f32.gmra.mrb[40].mxu0 %v8572_v7  ;;  %10725 = vst [vmem:[#allocation171_spill] sm:$0xff] %v8854_v58  ;;  %v3064_v7 = vand.u32 4294901760, %v8847_v51 }
 0x223   : > { %1457 = vmatmul.mubr.f32.gmra.mrb[36].mxu1 %v8499_v0  ;;  %1850 = vmatprep.mubr.f32.mxu0 %v10554_v60  ;;  %v10383_v0 = vand.u32 4294901760, %v8860_v16 }
 0x224   : > { %1462 = vmatprep.mubr.f32.mxu1 %v10554_v60  ;;  %6185 = vmatpush3.bf16.msra.mxu1 %v8828_v27  ;;  %v3067_v27 = vand.u32 4294901760, %v8858_v12  ;;  %v8870_v4 = vpack.c.bf16 %v3064_v7, %v3061_v33 }
 0x225   : > { %6187 = vmatprep.subr.bf16.mxu1 %v8840_v31 }
 0x226   : > { %1853 = vmatmul.mubr.f32.gmra.mrb[42].mxu0 %v8579_v32  ;;  %10726 = vst [vmem:[#allocation172_spill] sm:$0xff] %v8870_v4  ;;  %v8887_v13 = vpack.c.bf16 %v10383_v0, %v3067_v27  ;;  %v8901_v0 = vsub.f32 %v614_v61, %v3052_v54 }
 0x227   : > { %1464 = vmatmul.mubr.f32.gmra.mrb[38].mxu1 %v8514_v39  ;;  %1858 = vmatprep.mubr.f32.mxu0 %v10554_v60  ;;  %v8875_v39 = vld [vmem:[#allocation5 + $0x160] sm:$0xff] }
 0x228   : > { %1469 = vmatprep.mubr.f32.mxu1 %v10554_v60  ;;  %6189 = vmatpush3.bf16.msra.mxu1 %v8840_v31  ;;  %10727 = vst [vmem:[#allocation173_spill] sm:$0xff] %v8887_v13  ;;  %v10385_v32 = vand.u32 4294901760, %v8875_v39  ;;  %v10728_v31 = vand.u32 4294901760, %v8541_v38  ;;  %10731 = vst [vmem:[#allocation175_spill] sm:$0xff] %v8901_v0 }
 0x229   : > { %6191 = vmatprep.subr.bf16.mxu1 %v8854_v58 }
 0x22a   : > { %1861 = vmatmul.mubr.f32.gmra.mrb[44].mxu0 %v8610_v29  ;;  %v10384_v29 = vand.u32 4294901760, %v8877_v56 }
 0x22b   : > { %1471 = vmatmul.mubr.f32.gmra.mrb[40].mxu1 %v8543_v49  ;;  %1866 = vmatprep.mubr.f32.mxu0 %v10554_v60  ;;  %v3435_v49 = vsub.f32 %v8541_v38, %v10728_v31  ;;  %v8909_v31 = vpack.c.bf16 %v8901_v0, %v8899_v9 }
 0x22c   : > { %1476 = vmatprep.mubr.f32.mxu1 %v10554_v60  ;;  %6193 = vmatpush3.bf16.msra.mxu1 %v8854_v58  ;;  %v3442_v58 = vsub.f32 %v8554_v53, %v10729_v45  ;;  %v8916_v61 = vpack.c.bf16 %v10384_v29, %v10385_v32  ;;  %v10740_v32 = vld [vmem:[#allocation12_spill] sm:$0xff] }
 0x22d   : > { %6195 = vmatprep.subr.bf16.mxu1 %v8870_v4  ;;  %v3436_v54 = vand.u32 4294901760, %v3435_v49  ;;  %v8931_v49 = vsub.f32 %v8833_v36, %v3058_v18  ;;  %v8948_v36 = vsub.f32 %v8845_v43, %v3061_v33  ;;  %v8951_v18 = vsub.f32 %v8847_v51, %v3064_v7 }
 0x22e   : > { %1869 = vmatmul.mubr.f32.gmra.mrb[46].mxu0 %v8621_v42  ;;  %10732 = vst [vmem:[#allocation176_spill] sm:$0xff] %v8916_v61  ;;  %v3443_v34 = vand.u32 4294901760, %v3442_v58  ;;  %v8968_v43 = vsub.f32 %v8858_v12, %v3067_v27  ;;  %v10733_v51 = vand.u32 4294901760, %v8860_v16  ;;  %v10734_v7 = vand.u32 4294901760, %v8791_v44  ;;  %v10756_v42 = vld [vmem:[#allocation25_spill] sm:$0xff] }
 0x22f   : > { %1478 = vmatmul.mubr.f32.gmra.mrb[42].mxu1 %v8557_v8  ;;  %1874 = vmatprep.mubr.f32.mxu0 %v10554_v60  ;;  %v8939_v58 = vpack.c.bf16 %v8931_v49, %v8928_v62  ;;  %v8958_v35 = vpack.c.bf16 %v8951_v18, %v8948_v36  ;;  %v10735_v12 = vand.u32 4294901760, %v8793_v2 }
 0x230   : > { %1483 = vmatprep.mubr.f32.mxu1 %v10554_v60  ;;  %6197 = vmatpush3.bf16.msra.mxu1 %v8870_v4  ;;  %v8924_v45 = vpack.c.bf16 %v3443_v34, %v3436_v54  ;;  %v8973_v33 = vsub.f32 %v8860_v16, %v10733_v51  ;;  %v8981_v15 = vsub.f32 %v8791_v44, %v10734_v7  ;;  %v10736_v34 = vand.u32 4294901760, %v8803_v3  ;;  %v10767_v4 = vld [vmem:[#allocation28_spill] sm:$0xff] }
 0x231   : > { %6199 = vmatprep.subr.bf16.mxu1 %v8887_v13  ;;  %v8990_v16 = vsub.f32 %v8793_v2, %v10735_v12  ;;  %v10737_v2 = vand.u32 4294901760, %v8805_v41  ;;  %v10738_v12 = vld [vmem:[#allocation11_spill] sm:$0xff]  ;;  %v10741_v54 = vand.u32 4294901760, %v10740_v32 }
 0x232   : > { %1877 = vmatmul.mubr.f32.gmra.mrb[48].mxu0 %v8648_v14  ;;  %v8985_v27 = vpack.c.bf16 %v8973_v33, %v8968_v43  ;;  %v9001_v51 = vsub.f32 %v8803_v3, %v10736_v34  ;;  %v10739_v29 = vand.u32 4294901760, %v10738_v12  ;;  %v10742_v3 = vand.u32 4294901760, %v8981_v15  ;;  %v10754_v32 = vld [vmem:[#allocation23_spill] sm:$0xff] }
 0x233   : > { %1485 = vmatmul.mubr.f32.gmra.mrb[44].mxu1 %v8584_v5  ;;  %1882 = vmatprep.mubr.f32.mxu0 %v10554_v60  ;;  %v9006_v7 = vsub.f32 %v8805_v41, %v10737_v2  ;;  %v10743_v41 = vand.u32 4294901760, %v8990_v16  ;;  %v10755_v14 = vand.u32 4294901760, %v10754_v32  ;;  %v10761_v32 = vld [vmem:[#allocation85_spill] sm:$0xff] }
 0x234   : > { %1490 = vmatprep.mubr.f32.mxu1 %v10554_v60  ;;  %6201 = vmatpush3.bf16.msra.mxu1 %v8887_v13  ;;  %v6112_v44 = vpack.c.bf16 %v10741_v54, %v10739_v29  ;;  %v3449_v34 = vsub.f32 %v8981_v15, %v10742_v3 }
 0x235   : > { %6203 = vmatprep.subr.bf16.mxu1 %v8916_v61  ;;  %v3456_v2 = vsub.f32 %v8990_v16, %v10743_v41 }
 0x236   : > { %1885 = vmatmul.mubr.f32.gmra.mrb[50].mxu0 %v8671_v40  ;;  %v10748_v40 = vld [vmem:[#allocation83_spill] sm:$0xff] }
 0x237   : > { %1492 = vmatmul.mubr.f32.gmra.mrb[46].mxu1 %v8600_v30  ;;  %1890 = vmatprep.mubr.f32.mxu0 %v10554_v60  ;;  %v3457_v41 = vand.u32 4294901760, %v3456_v2 }
 0x238   : > { %1497 = vmatprep.mubr.f32.mxu1 %v10554_v60  ;;  %6205 = vmatpush3.bf16.msra.mxu1 %v8916_v61  ;;  %v10758_v61 = vld [vmem:[#allocation86_spill] sm:$0xff] }
 0x239   : > { %6207 = vmatprep.subr.bf16.mxu1 %v8924_v45 }
 0x23a   : > { %1893 = vmatmul.mubr.f32.gmra.mrb[52].mxu0 %v8688_v21  ;;  %v10397_v21 = vand.u32 4294901760, %v9001_v51 }
 0x23b   : > { %1499 = vmatmul.mubr.f32.gmra.mrb[48].mxu1 %v8624_v20  ;;  %1898 = vmatprep.mubr.f32.mxu0 %v10554_v60 }
 0x23c   : > { %1504 = vmatprep.mubr.f32.mxu1 %v10554_v60  ;;  %v3463_v12 = vsub.f32 %v9001_v51, %v10397_v21 }
 0x23e   : > { %1901 = vmatmul.mubr.f32.gmra.mrb[54].mxu0 %v8696_v17 }
 0x23f   : > { %1506 = vmatmul.mubr.f32.gmra.mrb[50].mxu1 %v8637_v37  ;;  %1906 = vmatprep.mubr.f32.mxu0 %v10554_v60 }
 0x240   : > { %1511 = vmatprep.mubr.f32.mxu1 %v10554_v60 }
 0x242   : > { %1909 = vmatmul.mubr.f32.gmra.mrb[56].mxu0 %v8722_v28 }
 0x243   : > { %1513 = vmatmul.mubr.f32.gmra.mrb[52].mxu1 %v8663_v46  ;;  %1914 = vmatprep.mubr.f32.mxu0 %v10554_v60 }
 0x244   : > { %1518 = vmatprep.mubr.f32.mxu1 %v10554_v60 }
 0x246   : > { %1917 = vmatmul.mubr.f32.gmra.mrb[58].mxu0 %v8731_v19  ;;  %v10746_v19 = vld [vmem:[#allocation14_spill] sm:$0xff] }
 0x247   : > { %1520 = vmatmul.mubr.f32.gmra.mrb[54].mxu1 %v8676_v52  ;;  %1922 = vmatprep.mubr.f32.mxu0 %v10554_v60  ;;  %v10747_v28 = vand.u32 4294901760, %v10746_v19  ;;  %v10749_v19 = vld [vmem:[#allocation15_spill] sm:$0xff] }
 0x248   : > { %1525 = vmatprep.mubr.f32.mxu1 %v10554_v60 }
 0x24a   : > { %1925 = vmatmul.mubr.f32.gmra.mrb[60].mxu0 %v8755_v23 }
 0x24b   : > { %1527 = vmatmul.mubr.f32.gmra.mrb[56].mxu1 %v8698_v59  ;;  %1930 = vmatprep.mubr.f32.mxu0 %v10554_v60 }
 0x24c   : > { %1532 = vmatprep.mubr.f32.mxu1 %v10554_v60 }
 0x24e   : > { %1933 = vmatmul.mubr.f32.gmra.mrb[62].mxu0 %v8769_v24  ;;  %v10744_v24 = vld [vmem:[#allocation13_spill] sm:$0xff] }
 0x24f   : > { %1534 = vmatmul.mubr.f32.gmra.mrb[58].mxu1 %v8710_v48  ;;  %2035 = vmatprep.mubr.f32.mxu0 %v10554_v60  ;;  %v10745_v23 = vand.u32 4294901760, %v10744_v24  ;;  %v3450_v24 = vand.u32 4294901760, %v3449_v34 }
 0x250   : > { %1539 = vmatprep.mubr.f32.mxu1 %v10554_v60 }
 0x251   : > { %v6114_v17 = vpack.c.bf16 %v10747_v28, %v10745_v23  ;;  %v10750_v28 = vand.u32 4294901760, %v10749_v19  ;;  %v10751_v23 = vld [vmem:[#allocation16_spill] sm:$0xff]  ;;  %v10760_v19 = vand.u32 4294901760, %v8901_v0 }
 0x252   : > { %2039 = vmatmul.mubr.f32.vlgmr.msra.gmra.mrb[0].mxu0 %v10748_v40  ;;  %v10752_v54 = vand.u32 4294901760, %v10751_v23  ;;  %v10753_v40 = vand.u32 4294901760, %v9006_v7  ;;  %v3464_v23 = vand.u32 4294901760, %v3463_v12 }
 0x253   : > { %1541 = vmatmul.mubr.f32.gmra.mrb[60].mxu1 %v8734_v55  ;;  %2044 = vmatprep.mubr.f32.mxu0 %v10554_v60 }
 0x254   : > { %1546 = vmatprep.mubr.f32.mxu1 %v10554_v60  ;;  %6113 = vmatpush1.bf16.msra.mxu0 %v6112_v44  ;;  %v6116_v3 = vpack.c.bf16 %v10752_v54, %v10750_v28  ;;  %v3470_v29 = vsub.f32 %v9006_v7, %v10753_v40  ;;  %v10757_v44 = vand.u32 4294901760, %v10756_v42  ;;  %v3484_v28 = vsub.f32 %v8901_v0, %v10760_v19  ;;  %v10769_v0 = vld [vmem:[#allocation29_spill] sm:$0xff] }
 0x255   : > { %6115 = vmatprep.subr.bf16.mxu0 %v6114_v17  ;;  %v10759_v17 = vand.u32 4294901760, %v8899_v9  ;;  %v10412_v42 = vand.u32 4294901760, %v8931_v49  ;;  %v10768_v19 = vand.u32 4294901760, %v10767_v4  ;;  %v10770_v40 = vand.u32 4294901760, %v10769_v0 }
 0x256   : > { %v6118_v34 = vpack.c.bf16 %v10757_v44, %v10755_v14  ;;  %2048 = vmatmul.mubr.f32.gmra.mrb[2].mxu0 %v10758_v61  ;;  %v6210_v14 = vpack.c.bf16 %v3457_v41, %v3450_v24  ;;  %v3471_v54 = vand.u32 4294901760, %v3470_v29  ;;  %v10762_v44 = vld [vmem:[#allocation26_spill] sm:$0xff]  ;;  %v10764_v61 = vld [vmem:[#allocation27_spill] sm:$0xff]  ;;  %v3485_v12 = vand.u32 4294901760, %v3484_v28 }
 0x257   : > { %1548 = vmatmul.mubr.f32.gmra.mrb[62].mxu1 %v8747_v11  ;;  %2053 = vmatprep.mubr.f32.mxu0 %v10554_v60  ;;  %v3477_v2 = vsub.f32 %v8899_v9, %v10759_v17  ;;  %v10763_v21 = vand.u32 4294901760, %v10762_v44  ;;  %v10765_v13 = vand.u32 4294901760, %v10764_v61  ;;  %v10766_v9 = vld [vmem:[#allocation88_spill] sm:$0xff]  ;;  %v6122_v11 = vpack.c.bf16 %v10770_v40, %v10768_v19  ;;  %v10773_v61 = vld [vmem:[#allocation37_spill] sm:$0xff] }
 0x258   : > { %5534 = vmatprep.mubr.f32.mxu1 %v10761_v32  ;;  %6117 = vmatpush1.bf16.msra.mxu0 %v6116_v3  ;;  %v10771_v32 = vld [vmem:[#allocation87_spill] sm:$0xff]  ;;  %v10772_v29 = vand.u32 4294901760, %v8928_v62  ;;  %v10411_v0 = vand.u32 4294901760, %v8948_v36  ;;  %v6214_v4 = vpack.c.bf16 %v3471_v54, %v3464_v23  ;;  %v10774_v41 = vand.u32 4294901760, %v10773_v61  ;;  %v10779_v40 = vld [vmem:[#allocation40_spill] sm:$0xff] }
 0x259   : > { %6119 = vmatprep.subr.bf16.mxu0 %v6118_v34  ;;  %v6120_v17 = vpack.c.bf16 %v10765_v13, %v10763_v21  ;;  %v3478_v24 = vand.u32 4294901760, %v3477_v2  ;;  %v3498_v21 = vsub.f32 %v8931_v49, %v10412_v42  ;;  %v10410_v13 = vand.u32 4294901760, %v8951_v18  ;;  %v10775_v34 = vld [vmem:[#allocation38_spill] sm:$0xff]  ;;  %v10785_v61 = vld [vmem:[#allocation43_spill] sm:$0xff] }
 0x25a   : > { %2057 = vmatmul.mubr.f32.gmra.mrb[4].mxu0 %v10766_v9  ;;  %v3491_v3 = vsub.f32 %v8928_v62, %v10772_v29  ;;  %v10776_v2 = vand.u32 4294901760, %v10775_v34  ;;  %v10780_v44 = vand.u32 4294901760, %v10779_v40  ;;  %v10406_v29 = vand.u32 4294901760, %v8968_v43 }
 0x25b   : > { %5535 = vmatmul.mubr.f32.vlgmr.msra.gmra.mrb[64].mxu1 %v10771_v32  ;;  %2062 = vmatprep.mubr.f32.mxu0 %v10554_v60  ;;  %v6218_v32 = vpack.c.bf16 %v3485_v12, %v3478_v24  ;;  %v3499_v54 = vand.u32 4294901760, %v3498_v21  ;;  %v10781_v24 = vand.u32 4294901760, %v8875_v39 }
 0x25c   : > { %6209 = vmatpush3.bf16.msra.mxu1 %v8924_v45  ;;  %5537 = vmatprep.mubr.f32.mxu1 %v8235_v25  ;;  %v6124_v28 = vpack.c.bf16 %v10776_v2, %v10774_v41  ;;  %v10777_v25 = vld [vmem:[#allocation39_spill] sm:$0xff]  ;;  %v3492_v23 = vand.u32 4294901760, %v3491_v3  ;;  %v10783_v3 = vld [vmem:[#allocation42_spill] sm:$0xff]  ;;  %v10786_v41 = vand.u32 4294901760, %v10785_v61  ;;  %v10787_v2 = vld [vmem:[#allocation89_spill] sm:$0xff] }
 0x25d   : > { %6211 = vmatprep.subr.bf16.mxu1 %v6210_v14  ;;  %6121 = vmatpush1.bf16.msra.mxu0 %v6120_v17  ;;  %v10778_v45 = vand.u32 4294901760, %v10777_v25  ;;  %v3505_v17 = vsub.f32 %v8948_v36, %v10411_v0  ;;  %v10784_v21 = vand.u32 4294901760, %v10783_v3  ;;  %v10788_v25 = vld [vmem:[#allocation48_spill] sm:$0xff]  ;;  %v10853_v0 = vld [vmem:[#allocation153_spill] sm:$0xff] }
 0x25e   : > { %2066 = vmatmul.mubr.f32.gmra.mrb[6].mxu0 %v8238_v26  ;;  %6123 = vmatprep.subr.bf16.mxu0 %v6122_v11  ;;  %v3512_v11 = vsub.f32 %v8951_v18, %v10410_v13  ;;  %v10851_v13 = vld [vmem:[#allocation115_spill] sm:$0xff] }
 0x25f   : > { %v6126_v19 = vpack.c.bf16 %v10780_v44, %v10778_v45  ;;  %5538 = vmatmul.mubr.f32.gmra.mrb[66].mxu1 %v8258_v63  ;;  %2071 = vmatprep.mubr.f32.mxu0 %v10554_v60  ;;  %v10407_v63 = vand.u32 4294901760, %v8973_v33  ;;  %v6128_v34 = vpack.c.bf16 %v10786_v41, %v10784_v21  ;;  %v10790_v45 = vld [vmem:[#allocation52_spill] sm:$0xff]  ;;  %v3519_v21 = vsub.f32 %v8968_v43, %v10406_v29  ;;  %v10803_v29 = vld [vmem:[#allocation66_spill] sm:$0xff] }
 0x260   : > { %5540 = vmatprep.mubr.f32.mxu1 %v8275_v22  ;;  %6213 = vmatpush3.bf16.msra.mxu1 %v6210_v14  ;;  %v9104_v22 = vsub.f32 %v8875_v39, %v10781_v24  ;;  %v10782_v14 = vand.u32 4294901760, %v8877_v56  ;;  %v10791_v40 = vand.u32 4294901760, %v10790_v45  ;;  %v10792_v39 = vld [vmem:[#allocation45_spill] sm:$0xff]  ;;  %v10793_v24 = vld [vmem:[#allocation92_spill] sm:$0xff]  ;;  %v3513_v3 = vand.u32 4294901760, %v3512_v11  ;;  %v10799_v11 = vld [vmem:[#allocation62_spill] sm:$0xff] }
 0x261   : > { %6215 = vmatprep.subr.bf16.mxu1 %v6214_v4  ;;  %6125 = vmatpush1.bf16.msra.mxu0 %v6124_v28  ;;  %v10789_v28 = vand.u32 4294901760, %v10788_v25  ;;  %v10794_v25 = vld [vmem:[#allocation54_spill] sm:$0xff]  ;;  %v10800_v45 = vand.u32 4294901760, %v10799_v11 }
 0x262   : > { %v9109_v12 = vsub.f32 %v8877_v56, %v10782_v14  ;;  %2075 = vmatmul.mubr.f32.gmra.mrb[8].mxu0 %v10787_v2  ;;  %6127 = vmatprep.subr.bf16.mxu0 %v6126_v19  ;;  %v6222_v56 = vpack.c.bf16 %v3499_v54, %v3492_v23  ;;  %v3506_v14 = vand.u32 4294901760, %v3505_v17  ;;  %v3526_v19 = vsub.f32 %v8973_v33, %v10407_v63  ;;  %v10798_v17 = vld [vmem:[#allocation32_spill] sm:$0xff]  ;;  %v10804_v63 = vld [vmem:[#allocation98_spill] sm:$0xff] }
 0x263   : > { %v6130_v44 = vpack.c.bf16 %v10791_v40, %v10789_v28  ;;  %5541 = vmatmul.mubr.f32.gmra.mrb[68].mxu1 %v10792_v39  ;;  %2080 = vmatprep.mubr.f32.mxu0 %v10554_v60  ;;  %v10408_v61 = vand.u32 4294901760, %v9104_v22  ;;  %v10795_v28 = vand.u32 4294901760, %v10794_v25  ;;  %v10801_v40 = vld [vmem:[#allocation64_spill] sm:$0xff]  ;;  %v3520_v25 = vand.u32 4294901760, %v3519_v21  ;;  %v10807_v11 = vld [vmem:[#allocation70_spill] sm:$0xff] }
 0x264   : > { %5543 = vmatprep.mubr.f32.mxu1 %v10793_v24  ;;  %6217 = vmatpush3.bf16.msra.mxu1 %v6214_v4  ;;  %v10409_v41 = vand.u32 4294901760, %v9109_v12  ;;  %v10796_v4 = vld [vmem:[#allocation57_spill] sm:$0xff]  ;;  %v10802_v39 = vand.u32 4294901760, %v10801_v40 }
 0x265   : > { %6219 = vmatprep.subr.bf16.mxu1 %v6218_v32  ;;  %6129 = vmatpush1.bf16.msra.mxu0 %v6128_v34  ;;  %v10797_v23 = vand.u32 4294901760, %v10796_v4  ;;  %v6226_v34 = vpack.c.bf16 %v3513_v3, %v3506_v14  ;;  %v3527_v4 = vand.u32 4294901760, %v3526_v19  ;;  %v10812_v3 = vld [vmem:[#allocation74_spill] sm:$0xff] }
 0x266   : > { %2084 = vmatmul.mubr.f32.gmra.mrb[10].mxu0 %v10798_v17  ;;  %6131 = vmatprep.subr.bf16.mxu0 %v6130_v44  ;;  %v6134_v24 = vpack.c.bf16 %v10802_v39, %v10800_v45  ;;  %v3533_v44 = vsub.f32 %v9104_v22, %v10408_v61  ;;  %v10808_v45 = vand.u32 4294901760, %v10807_v11  ;;  %v10813_v21 = vand.u32 4294901760, %v10812_v3  ;;  %v10814_v39 = vld [vmem:[#allocation102_spill] sm:$0xff]  ;;  %v10815_v61 = vld [vmem:[#allocation105_spill] sm:$0xff]  ;;  %v10820_v3 = vld [vmem:[#allocation76_spill] sm:$0xff] }
 0x267   : > { %v6132_v54 = vpack.c.bf16 %v10797_v23, %v10795_v28  ;;  %5544 = vmatmul.mubr.f32.gmra.mrb[70].mxu1 %v10803_v29  ;;  %2089 = vmatprep.mubr.f32.mxu0 %v10554_v60  ;;  %v3540_v28 = vsub.f32 %v9109_v12, %v10409_v41  ;;  %v10805_v23 = vld [vmem:[#allocation68_spill] sm:$0xff] }
 0x268   : > { %5546 = vmatprep.mubr.f32.mxu1 %v10804_v63  ;;  %6221 = vmatpush3.bf16.msra.mxu1 %v6218_v32  ;;  %v10806_v29 = vand.u32 4294901760, %v10805_v23  ;;  %v10809_v63 = vld [vmem:[#allocation63_spill] sm:$0xff]  ;;  %v10810_v32 = vld [vmem:[#allocation73_spill] sm:$0xff]  ;;  %v3534_v11 = vand.u32 4294901760, %v3533_v44  ;;  %v10823_v41 = vld [vmem:[#allocation112_spill] sm:$0xff] }
 0x269   : > { %6223 = vmatprep.subr.bf16.mxu1 %v6222_v56  ;;  %6133 = vmatpush1.bf16.msra.mxu0 %v6132_v54  ;;  %v10811_v14 = vand.u32 4294901760, %v10810_v32  ;;  %v10827_v44 = vld [vmem:[#allocation95_spill] sm:$0xff] }
 0x26a   : > { %v6136_v40 = vpack.c.bf16 %v10808_v45, %v10806_v29  ;;  %2093 = vmatmul.mubr.f32.gmra.mrb[12].mxu0 %v10809_v63  ;;  %6135 = vmatprep.subr.bf16.mxu0 %v6134_v24  ;;  %v9161_v54 = vpop.f32.mrb[0].mxu1  ;;  %v6230_v29 = vpack.c.bf16 %v3527_v4, %v3520_v25  ;;  %v3541_v24 = vand.u32 4294901760, %v3540_v28  ;;  %v10818_v45 = vld [vmem:[#allocation75_spill] sm:$0xff]  ;;  %v10828_v28 = vld [vmem:[#allocation17_spill] sm:$0xff] }
 0x26b   : > { %v6138_v19 = vpack.c.bf16 %v10813_v21, %v10811_v14  ;;  %5547 = vmatmul.mubr.f32.gmra.mrb[72].mxu1 %v10814_v39  ;;  %2098 = vmatprep.mubr.f32.mxu0 %v10554_v60  ;;  %10816 = vst [vmem:[#allocation11_spill] sm:$0xff] %v9161_v54  ;;  %v9163_v23 = vpop.f32.mrb[1].mxu1  ;;  %v10819_v32 = vand.u32 4294901760, %v10818_v45  ;;  %v10821_v14 = vand.u32 4294901760, %v10820_v3  ;;  %v10822_v39 = vld [vmem:[#allocation91_spill] sm:$0xff]  ;;  %v10895_v54 = vld [vmem:[#allocation141_spill] sm:$0xff] }
 0x26c   : > { %5549 = vmatprep.mubr.f32.mxu1 %v10815_v61  ;;  %6225 = vmatpush3.bf16.msra.mxu1 %v6222_v56  ;;  %10817 = vst [vmem:[#allocation12_spill] sm:$0xff] %v9163_v23  ;;  %v10824_v56 = vld [vmem:[#allocation61_spill] sm:$0xff]  ;;  %v6234_v4 = vpack.c.bf16 %v3541_v24, %v3534_v11  ;;  %v10833_v11 = vld [vmem:[#allocation50_spill] sm:$0xff] }
 0x26d   : > { %6227 = vmatprep.subr.bf16.mxu1 %v6226_v34  ;;  %6137 = vmatpush1.bf16.msra.mxu0 %v6136_v40  ;;  %v6140_v21 = vpack.c.bf16 %v10821_v14, %v10819_v32  ;;  %v10829_v40 = vld [vmem:[#allocation118_spill] sm:$0xff]  ;;  %v10834_v24 = vld [vmem:[#allocation129_spill] sm:$0xff]  ;;  %v10838_v14 = vld [vmem:[#allocation131_spill] sm:$0xff] }
 0x26e   : > { %2102 = vmatmul.mubr.f32.gmra.mrb[14].mxu0 %v10822_v39  ;;  %6139 = vmatprep.subr.bf16.mxu0 %v6138_v19  ;;  %v9173_v61 = vpop.f32.mrb[2].mxu1 }
 0x26f   : > { %5550 = vmatmul.mubr.f32.gmra.mrb[74].mxu1 %v10823_v41  ;;  %2107 = vmatprep.mubr.f32.mxu0 %v10554_v60  ;;  %10825 = vst [vmem:[#allocation13_spill] sm:$0xff] %v9173_v61  ;;  %v9175_v25 = vpop.f32.mrb[3].mxu1  ;;  %v10830_v41 = vld [vmem:[#allocation122_spill] sm:$0xff] }
 0x270   : > { %5552 = vmatprep.mubr.f32.mxu1 %v10824_v56  ;;  %6229 = vmatpush3.bf16.msra.mxu1 %v6226_v34  ;;  %10826 = vst [vmem:[#allocation14_spill] sm:$0xff] %v9175_v25  ;;  %v6238_v34 = vpack.c.bf16 %v8554_v53, %v8541_v38  ;;  %v10886_v25 = vld [vmem:[#allocation137_spill] sm:$0xff] }
 0x271   : > { %6231 = vmatprep.subr.bf16.mxu1 %v6230_v29  ;;  %6141 = vmatpush1.bf16.msra.mxu0 %v6140_v21  ;;  %v10839_v21 = vld [vmem:[#allocation135_spill] sm:$0xff] }
 0x272   : > { %2111 = vmatmul.mubr.f32.gmra.mrb[16].mxu0 %v10827_v44  ;;  %6143 = vmatprep.subr.bf16.mxu0 %v10828_v28  ;;  %v10842_v28 = vld [vmem:[#allocation106_spill] sm:$0xff] }
 0x273   : > { %5553 = vmatmul.mubr.f32.gmra.mrb[76].mxu1 %v10829_v40  ;;  %2116 = vmatprep.mubr.f32.mxu0 %v10554_v60  ;;  %v9182_v19 = vpop.f32.mrb[4].mxu1 }
 0x274   : > { %5555 = vmatprep.mubr.f32.mxu1 %v10830_v41  ;;  %10831 = vst [vmem:[#allocation15_spill] sm:$0xff] %v9182_v19  ;;  %6233 = vmatpush3.bf16.msra.mxu1 %v6230_v29  ;;  %v9184_v45 = vpop.f32.mrb[5].mxu1  ;;  %v10837_v29 = vld [vmem:[#allocation65_spill] sm:$0xff]  ;;  %v10845_v41 = vld [vmem:[#allocation108_spill] sm:$0xff]  ;;  %v10883_v19 = vld [vmem:[#allocation30_spill] sm:$0xff] }
 0x275   : > { %10832 = vst [vmem:[#allocation16_spill] sm:$0xff] %v9184_v45  ;;  %6235 = vmatprep.subr.bf16.mxu1 %v6234_v4 }
 0x276   : > { %2120 = vmatmul.mubr.f32.gmra.mrb[18].mxu0 %v10833_v11 }
 0x277   : > { %5556 = vmatmul.mubr.f32.gmra.mrb[78].mxu1 %v8519_v50  ;;  %2125 = vmatprep.mubr.f32.mxu0 %v10554_v60  ;;  %v9192_v32 = vpop.f32.mrb[6].mxu1 }
 0x278   : > { %5558 = vmatprep.mubr.f32.mxu1 %v10834_v24  ;;  %10835 = vst [vmem:[#allocation23_spill] sm:$0xff] %v9192_v32  ;;  %6237 = vmatpush3.bf16.msra.mxu1 %v6234_v4  ;;  %v9194_v3 = vpop.f32.mrb[7].mxu1  ;;  %v10881_v32 = vld [vmem:[#allocation136_spill] sm:$0xff] }
 0x279   : > { %10836 = vst [vmem:[#allocation25_spill] sm:$0xff] %v9194_v3  ;;  %6239 = vmatprep.subr.bf16.mxu1 %v6238_v34  ;;  %v10878_v3 = vld [vmem:[#allocation19_spill] sm:$0xff] }
 0x27a   : > { %2129 = vmatmul.mubr.f32.gmra.mrb[20].mxu0 %v10837_v29 }
 0x27b   : > { %5559 = vmatmul.mubr.f32.gmra.mrb[80].mxu1 %v10838_v14  ;;  %2134 = vmatprep.mubr.f32.mxu0 %v10554_v60  ;;  %v9200_v56 = vpop.f32.mrb[8].mxu1  ;;  %v10847_v14 = vld [vmem:[#allocation110_spill] sm:$0xff] }
 0x27c   : > { %5561 = vmatprep.mubr.f32.mxu1 %v10839_v21  ;;  %10840 = vst [vmem:[#allocation85_spill] sm:$0xff] %v9200_v56  ;;  %v9202_v50 = vpop.f32.mrb[9].mxu1  ;;  %v10876_v56 = vld [vmem:[#allocation132_spill] sm:$0xff] }
 0x27d   : > { %10841 = vst [vmem:[#allocation26_spill] sm:$0xff] %v9202_v50 }
 0x27e   : > { %2138 = vmatmul.mubr.f32.gmra.mrb[22].mxu0 %v10842_v28 }
 0x27f   : > { %5562 = vmatmul.mubr.f32.gmra.mrb[82].mxu1 %v8605_v1  ;;  %2143 = vmatprep.mubr.f32.mxu0 %v10554_v60 }
 0x280   : > { %5564 = vmatprep.mubr.f32.mxu1 %v8626_v10  ;;  %v9208_v4 = vpop.f32.mrb[10].mxu1  ;;  %v10849_v10 = vld [vmem:[#allocation149_spill] sm:$0xff] }
 0x281   : > { %10843 = vst [vmem:[#allocation27_spill] sm:$0xff] %v9208_v4  ;;  %v9210_v40 = vpop.f32.mrb[11].mxu1  ;;  %v10868_v4 = vld [vmem:[#allocation167_spill] sm:$0xff] }
 0x282   : > { %10844 = vst [vmem:[#allocation88_spill] sm:$0xff] %v9210_v40  ;;  %2147 = vmatmul.mubr.f32.gmra.mrb[24].mxu0 %v10845_v41  ;;  %v10863_v40 = vld [vmem:[#allocation164_spill] sm:$0xff] }
 0x283   : > { %5565 = vmatmul.mubr.f32.gmra.mrb[84].mxu1 %v8635_v6  ;;  %2152 = vmatprep.mubr.f32.mxu0 %v10554_v60 }
 0x284   : > { %5567 = vmatprep.mubr.f32.mxu1 %v8665_v47  ;;  %v9216_v24 = vpop.f32.mrb[12].mxu1  ;;  %v10854_v47 = vld [vmem:[#allocation81_spill] sm:$0xff] }
 0x285   : > { %10846 = vst [vmem:[#allocation28_spill] sm:$0xff] %v9216_v24  ;;  %v9219_v1 = vpop.f32.mrb[13].mxu1  ;;  %v10858_v24 = vld [vmem:[#allocation157_spill] sm:$0xff] }
 0x286   : > { %2156 = vmatmul.mubr.f32.gmra.mrb[26].mxu0 %v10847_v14  ;;  %10848 = vst [vmem:[#allocation29_spill] sm:$0xff] %v9219_v1  ;;  %v10856_v1 = vld [vmem:[#allocation119_spill] sm:$0xff] }
 0x287   : > { %5568 = vmatmul.mubr.f32.gmra.mrb[86].mxu1 %v8679_v57  ;;  %2161 = vmatprep.mubr.f32.mxu0 %v10554_v60 }
 0x288   : > { %5570 = vmatprep.mubr.f32.mxu1 %v10849_v10  ;;  %v9224_v21 = vpop.f32.mrb[14].mxu1  ;;  %v10859_v10 = vld [vmem:[#allocation161_spill] sm:$0xff] }
 0x289   : > { %10850 = vst [vmem:[#allocation87_spill] sm:$0xff] %v9224_v21  ;;  %v9227_v6 = vpop.f32.mrb[15].mxu1 }
 0x28a   : > { %2165 = vmatmul.mubr.f32.gmra.mrb[28].mxu0 %v10851_v13  ;;  %10852 = vst [vmem:[#allocation37_spill] sm:$0xff] %v9227_v6  ;;  %v10861_v6 = vld [vmem:[#allocation123_spill] sm:$0xff] }
 0x28b   : > { %5571 = vmatmul.mubr.f32.gmra.mrb[88].mxu1 %v10853_v0  ;;  %2170 = vmatprep.mubr.f32.mxu0 %v10554_v60 }
 0x28c   : > { %5573 = vmatprep.mubr.f32.mxu1 %v10854_v47  ;;  %v10864_v47 = vld [vmem:[#allocation166_spill] sm:$0xff] }
 0x28d   : > { %v9232_v42 = vpop.f32.mrb[16].mxu1 }
 0x28e   : > { %10855 = vst [vmem:[#allocation38_spill] sm:$0xff] %v9232_v42  ;;  %2174 = vmatmul.mubr.f32.gmra.mrb[30].mxu0 %v10856_v1  ;;  %v9235_v57 = vpop.f32.mrb[17].mxu1  ;;  %v10911_v1 = vld [vmem:[#allocation156_spill] sm:$0xff] }
 0x28f   : > { %10857 = vst [vmem:[#allocation39_spill] sm:$0xff] %v9235_v57  ;;  %5574 = vmatmul.mubr.f32.gmra.mrb[90].mxu1 %v10858_v24  ;;  %2179 = vmatprep.mubr.f32.mxu0 %v10554_v60  ;;  %v10866_v57 = vld [vmem:[#allocation124_spill] sm:$0xff] }
 0x290   : > { %5576 = vmatprep.mubr.f32.mxu1 %v10859_v10  ;;  %v10869_v10 = vld [vmem:[#allocation33_spill] sm:$0xff] }
 0x291   : > { %v9240_v21 = vpop.f32.mrb[18].mxu1 }
 0x292   : > { %10860 = vst [vmem:[#allocation40_spill] sm:$0xff] %v9240_v21  ;;  %2183 = vmatmul.mubr.f32.gmra.mrb[32].mxu0 %v10861_v6  ;;  %v9243_v0 = vpop.f32.mrb[19].mxu1  ;;  %v10871_v21 = vld [vmem:[#allocation130_spill] sm:$0xff]  ;;  %v10910_v6 = vld [vmem:[#allocation128_spill] sm:$0xff] }
 0x293   : > { %10862 = vst [vmem:[#allocation42_spill] sm:$0xff] %v9243_v0  ;;  %5577 = vmatmul.mubr.f32.gmra.mrb[92].mxu1 %v10863_v40  ;;  %2188 = vmatprep.mubr.f32.mxu0 %v10554_v60  ;;  %v6242_v0 = vpack.c.bf16 %v8990_v16, %v8981_v15 }
 0x294   : > { %5579 = vmatprep.mubr.f32.mxu1 %v10864_v47 }
 0x295   : > { %v9248_v42 = vpop.f32.mrb[20].mxu1 }
 0x296   : > { %10865 = vst [vmem:[#allocation43_spill] sm:$0xff] %v9248_v42  ;;  %2192 = vmatmul.mubr.f32.gmra.mrb[34].mxu0 %v10866_v57  ;;  %v9251_v24 = vpop.f32.mrb[21].mxu1  ;;  %v10873_v42 = vld [vmem:[#allocation82_spill] sm:$0xff]  ;;  %v10907_v57 = vld [vmem:[#allocation69_spill] sm:$0xff] }
 0x297   : > { %10867 = vst [vmem:[#allocation89_spill] sm:$0xff] %v9251_v24  ;;  %5580 = vmatmul.mubr.f32.gmra.mrb[94].mxu1 %v10868_v4  ;;  %2197 = vmatprep.mubr.f32.mxu0 %v10554_v60  ;;  %v10874_v24 = vld [vmem:[#allocation84_spill] sm:$0xff]  ;;  %v6246_v4 = vpack.c.bf16 %v9006_v7, %v9001_v51 }
 0x298   : > { %5614 = vmatprep.mubr.f32.mxu1 %v10869_v10 }
 0x29a   : > { %v9258_v40 = vpop.f32.mrb[22].mxu1  ;;  %2201 = vmatmul.mubr.f32.gmra.mrb[36].mxu0 %v10871_v21  ;;  %v10906_v21 = vld [vmem:[#allocation117_spill] sm:$0xff] }
 0x29b   : > { %10870 = vst [vmem:[#allocation48_spill] sm:$0xff] %v9258_v40  ;;  %v9261_v47 = vpop.f32.mrb[23].mxu1  ;;  %5615 = vmatmul.mubr.f32.vlgmr.msra.gmra.mrb[64].mxu1 %v10873_v42  ;;  %2206 = vmatprep.mubr.f32.mxu0 %v10554_v60 }
 0x29c   : > { %10872 = vst [vmem:[#allocation52_spill] sm:$0xff] %v9261_v47  ;;  %6241 = vmatpush3.bf16.msra.mxu1 %v6238_v34  ;;  %5617 = vmatprep.mubr.f32.mxu1 %v10874_v24  ;;  %v10879_v47 = vld [vmem:[#allocation41_spill] sm:$0xff] }
 0x29d   : > { %6243 = vmatprep.subr.bf16.mxu1 %v6242_v0 }
 0x29e   : > { %v9268_v50 = vpop.f32.mrb[24].mxu1  ;;  %2210 = vmatmul.mubr.f32.gmra.mrb[38].mxu0 %v10876_v56  ;;  %v10904_v56 = vld [vmem:[#allocation94_spill] sm:$0xff] }
 0x29f   : > { %10875 = vst [vmem:[#allocation45_spill] sm:$0xff] %v9268_v50  ;;  %v9271_v40 = vpop.f32.mrb[25].mxu1  ;;  %5618 = vmatmul.mubr.f32.gmra.mrb[66].mxu1 %v10878_v3  ;;  %2215 = vmatprep.mubr.f32.mxu0 %v10554_v60  ;;  %v10884_v50 = vld [vmem:[#allocation90_spill] sm:$0xff] }
 0x2a0   : > { %10877 = vst [vmem:[#allocation92_spill] sm:$0xff] %v9271_v40  ;;  %5620 = vmatprep.mubr.f32.mxu1 %v10879_v47  ;;  %6245 = vmatpush3.bf16.msra.mxu1 %v6242_v0 }
 0x2a1   : > { %6247 = vmatprep.subr.bf16.mxu1 %v6246_v4 }
 0x2a2   : > { %v9276_v34 = vpop.f32.mrb[26].mxu1  ;;  %2219 = vmatmul.mubr.f32.gmra.mrb[40].mxu0 %v10881_v32  ;;  %v10902_v32 = vld [vmem:[#allocation111_spill] sm:$0xff] }
 0x2a3   : > { %10880 = vst [vmem:[#allocation54_spill] sm:$0xff] %v9276_v34  ;;  %v9279_v45 = vpop.f32.mrb[27].mxu1  ;;  %5621 = vmatmul.mubr.f32.gmra.mrb[68].mxu1 %v10883_v19  ;;  %2224 = vmatprep.mubr.f32.mxu0 %v10554_v60  ;;  %v10888_v34 = vld [vmem:[#allocation53_spill] sm:$0xff] }
 0x2a4   : > { %10882 = vst [vmem:[#allocation57_spill] sm:$0xff] %v9279_v45  ;;  %5623 = vmatprep.mubr.f32.mxu1 %v10884_v50  ;;  %6249 = vmatpush3.bf16.msra.mxu1 %v6246_v4  ;;  %v10889_v45 = vld [vmem:[#allocation67_spill] sm:$0xff]  ;;  %v10891_v4 = vld [vmem:[#allocation140_spill] sm:$0xff] }
 0x2a5   : > { %6251 = vmatprep.subr.bf16.mxu1 %v8909_v31 }
 0x2a6   : > { %v9285_v40 = vpop.f32.mrb[28].mxu1  ;;  %2228 = vmatmul.mubr.f32.gmra.mrb[42].mxu0 %v10886_v25  ;;  %v10901_v25 = vld [vmem:[#allocation145_spill] sm:$0xff] }
 0x2a7   : > { %10885 = vst [vmem:[#allocation32_spill] sm:$0xff] %v9285_v40  ;;  %v9288_v0 = vpop.f32.mrb[29].mxu1  ;;  %5624 = vmatmul.mubr.f32.gmra.mrb[70].mxu1 %v10888_v34  ;;  %2233 = vmatprep.mubr.f32.mxu0 %v10554_v60  ;;  %v10893_v40 = vld [vmem:[#allocation93_spill] sm:$0xff] }
 0x2a8   : > { %10887 = vst [vmem:[#allocation62_spill] sm:$0xff] %v9288_v0  ;;  %5626 = vmatprep.mubr.f32.mxu1 %v10889_v45  ;;  %6253 = vmatpush3.bf16.msra.mxu1 %v8909_v31  ;;  %v10894_v0 = vld [vmem:[#allocation97_spill] sm:$0xff] }
 0x2a9   : > { %6255 = vmatprep.subr.bf16.mxu1 %v8939_v58  ;;  %v10896_v31 = vld [vmem:[#allocation101_spill] sm:$0xff] }
 0x2aa   : > { %v9295_v61 = vpop.f32.mrb[30].mxu1  ;;  %2237 = vmatmul.mubr.f32.gmra.mrb[44].mxu0 %v10891_v4  ;;  %v10898_v4 = vld [vmem:[#allocation143_spill] sm:$0xff] }
 0x2ab   : > { %10890 = vst [vmem:[#allocation64_spill] sm:$0xff] %v9295_v61  ;;  %v9298_v23 = vpop.f32.mrb[31].mxu1  ;;  %5627 = vmatmul.mubr.f32.gmra.mrb[72].mxu1 %v10893_v40  ;;  %2242 = vmatprep.mubr.f32.mxu0 %v10554_v60  ;;  %v10897_v61 = vld [vmem:[#allocation104_spill] sm:$0xff] }
 0x2ac   : > { %10892 = vst [vmem:[#allocation66_spill] sm:$0xff] %v9298_v23  ;;  %5629 = vmatprep.mubr.f32.mxu1 %v10894_v0  ;;  %6257 = vmatpush3.bf16.msra.mxu1 %v8939_v58  ;;  %v6266_v23 = vpack.c.bf16 %v9109_v12, %v9104_v22  ;;  %v10899_v58 = vld [vmem:[#allocation100_spill] sm:$0xff] }
 0x2ad   : > { %6259 = vmatprep.subr.bf16.mxu1 %v8958_v35 }
 0x2ae   : > { %2246 = vmatmul.mubr.f32.gmra.mrb[46].mxu0 %v10895_v54  ;;  %v10900_v54 = vld [vmem:[#allocation109_spill] sm:$0xff] }
 0x2af   : > { %5630 = vmatmul.mubr.f32.gmra.mrb[74].mxu1 %v10896_v31  ;;  %2251 = vmatprep.mubr.f32.mxu0 %v10554_v60 }
 0x2b0   : > { %5632 = vmatprep.mubr.f32.mxu1 %v10897_v61  ;;  %6261 = vmatpush3.bf16.msra.mxu1 %v8958_v35  ;;  %v10903_v35 = vld [vmem:[#allocation114_spill] sm:$0xff] }
 0x2b1   : > { %6263 = vmatprep.subr.bf16.mxu1 %v8985_v27 }
 0x2b2   : > { %2255 = vmatmul.mubr.f32.gmra.mrb[48].mxu0 %v10898_v4  ;;  %v10905_v4 = vld [vmem:[#allocation150_spill] sm:$0xff] }
 0x2b3   : > { %5633 = vmatmul.mubr.f32.gmra.mrb[76].mxu1 %v10899_v58  ;;  %2260 = vmatprep.mubr.f32.mxu0 %v10554_v60 }
 0x2b4   : > { %5635 = vmatprep.mubr.f32.mxu1 %v10900_v54  ;;  %6265 = vmatpush3.bf16.msra.mxu1 %v8985_v27  ;;  %v10908_v27 = vld [vmem:[#allocation152_spill] sm:$0xff] }
 0x2b5   : > { %6267 = vmatprep.subr.bf16.mxu1 %v6266_v23 }
 0x2b6   : > { %2264 = vmatmul.mubr.f32.gmra.mrb[50].mxu0 %v10901_v25  ;;  %v10909_v25 = vld [vmem:[#allocation125_spill] sm:$0xff] }
 0x2b7   : > { %5636 = vmatmul.mubr.f32.gmra.mrb[78].mxu1 %v10902_v32  ;;  %2269 = vmatprep.mubr.f32.mxu0 %v10554_v60 }
 0x2b8   : > { %5638 = vmatprep.mubr.f32.mxu1 %v10903_v35  ;;  %6269 = vmatpush3.bf16.msra.mxu1 %v6266_v23  ;;  %v10912_v23 = vld [vmem:[#allocation159_spill] sm:$0xff] }
 0x2b9   : > { %6271 = vmatprep.subr.bf16.mxu1 %v10904_v56 }
 0x2ba   : > { %2273 = vmatmul.mubr.f32.gmra.mrb[52].mxu0 %v10905_v4  ;;  %v10918_v4 = vld [vmem:[#allocation35_spill] sm:$0xff] }
 0x2bb   : > { %5639 = vmatmul.mubr.f32.gmra.mrb[80].mxu1 %v10906_v21  ;;  %2278 = vmatprep.mubr.f32.mxu0 %v10554_v60 }
 0x2bc   : > { %5641 = vmatprep.mubr.f32.mxu1 %v10907_v57 }
 0x2be   : > { %2282 = vmatmul.mubr.f32.gmra.mrb[54].mxu0 %v10908_v27  ;;  %v10913_v27 = vld [vmem:[#allocation162_spill] sm:$0xff] }
 0x2bf   : > { %5642 = vmatmul.mubr.f32.gmra.mrb[82].mxu1 %v10909_v25  ;;  %2287 = vmatprep.mubr.f32.mxu0 %v10554_v60 }
 0x2c0   : > { %5644 = vmatprep.mubr.f32.mxu1 %v10910_v6 }
 0x2c2   : > { %2291 = vmatmul.mubr.f32.gmra.mrb[56].mxu0 %v10911_v1  ;;  %v10914_v1 = vld [vmem:[#allocation165_spill] sm:$0xff] }
 0x2c3   : > { %5645 = vmatmul.mubr.f32.gmra.mrb[84].mxu1 %v8557_v8  ;;  %2296 = vmatprep.mubr.f32.mxu0 %v10554_v60 }
 0x2c4   : > { %5647 = vmatprep.mubr.f32.mxu1 %v8584_v5 }
 0x2c6   : > { %2300 = vmatmul.mubr.f32.gmra.mrb[58].mxu0 %v10912_v23  ;;  %v10916_v23 = vld [vmem:[#allocation21_spill] sm:$0xff] }
 0x2c7   : > { %5648 = vmatmul.mubr.f32.gmra.mrb[86].mxu1 %v8600_v30  ;;  %2305 = vmatprep.mubr.f32.mxu0 %v10554_v60 }
 0x2c8   : > { %5650 = vmatprep.mubr.f32.mxu1 %v8624_v20 }
 0x2ca   : > { %2309 = vmatmul.mubr.f32.gmra.mrb[60].mxu0 %v10913_v27  ;;  %v10915_v27 = vld [vmem:[#allocation18_spill] sm:$0xff] }
 0x2cb   : > { %5651 = vmatmul.mubr.f32.gmra.mrb[88].mxu1 %v8637_v37  ;;  %2314 = vmatprep.mubr.f32.mxu0 %v10554_v60 }
 0x2cc   : > { %5653 = vmatprep.mubr.f32.mxu1 %v8663_v46 }
 0x2ce   : > { %2318 = vmatmul.mubr.f32.gmra.mrb[62].mxu0 %v10914_v1  ;;  %v10917_v1 = vld [vmem:[#allocation158_spill] sm:$0xff] }
 0x2cf   : > { %5654 = vmatmul.mubr.f32.gmra.mrb[90].mxu1 %v8676_v52  ;;  %2484 = vmatprep.mubr.f32.mxu0 %v10554_v60 }
 0x2d0   : > { %5656 = vmatprep.mubr.f32.mxu1 %v8698_v59  ;;  %v10919_v59 = vld [vmem:[#allocation24_spill] sm:$0xff] }
 0x2d2   : > { %2486 = vmatmul.mubr.f32.vlgmr.msra.gmra.mrb[0].mxu0 %v10869_v10  ;;  %v10920_v10 = vld [vmem:[#allocation44_spill] sm:$0xff] }
 0x2d3   : > { %5657 = vmatmul.mubr.f32.gmra.mrb[92].mxu1 %v8710_v48  ;;  %2491 = vmatprep.mubr.f32.mxu0 %v10554_v60  ;;  %v10921_v48 = vld [vmem:[#allocation34_spill] sm:$0xff] }
 0x2d4   : > { %5659 = vmatprep.mubr.f32.mxu1 %v8734_v55  ;;  %6145 = vmatpush1.bf16.msra.mxu0 %v10915_v27  ;;  %v10922_v27 = vld [vmem:[#allocation36_spill] sm:$0xff] }
 0x2d5   : > { %6147 = vmatprep.subr.bf16.mxu0 %v10916_v23  ;;  %v10923_v23 = vld [vmem:[#allocation168_spill] sm:$0xff] }
 0x2d6   : > { %2493 = vmatmul.mubr.f32.gmra.mrb[2].mxu0 %v10873_v42  ;;  %v10924_v42 = vld [vmem:[#allocation47_spill] sm:$0xff] }
 0x2d7   : > { %5660 = vmatmul.mubr.f32.gmra.mrb[94].mxu1 %v10917_v1  ;;  %2498 = vmatprep.mubr.f32.mxu0 %v10554_v60 }
 0x2d8   : > { %5694 = vmatprep.mubr.f32.mxu1 %v10918_v4  ;;  %6149 = vmatpush1.bf16.msra.mxu0 %v10919_v59  ;;  %v10925_v4 = vld [vmem:[#allocation49_spill] sm:$0xff]  ;;  %v10926_v59 = vld [vmem:[#allocation20_spill] sm:$0xff] }
 0x2d9   : > { %6151 = vmatprep.subr.bf16.mxu0 %v10920_v10  ;;  %v10927_v10 = vld [vmem:[#allocation22_spill] sm:$0xff] }
 0x2da   : > { %2500 = vmatmul.mubr.f32.gmra.mrb[4].mxu0 %v10874_v24  ;;  %v10929_v24 = vld [vmem:[#allocation51_spill] sm:$0xff] }
 0x2db   : > { %5695 = vmatmul.mubr.f32.vlgmr.msra.gmra.mrb[64].mxu1 %v10921_v48  ;;  %2505 = vmatprep.mubr.f32.mxu0 %v10554_v60  ;;  %v10928_v48 = vld [vmem:[#allocation169_spill] sm:$0xff] }
 0x2dc   : > { %6273 = vmatpush3.bf16.msra.mxu1 %v10904_v56  ;;  %5697 = vmatprep.mubr.f32.mxu1 %v10922_v27  ;;  %v10930_v27 = vld [vmem:[#allocation59_spill] sm:$0xff] }
 0x2dd   : > { %6275 = vmatprep.subr.bf16.mxu1 %v10923_v23  ;;  %6153 = vmatpush1.bf16.msra.mxu0 %v10924_v42  ;;  %v10931_v42 = vld [vmem:[#allocation31_spill] sm:$0xff] }
 0x2de   : > { %2507 = vmatmul.mubr.f32.gmra.mrb[6].mxu0 %v10878_v3  ;;  %6155 = vmatprep.subr.bf16.mxu0 %v10925_v4  ;;  %v10932_v4 = vld [vmem:[#allocation46_spill] sm:$0xff]  ;;  %v10935_v3 = vld [vmem:[#allocation71_spill] sm:$0xff] }
 0x2df   : > { %5698 = vmatmul.mubr.f32.gmra.mrb[66].mxu1 %v10926_v59  ;;  %2512 = vmatprep.mubr.f32.mxu0 %v10554_v60  ;;  %v10933_v59 = vld [vmem:[#allocation170_spill] sm:$0xff] }
 0x2e0   : > { %5700 = vmatprep.mubr.f32.mxu1 %v10927_v10  ;;  %6277 = vmatpush3.bf16.msra.mxu1 %v10923_v23  ;;  %v10934_v10 = vld [vmem:[#allocation60_spill] sm:$0xff] }
 0x2e1   : > { %6279 = vmatprep.subr.bf16.mxu1 %v10928_v48  ;;  %6157 = vmatpush1.bf16.msra.mxu0 %v10929_v24  ;;  %v10936_v24 = vld [vmem:[#allocation56_spill] sm:$0xff] }
 0x2e2   : > { %2514 = vmatmul.mubr.f32.gmra.mrb[8].mxu0 %v10879_v47  ;;  %6159 = vmatprep.subr.bf16.mxu0 %v10930_v27  ;;  %v10937_v27 = vld [vmem:[#allocation55_spill] sm:$0xff] }
 0x2e3   : > { %5701 = vmatmul.mubr.f32.gmra.mrb[68].mxu1 %v10931_v42  ;;  %2519 = vmatprep.mubr.f32.mxu0 %v10554_v60  ;;  %v10938_v42 = vld [vmem:[#allocation171_spill] sm:$0xff] }
 0x2e4   : > { %5703 = vmatprep.mubr.f32.mxu1 %v10932_v4  ;;  %6281 = vmatpush3.bf16.msra.mxu1 %v10928_v48  ;;  %v10939_v4 = vld [vmem:[#allocation72_spill] sm:$0xff]  ;;  %v10940_v48 = vld [vmem:[#allocation77_spill] sm:$0xff] }
 0x2e5   : > { %6283 = vmatprep.subr.bf16.mxu1 %v10933_v59  ;;  %6161 = vmatpush1.bf16.msra.mxu0 %v10934_v10  ;;  %v10941_v10 = vld [vmem:[#allocation96_spill] sm:$0xff] }
 0x2e6   : > { %2521 = vmatmul.mubr.f32.gmra.mrb[10].mxu0 %v10883_v19  ;;  %6163 = vmatprep.subr.bf16.mxu0 %v10935_v3  ;;  %v10942_v3 = vld [vmem:[#allocation99_spill] sm:$0xff] }
 0x2e7   : > { %5704 = vmatmul.mubr.f32.gmra.mrb[70].mxu1 %v10936_v24  ;;  %2526 = vmatprep.mubr.f32.mxu0 %v10554_v60  ;;  %v10943_v24 = vld [vmem:[#allocation172_spill] sm:$0xff] }
 0x2e8   : > { %5706 = vmatprep.mubr.f32.mxu1 %v10937_v27  ;;  %6285 = vmatpush3.bf16.msra.mxu1 %v10933_v59  ;;  %v10944_v27 = vld [vmem:[#allocation78_spill] sm:$0xff] }
 0x2e9   : > { %6287 = vmatprep.subr.bf16.mxu1 %v10938_v42  ;;  %6165 = vmatpush1.bf16.msra.mxu0 %v10939_v4  ;;  %v10946_v4 = vld [vmem:[#allocation79_spill] sm:$0xff] }
 0x2ea   : > { %2528 = vmatmul.mubr.f32.gmra.mrb[12].mxu0 %v10884_v50  ;;  %6167 = vmatprep.subr.bf16.mxu0 %v10940_v48  ;;  %v10948_v48 = vld [vmem:[#allocation103_spill] sm:$0xff] }
 0x2eb   : > { %5707 = vmatmul.mubr.f32.gmra.mrb[72].mxu1 %v10941_v10  ;;  %2533 = vmatprep.mubr.f32.mxu0 %v10554_v60  ;;  %v10949_v10 = vld [vmem:[#allocation58_spill] sm:$0xff] }
 0x2ec   : > { %5709 = vmatprep.mubr.f32.mxu1 %v10942_v3  ;;  %6289 = vmatpush3.bf16.msra.mxu1 %v10938_v42  ;;  %v10950_v3 = vld [vmem:[#allocation173_spill] sm:$0xff]  ;;  %v10951_v42 = vld [vmem:[#allocation80_spill] sm:$0xff] }
 0x2ed   : > { %6291 = vmatprep.subr.bf16.mxu1 %v10943_v24  ;;  %6169 = vmatpush1.bf16.msra.mxu0 %v10944_v27 }
 0x2ee   : > { %v9398_v59 = vpop.f32.mrb[32].mxu1  ;;  %2535 = vmatmul.mubr.f32.gmra.mrb[14].mxu0 %v10888_v34  ;;  %6171 = vmatprep.subr.bf16.mxu0 %v10946_v4  ;;  %v10954_v4 = vld [vmem:[#allocation107_spill] sm:$0xff] }
 0x2ef   : > { %10945 = vst [vmem:[#allocation98_spill] sm:$0xff] %v9398_v59  ;;  %v9402_v50 = vpop.f32.mrb[33].mxu1  ;;  %5710 = vmatmul.mubr.f32.gmra.mrb[74].mxu1 %v10948_v48  ;;  %2540 = vmatprep.mubr.f32.mxu0 %v10554_v60  ;;  %v10955_v48 = vld [vmem:[#allocation113_spill] sm:$0xff] }
 0x2f0   : > { %10947 = vst [vmem:[#allocation68_spill] sm:$0xff] %v9402_v50  ;;  %5712 = vmatprep.mubr.f32.mxu1 %v10949_v10  ;;  %6293 = vmatpush3.bf16.msra.mxu1 %v10943_v24  ;;  %v10956_v10 = vld [vmem:[#allocation176_spill] sm:$0xff]  ;;  %v10957_v50 = vand.u32 4294901760, %v8541_v38 }
 0x2f1   : > { %6295 = vmatprep.subr.bf16.mxu1 %v10950_v3  ;;  %6173 = vmatpush1.bf16.msra.mxu0 %v10951_v42  ;;  %v10958_v42 = vand.u32 4294901760, %v8554_v53  ;;  %v10965_v53 = vld [vmem:[#allocation121_spill] sm:$0xff] }
 0x2f2   : > { %v9410_v27 = vpop.f32.mrb[34].mxu1  ;;  %2542 = vmatmul.mubr.f32.gmra.mrb[16].mxu0 %v10889_v45 }
 0x2f3   : > { %10952 = vst [vmem:[#allocation70_spill] sm:$0xff] %v9410_v27  ;;  %v9413_v59 = vpop.f32.mrb[35].mxu1  ;;  %5713 = vmatmul.mubr.f32.gmra.mrb[76].mxu1 %v10954_v4  ;;  %2547 = vmatprep.mubr.f32.mxu0 %v10554_v60  ;;  %v6302_v24 = vpack.c.bf16 %v10958_v42, %v10957_v50  ;;  %v10961_v4 = vld [vmem:[#allocation116_spill] sm:$0xff]  ;;  %v10966_v50 = vld [vmem:[#allocation126_spill] sm:$0xff] }
 0x2f4   : > { %10953 = vst [vmem:[#allocation63_spill] sm:$0xff] %v9413_v59  ;;  %5715 = vmatprep.mubr.f32.mxu1 %v10955_v48  ;;  %6297 = vmatpush3.bf16.msra.mxu1 %v10950_v3  ;;  %v10962_v48 = vld [vmem:[#allocation120_spill] sm:$0xff] }
 0x2f5   : > { %6299 = vmatprep.subr.bf16.mxu1 %v10956_v10 }
 0x2f6   : > { %v9424_v27 = vpop.f32.mrb[36].mxu1  ;;  %2549 = vmatmul.mubr.f32.gmra.mrb[18].mxu0 %v10893_v40 }
 0x2f7   : > { %10959 = vst [vmem:[#allocation73_spill] sm:$0xff] %v9424_v27  ;;  %v9427_v59 = vpop.f32.mrb[37].mxu1  ;;  %5716 = vmatmul.mubr.f32.gmra.mrb[78].mxu1 %v10961_v4  ;;  %2554 = vmatprep.mubr.f32.mxu0 %v10554_v60 }
 0x2f8   : > { %10960 = vst [vmem:[#allocation74_spill] sm:$0xff] %v9427_v59  ;;  %5718 = vmatprep.mubr.f32.mxu1 %v10962_v48  ;;  %6301 = vmatpush3.bf16.msra.mxu1 %v10956_v10  ;;  %v10969_v48 = vld [vmem:[#allocation127_spill] sm:$0xff] }
 0x2f9   : > { %6303 = vmatprep.subr.bf16.mxu1 %v6302_v24 }
 0x2fa   : > { %v9433_v3 = vpop.f32.mrb[38].mxu1  ;;  %2556 = vmatmul.mubr.f32.gmra.mrb[20].mxu0 %v10894_v0 }
 0x2fb   : > { %10963 = vst [vmem:[#allocation102_spill] sm:$0xff] %v9433_v3  ;;  %v9436_v38 = vpop.f32.mrb[39].mxu1  ;;  %5719 = vmatmul.mubr.f32.gmra.mrb[80].mxu1 %v10965_v53  ;;  %2561 = vmatprep.mubr.f32.mxu0 %v10554_v60  ;;  %v10970_v3 = vld [vmem:[#allocation133_spill] sm:$0xff] }
 0x2fc   : > { %10964 = vst [vmem:[#allocation105_spill] sm:$0xff] %v9436_v38  ;;  %5721 = vmatprep.mubr.f32.mxu1 %v10966_v50  ;;  %v10973_v38 = vld [vmem:[#allocation134_spill] sm:$0xff] }
 0x2fd   : > { %v10974_v50 = vld [vmem:[#allocation138_spill] sm:$0xff] }
 0x2fe   : > { %v9441_v42 = vpop.f32.mrb[40].mxu1  ;;  %2563 = vmatmul.mubr.f32.gmra.mrb[22].mxu0 %v10896_v31 }
 0x2ff   : > { %10967 = vst [vmem:[#allocation75_spill] sm:$0xff] %v9441_v42  ;;  %v9444_v4 = vpop.f32.mrb[41].mxu1  ;;  %5722 = vmatmul.mubr.f32.gmra.mrb[82].mxu1 %v10969_v48  ;;  %2568 = vmatprep.mubr.f32.mxu0 %v10554_v60 }
 0x300   : > { %10968 = vst [vmem:[#allocation76_spill] sm:$0xff] %v9444_v4  ;;  %5724 = vmatprep.mubr.f32.mxu1 %v10970_v3  ;;  %v10977_v4 = vld [vmem:[#allocation139_spill] sm:$0xff]  ;;  %v10978_v3 = vld [vmem:[#allocation142_spill] sm:$0xff] }
 0x302   : > { %v9449_v59 = vpop.f32.mrb[42].mxu1  ;;  %2570 = vmatmul.mubr.f32.gmra.mrb[24].mxu0 %v10897_v61 }
 0x303   : > { %10971 = vst [vmem:[#allocation91_spill] sm:$0xff] %v9449_v59  ;;  %v9452_v53 = vpop.f32.mrb[43].mxu1  ;;  %5725 = vmatmul.mubr.f32.gmra.mrb[84].mxu1 %v10973_v38  ;;  %2575 = vmatprep.mubr.f32.mxu0 %v10554_v60 }
 0x304   : > { %10972 = vst [vmem:[#allocation112_spill] sm:$0xff] %v9452_v53  ;;  %5727 = vmatprep.mubr.f32.mxu1 %v10974_v50  ;;  %v10981_v53 = vld [vmem:[#allocation144_spill] sm:$0xff]  ;;  %v10982_v50 = vld [vmem:[#allocation146_spill] sm:$0xff] }
 0x306   : > { %v9457_v42 = vpop.f32.mrb[44].mxu1  ;;  %2577 = vmatmul.mubr.f32.gmra.mrb[26].mxu0 %v10899_v58 }
 0x307   : > { %10975 = vst [vmem:[#allocation61_spill] sm:$0xff] %v9457_v42  ;;  %v9460_v48 = vpop.f32.mrb[45].mxu1  ;;  %5728 = vmatmul.mubr.f32.gmra.mrb[86].mxu1 %v10977_v4  ;;  %2582 = vmatprep.mubr.f32.mxu0 %v10554_v60 }
 0x308   : > { %10976 = vst [vmem:[#allocation95_spill] sm:$0xff] %v9460_v48  ;;  %5730 = vmatprep.mubr.f32.mxu1 %v10978_v3  ;;  %v10985_v48 = vld [vmem:[#allocation147_spill] sm:$0xff]  ;;  %v10986_v3 = vld [vmem:[#allocation154_spill] sm:$0xff] }
 0x30a   : > { %v9465_v59 = vpop.f32.mrb[46].mxu1  ;;  %2584 = vmatmul.mubr.f32.gmra.mrb[28].mxu0 %v10900_v54 }
 0x30b   : > { %10979 = vst [vmem:[#allocation17_spill] sm:$0xff] %v9465_v59  ;;  %v9468_v38 = vpop.f32.mrb[47].mxu1  ;;  %5731 = vmatmul.mubr.f32.gmra.mrb[88].mxu1 %v10981_v53  ;;  %2589 = vmatprep.mubr.f32.mxu0 %v10554_v60 }
 0x30c   : > { %10980 = vst [vmem:[#allocation118_spill] sm:$0xff] %v9468_v38  ;;  %5733 = vmatprep.mubr.f32.mxu1 %v10982_v50  ;;  %v10989_v38 = vld [vmem:[#allocation155_spill] sm:$0xff]  ;;  %v10990_v50 = vld [vmem:[#allocation160_spill] sm:$0xff] }
 0x30e   : > { %v9473_v42 = vpop.f32.mrb[48].mxu1  ;;  %2591 = vmatmul.mubr.f32.gmra.mrb[30].mxu0 %v10902_v32 }
 0x30f   : > { %10983 = vst [vmem:[#allocation122_spill] sm:$0xff] %v9473_v42  ;;  %v9476_v4 = vpop.f32.mrb[49].mxu1  ;;  %5734 = vmatmul.mubr.f32.gmra.mrb[90].mxu1 %v10985_v48  ;;  %2596 = vmatprep.mubr.f32.mxu0 %v10554_v60 }
 0x310   : > { %10984 = vst [vmem:[#allocation50_spill] sm:$0xff] %v9476_v4  ;;  %5736 = vmatprep.mubr.f32.mxu1 %v10986_v3  ;;  %v10992_v4 = vld [vmem:[#allocation163_spill] sm:$0xff] }
 0x311   : > { %v10993_v3 = vld [vmem:[#allocation83_spill] sm:$0xff] }
 0x312   : > { %v9481_v59 = vpop.f32.mrb[50].mxu1  ;;  %2598 = vmatmul.mubr.f32.gmra.mrb[32].mxu0 %v10903_v35 }
 0x313   : > { %10987 = vst [vmem:[#allocation129_spill] sm:$0xff] %v9481_v59  ;;  %v9484_v53 = vpop.f32.mrb[51].mxu1  ;;  %5737 = vmatmul.mubr.f32.gmra.mrb[92].mxu1 %v10989_v38  ;;  %2603 = vmatprep.mubr.f32.mxu0 %v10554_v60  ;;  %v10995_v38 = vand.u32 4294901760, %v8990_v16 }
 0x314   : > { %10988 = vst [vmem:[#allocation65_spill] sm:$0xff] %v9484_v53  ;;  %5739 = vmatprep.mubr.f32.mxu1 %v10990_v50  ;;  %v10994_v53 = vand.u32 4294901760, %v8981_v15  ;;  %v10998_v15 = vand.u32 4294901760, %v9006_v7 }
 0x316   : > { %v9489_v42 = vpop.f32.mrb[52].mxu1  ;;  %2605 = vmatmul.mubr.f32.gmra.mrb[34].mxu0 %v10906_v21  ;;  %v6306_v59 = vpack.c.bf16 %v10995_v38, %v10994_v53 }
 0x317   : > { %10991 = vst [vmem:[#allocation131_spill] sm:$0xff] %v9489_v42  ;;  %v9492_v48 = vpop.f32.mrb[53].mxu1  ;;  %5740 = vmatmul.mubr.f32.gmra.mrb[94].mxu1 %v10992_v4  ;;  %2610 = vmatprep.mubr.f32.mxu0 %v10554_v60  ;;  %v10996_v42 = vld [vmem:[#allocation86_spill] sm:$0xff]  ;;  %v10997_v4 = vand.u32 4294901760, %v9001_v51  ;;  %v11001_v51 = vld [vmem:[#allocation175_spill] sm:$0xff] }
 0x318   : > { %5774 = vmatprep.mubr.f32.mxu1 %v10993_v3 }
 0x319   : > { %v6310_v16 = vpack.c.bf16 %v10998_v15, %v10997_v4 }
 0x31a   : > { %v9501_v27 = vpop.f32.mrb[54].mxu1  ;;  %2612 = vmatmul.mubr.f32.gmra.mrb[36].mxu0 %v10907_v57 }
 0x31b   : > { %v9504_v50 = vpop.f32.mrb[55].mxu1  ;;  %5775 = vmatmul.mubr.f32.vlgmr.msra.gmra.mrb[64].mxu1 %v10996_v42  ;;  %2617 = vmatprep.mubr.f32.mxu0 %v10554_v60  ;;  %v11002_v42 = vand.u32 4294901760, %v11001_v51  ;;  %v11020_v51 = vld [vmem:[#allocation151_spill] sm:$0xff] }
 0x31c   : > { %6305 = vmatpush3.bf16.msra.mxu1 %v6302_v24  ;;  %5777 = vmatprep.mubr.f32.mxu1 %v10766_v9  ;;  %v10999_v9 = vld [vmem:[#allocation174_spill] sm:$0xff] }
 0x31d   : > { %6307 = vmatprep.subr.bf16.mxu1 %v6306_v59  ;;  %v11000_v24 = vand.u32 4294901760, %v10999_v9 }
 0x31e   : > { %v9513_v53 = vpop.f32.mrb[56].mxu1  ;;  %2619 = vmatmul.mubr.f32.gmra.mrb[38].mxu0 %v10909_v25 }
 0x31f   : > { %v9516_v3 = vpop.f32.mrb[57].mxu1  ;;  %5778 = vmatmul.mubr.f32.gmra.mrb[66].mxu1 %v8238_v26  ;;  %2624 = vmatprep.mubr.f32.mxu0 %v10554_v60  ;;  %v6314_v7 = vpack.c.bf16 %v11002_v42, %v11000_v24  ;;  %v11003_v26 = vand.u32 4294901760, %v8928_v62  ;;  %v11006_v62 = vand.u32 4294901760, %v8951_v18  ;;  %v11019_v24 = vld [vmem:[#allocation140_spill] sm:$0xff]  ;;  %v11021_v42 = vld [vmem:[#allocation141_spill] sm:$0xff] }
 0x320   : > { %5780 = vmatprep.mubr.f32.mxu1 %v10787_v2  ;;  %6309 = vmatpush3.bf16.msra.mxu1 %v6306_v59  ;;  %v11004_v2 = vand.u32 4294901760, %v8931_v49 }
 0x321   : > { %6311 = vmatprep.subr.bf16.mxu1 %v6310_v16 }
 0x322   : > { %v9525_v38 = vpop.f32.mrb[58].mxu1  ;;  %2626 = vmatmul.mubr.f32.gmra.mrb[40].mxu0 %v10910_v6  ;;  %v6318_v59 = vpack.c.bf16 %v11004_v2, %v11003_v26  ;;  %v11023_v26 = vld [vmem:[#allocation145_spill] sm:$0xff]  ;;  %v11024_v2 = vld [vmem:[#allocation150_spill] sm:$0xff] }
 0x323   : > { %v9528_v4 = vpop.f32.mrb[59].mxu1  ;;  %5781 = vmatmul.mubr.f32.gmra.mrb[68].mxu1 %v10798_v17  ;;  %2631 = vmatprep.mubr.f32.mxu0 %v10554_v60  ;;  %v11005_v17 = vand.u32 4294901760, %v8948_v36  ;;  %v11008_v36 = vand.u32 4294901760, %v8973_v33  ;;  %v11012_v33 = vld [vmem:[#allocation123_spill] sm:$0xff] }
 0x324   : > { %5783 = vmatprep.mubr.f32.mxu1 %v10809_v63  ;;  %6313 = vmatpush3.bf16.msra.mxu1 %v6310_v16 }
 0x325   : > { %6315 = vmatprep.subr.bf16.mxu1 %v6314_v7  ;;  %v6322_v49 = vpack.c.bf16 %v11006_v62, %v11005_v17  ;;  %v11026_v17 = vld [vmem:[#allocation156_spill] sm:$0xff]  ;;  %v11027_v62 = vld [vmem:[#allocation33_spill] sm:$0xff] }
 0x326   : > { %v9537_v15 = vpop.f32.mrb[60].mxu1  ;;  %2633 = vmatmul.mubr.f32.gmra.mrb[42].mxu0 %v8557_v8 }
 0x327   : > { %v9540_v9 = vpop.f32.mrb[61].mxu1  ;;  %5784 = vmatmul.mubr.f32.gmra.mrb[70].mxu1 %v10822_v39  ;;  %2638 = vmatprep.mubr.f32.mxu0 %v10554_v60  ;;  %v11007_v39 = vand.u32 4294901760, %v8968_v43  ;;  %v11011_v43 = vld [vmem:[#allocation119_spill] sm:$0xff] }
 0x328   : > { %5786 = vmatprep.mubr.f32.mxu1 %v10827_v44  ;;  %6317 = vmatpush3.bf16.msra.mxu1 %v6314_v7  ;;  %v11009_v44 = vand.u32 4294901760, %v9104_v22  ;;  %v11013_v22 = vld [vmem:[#allocation124_spill] sm:$0xff]  ;;  %v11022_v7 = vld [vmem:[#allocation143_spill] sm:$0xff] }
 0x329   : > { %6319 = vmatprep.subr.bf16.mxu1 %v6318_v59  ;;  %v6326_v18 = vpack.c.bf16 %v11008_v36, %v11007_v39  ;;  %v11029_v39 = vld [vmem:[#allocation162_spill] sm:$0xff] }
 0x32a   : > { %v9549_v63 = vpop.f32.mrb[62].mxu1  ;;  %2640 = vmatmul.mubr.f32.gmra.mrb[44].mxu0 %v8584_v5  ;;  %v11030_v36 = vld [vmem:[#allocation82_spill] sm:$0xff] }
 0x32b   : > { %v9552_v16 = vpop.f32.mrb[63].mxu1  ;;  %5787 = vmatmul.mubr.f32.gmra.mrb[72].mxu1 %v10833_v11  ;;  %2645 = vmatprep.mubr.f32.mxu0 %v10554_v60  ;;  %v11010_v11 = vand.u32 4294901760, %v9109_v12  ;;  %v11015_v12 = vld [vmem:[#allocation132_spill] sm:$0xff] }
 0x32c   : > { %5789 = vmatprep.mubr.f32.mxu1 %v10837_v29  ;;  %6321 = vmatpush3.bf16.msra.mxu1 %v6318_v59  ;;  %v11025_v59 = vld [vmem:[#allocation152_spill] sm:$0xff] }
 0x32d   : > { %6323 = vmatprep.subr.bf16.mxu1 %v6322_v49  ;;  %v6330_v29 = vpack.c.bf16 %v11010_v11, %v11009_v44  ;;  %v11032_v44 = vld [vmem:[#allocation84_spill] sm:$0xff]  ;;  %v11033_v11 = vld [vmem:[#allocation19_spill] sm:$0xff] }
 0x32e   : > { %2647 = vmatmul.mubr.f32.gmra.mrb[46].mxu0 %v8600_v30 }
 0x32f   : > { %5790 = vmatmul.mubr.f32.gmra.mrb[74].mxu1 %v10842_v28  ;;  %2652 = vmatprep.mubr.f32.mxu0 %v10554_v60  ;;  %v11016_v28 = vld [vmem:[#allocation136_spill] sm:$0xff] }
 0x330   : > { %5792 = vmatprep.mubr.f32.mxu1 %v10845_v41  ;;  %6325 = vmatpush3.bf16.msra.mxu1 %v6322_v49  ;;  %v11017_v41 = vld [vmem:[#allocation148_spill] sm:$0xff]  ;;  %v11028_v49 = vld [vmem:[#allocation159_spill] sm:$0xff] }
 0x331   : > { %6327 = vmatprep.subr.bf16.mxu1 %v6326_v18 }
 0x332   : > { %2654 = vmatmul.mubr.f32.gmra.mrb[48].mxu0 %v8624_v20 }
 0x333   : > { %5793 = vmatmul.mubr.f32.gmra.mrb[76].mxu1 %v10847_v14  ;;  %2659 = vmatprep.mubr.f32.mxu0 %v10554_v60  ;;  %v11018_v14 = vld [vmem:[#allocation137_spill] sm:$0xff] }
 0x334   : > { %5795 = vmatprep.mubr.f32.mxu1 %v10851_v13  ;;  %6329 = vmatpush3.bf16.msra.mxu1 %v6326_v18  ;;  %v11014_v13 = vld [vmem:[#allocation130_spill] sm:$0xff]  ;;  %v11031_v18 = vld [vmem:[#allocation165_spill] sm:$0xff] }
 0x335   : > { %6331 = vmatprep.subr.bf16.mxu1 %v6330_v29 }
 0x336   : > { %2661 = vmatmul.mubr.f32.gmra.mrb[50].mxu0 %v8637_v37 }
 0x337   : > { %5796 = vmatmul.mubr.f32.gmra.mrb[78].mxu1 %v11011_v43  ;;  %2666 = vmatprep.mubr.f32.mxu0 %v10554_v60  ;;  %v11036_v43 = vld [vmem:[#allocation170_spill] sm:$0xff] }
 0x338   : > { %5798 = vmatprep.mubr.f32.mxu1 %v11012_v33  ;;  %6333 = vmatpush3.bf16.msra.mxu1 %v6330_v29  ;;  %v11034_v29 = vld [vmem:[#allocation169_spill] sm:$0xff]  ;;  %v11038_v33 = vld [vmem:[#allocation172_spill] sm:$0xff] }
 0x339   : > { %6335 = vmatprep.subr.bf16.mxu1 %v10904_v56 }
 0x33a   : > { %2668 = vmatmul.mubr.f32.gmra.mrb[52].mxu0 %v8663_v46 }
 0x33b   : > { %5799 = vmatmul.mubr.f32.gmra.mrb[80].mxu1 %v11013_v22  ;;  %2673 = vmatprep.mubr.f32.mxu0 %v10554_v60  ;;  %v11039_v22 = vld [vmem:[#allocation173_spill] sm:$0xff] }
 0x33c   : > { %5801 = vmatprep.mubr.f32.mxu1 %v11014_v13 }
 0x33e   : > { %2675 = vmatmul.mubr.f32.gmra.mrb[54].mxu0 %v8676_v52 }
 0x33f   : > { %5802 = vmatmul.mubr.f32.gmra.mrb[82].mxu1 %v11015_v12  ;;  %2680 = vmatprep.mubr.f32.mxu0 %v10554_v60 }
 0x340   : > { %5804 = vmatprep.mubr.f32.mxu1 %v11016_v28 }
 0x342   : > { %2682 = vmatmul.mubr.f32.gmra.mrb[56].mxu0 %v11017_v41 }
 0x343   : > { %5805 = vmatmul.mubr.f32.gmra.mrb[84].mxu1 %v11018_v14  ;;  %2687 = vmatprep.mubr.f32.mxu0 %v10554_v60  ;;  %v11046_v14 = vld [vmem:[#allocation23_spill] sm:$0xff] }
 0x344   : > { %5807 = vmatprep.mubr.f32.mxu1 %v11019_v24 }
 0x346   : > { %2689 = vmatmul.mubr.f32.gmra.mrb[58].mxu0 %v11020_v51 }
 0x347   : > { %5808 = vmatmul.mubr.f32.gmra.mrb[86].mxu1 %v11021_v42  ;;  %2694 = vmatprep.mubr.f32.mxu0 %v10554_v60 }
 0x348   : > { %5810 = vmatprep.mubr.f32.mxu1 %v11022_v7 }
 0x34a   : > { %2696 = vmatmul.mubr.f32.gmra.mrb[60].mxu0 %v8734_v55 }
 0x34b   : > { %5811 = vmatmul.mubr.f32.gmra.mrb[88].mxu1 %v11023_v26  ;;  %2701 = vmatprep.mubr.f32.mxu0 %v10554_v60 }
 0x34c   : > { %5813 = vmatprep.mubr.f32.mxu1 %v11024_v2 }
 0x34e   : > { %2703 = vmatmul.mubr.f32.gmra.mrb[62].mxu0 %v10917_v1 }
 0x34f   : > { %5814 = vmatmul.mubr.f32.gmra.mrb[90].mxu1 %v11025_v59  ;;  %2805 = vmatprep.mubr.f32.mxu0 %v10554_v60 }
 0x350   : > { %5816 = vmatprep.mubr.f32.mxu1 %v11026_v17  ;;  %v11048_v17 = vld [vmem:[#allocation85_spill] sm:$0xff] }
 0x352   : > { %2807 = vmatmul.mubr.f32.vlgmr.msra.gmra.mrb[0].mxu0 %v11027_v62 }
 0x353   : > { %5817 = vmatmul.mubr.f32.gmra.mrb[92].mxu1 %v11028_v49  ;;  %2812 = vmatprep.mubr.f32.mxu0 %v10554_v60  ;;  %v11049_v49 = vld [vmem:[#allocation26_spill] sm:$0xff] }
 0x354   : > { %5819 = vmatprep.mubr.f32.mxu1 %v11029_v39 }
 0x356   : > { %2814 = vmatmul.mubr.f32.gmra.mrb[2].mxu0 %v11030_v36 }
 0x357   : > { %5820 = vmatmul.mubr.f32.gmra.mrb[94].mxu1 %v11031_v18  ;;  %2819 = vmatprep.mubr.f32.mxu0 %v10554_v60 }
 0x358   : > { %5854 = vmatprep.mubr.f32.mxu1 %v11027_v62 }
 0x35a   : > { %2821 = vmatmul.mubr.f32.gmra.mrb[4].mxu0 %v11032_v44 }
 0x35b   : > { %5855 = vmatmul.mubr.f32.vlgmr.msra.gmra.mrb[64].mxu1 %v11030_v36  ;;  %2826 = vmatprep.mubr.f32.mxu0 %v10554_v60 }
 0x35c   : > { %6337 = vmatpush3.bf16.msra.mxu1 %v10904_v56  ;;  %5857 = vmatprep.mubr.f32.mxu1 %v11032_v44  ;;  %v11035_v56 = vld [vmem:[#allocation90_spill] sm:$0xff] }
 0x35d   : > { %6339 = vmatprep.subr.bf16.mxu1 %v10923_v23 }
 0x35e   : > { %2828 = vmatmul.mubr.f32.gmra.mrb[6].mxu0 %v11033_v11 }
 0x35f   : > { %5858 = vmatmul.mubr.f32.gmra.mrb[66].mxu1 %v11033_v11  ;;  %2833 = vmatprep.mubr.f32.mxu0 %v10554_v60 }
 0x360   : > { %5860 = vmatprep.mubr.f32.mxu1 %v10879_v47  ;;  %6341 = vmatpush3.bf16.msra.mxu1 %v10923_v23  ;;  %v11037_v23 = vld [vmem:[#allocation171_spill] sm:$0xff] }
 0x361   : > { %6343 = vmatprep.subr.bf16.mxu1 %v11034_v29 }
 0x362   : > { %2835 = vmatmul.mubr.f32.gmra.mrb[8].mxu0 %v10879_v47 }
 0x363   : > { %5861 = vmatmul.mubr.f32.gmra.mrb[68].mxu1 %v10883_v19  ;;  %2840 = vmatprep.mubr.f32.mxu0 %v10554_v60 }
 0x364   : > { %5863 = vmatprep.mubr.f32.mxu1 %v11035_v56  ;;  %6345 = vmatpush3.bf16.msra.mxu1 %v11034_v29  ;;  %v11050_v29 = vld [vmem:[#allocation27_spill] sm:$0xff] }
 0x365   : > { %6347 = vmatprep.subr.bf16.mxu1 %v11036_v43 }
 0x366   : > { %2842 = vmatmul.mubr.f32.gmra.mrb[10].mxu0 %v10883_v19 }
 0x367   : > { %5864 = vmatmul.mubr.f32.gmra.mrb[70].mxu1 %v10888_v34  ;;  %2847 = vmatprep.mubr.f32.mxu0 %v10554_v60 }
 0x368   : > { %5866 = vmatprep.mubr.f32.mxu1 %v10889_v45  ;;  %6349 = vmatpush3.bf16.msra.mxu1 %v11036_v43  ;;  %v11051_v43 = vld [vmem:[#allocation88_spill] sm:$0xff] }
 0x369   : > { %6351 = vmatprep.subr.bf16.mxu1 %v11037_v23 }
 0x36a   : > { %2849 = vmatmul.mubr.f32.gmra.mrb[12].mxu0 %v11035_v56 }
 0x36b   : > { %5867 = vmatmul.mubr.f32.gmra.mrb[72].mxu1 %v10893_v40  ;;  %2854 = vmatprep.mubr.f32.mxu0 %v10554_v60 }
 0x36c   : > { %5869 = vmatprep.mubr.f32.mxu1 %v10894_v0  ;;  %6353 = vmatpush3.bf16.msra.mxu1 %v11037_v23 }
 0x36d   : > { %6355 = vmatprep.subr.bf16.mxu1 %v11038_v33 }
 0x36e   : > { %2856 = vmatmul.mubr.f32.gmra.mrb[14].mxu0 %v10888_v34 }
 0x36f   : > { %5870 = vmatmul.mubr.f32.gmra.mrb[74].mxu1 %v10896_v31  ;;  %2861 = vmatprep.mubr.f32.mxu0 %v10554_v60 }
 0x370   : > { %5872 = vmatprep.mubr.f32.mxu1 %v10897_v61  ;;  %6357 = vmatpush3.bf16.msra.mxu1 %v11038_v33 }
 0x371   : > { %6359 = vmatprep.subr.bf16.mxu1 %v11039_v22 }
 0x372   : > { %2863 = vmatmul.mubr.f32.gmra.mrb[16].mxu0 %v10889_v45 }
 0x373   : > { %5873 = vmatmul.mubr.f32.gmra.mrb[76].mxu1 %v10899_v58  ;;  %2868 = vmatprep.mubr.f32.mxu0 %v10554_v60 }
 0x374   : > { %5875 = vmatprep.mubr.f32.mxu1 %v10900_v54  ;;  %6361 = vmatpush3.bf16.msra.mxu1 %v11039_v22 }
 0x375   : > { %6363 = vmatprep.subr.bf16.mxu1 %v10956_v10 }
 0x376   : > { %2870 = vmatmul.mubr.f32.gmra.mrb[18].mxu0 %v10893_v40 }
 0x377   : > { %5876 = vmatmul.mubr.f32.gmra.mrb[78].mxu1 %v10902_v32  ;;  %2875 = vmatprep.mubr.f32.mxu0 %v10554_v60 }
 0x378   : > { %5878 = vmatprep.mubr.f32.mxu1 %v10903_v35  ;;  %6365 = vmatpush3.bf16.msra.mxu1 %v10956_v10 }
 0x37a   : > { %2877 = vmatmul.mubr.f32.gmra.mrb[20].mxu0 %v10894_v0 }
 0x37b   : > { %5879 = vmatmul.mubr.f32.gmra.mrb[80].mxu1 %v10906_v21  ;;  %2882 = vmatprep.mubr.f32.mxu0 %v10554_v60 }
 0x37c   : > { %5881 = vmatprep.mubr.f32.mxu1 %v10907_v57 }
 0x37e   : > { %2884 = vmatmul.mubr.f32.gmra.mrb[22].mxu0 %v10896_v31 }
 0x37f   : > { %5882 = vmatmul.mubr.f32.gmra.mrb[82].mxu1 %v10909_v25  ;;  %2889 = vmatprep.mubr.f32.mxu0 %v10554_v60 }
 0x380   : > { %5884 = vmatprep.mubr.f32.mxu1 %v10910_v6 }
 0x382   : > { %2891 = vmatmul.mubr.f32.gmra.mrb[24].mxu0 %v10897_v61 }
 0x383   : > { %5885 = vmatmul.mubr.f32.gmra.mrb[84].mxu1 %v8557_v8  ;;  %2896 = vmatprep.mubr.f32.mxu0 %v10554_v60 }
 0x384   : > { %5887 = vmatprep.mubr.f32.mxu1 %v8584_v5 }
 0x386   : > { %2898 = vmatmul.mubr.f32.gmra.mrb[26].mxu0 %v10899_v58 }
 0x387   : > { %5888 = vmatmul.mubr.f32.gmra.mrb[86].mxu1 %v8600_v30  ;;  %2903 = vmatprep.mubr.f32.mxu0 %v10554_v60 }
 0x388   : > { %5890 = vmatprep.mubr.f32.mxu1 %v8624_v20 }
 0x38a   : > { %2905 = vmatmul.mubr.f32.gmra.mrb[28].mxu0 %v10900_v54 }
 0x38b   : > { %5891 = vmatmul.mubr.f32.gmra.mrb[88].mxu1 %v8637_v37  ;;  %2910 = vmatprep.mubr.f32.mxu0 %v10554_v60 }
 0x38c   : > { %5893 = vmatprep.mubr.f32.mxu1 %v8663_v46 }
 0x38e   : > { %2912 = vmatmul.mubr.f32.gmra.mrb[30].mxu0 %v10902_v32 }
 0x38f   : > { %5894 = vmatmul.mubr.f32.gmra.mrb[90].mxu1 %v8676_v52  ;;  %2917 = vmatprep.mubr.f32.mxu0 %v10554_v60 }
 0x390   : > { %5896 = vmatprep.mubr.f32.mxu1 %v11017_v41 }
 0x392   : > { %2919 = vmatmul.mubr.f32.gmra.mrb[32].mxu0 %v10903_v35 }
 0x393   : > { %5897 = vmatmul.mubr.f32.gmra.mrb[92].mxu1 %v11020_v51  ;;  %2924 = vmatprep.mubr.f32.mxu0 %v10554_v60 }
 0x394   : > { %5899 = vmatprep.mubr.f32.mxu1 %v8734_v55 }
 0x396   : > { %2926 = vmatmul.mubr.f32.gmra.mrb[34].mxu0 %v10906_v21 }
 0x397   : > { %5900 = vmatmul.mubr.f32.gmra.mrb[94].mxu1 %v10917_v1  ;;  %2931 = vmatprep.mubr.f32.mxu0 %v10554_v60 }
 0x398   : > { %5934 = vmatprep.mubr.f32.mxu1 %v11027_v62 }
 0x39a   : > { %2933 = vmatmul.mubr.f32.gmra.mrb[36].mxu0 %v10907_v57 }
 0x39b   : > { %5935 = vmatmul.mubr.f32.vlgmr.msra.gmra.mrb[64].mxu1 %v11030_v36  ;;  %2938 = vmatprep.mubr.f32.mxu0 %v10554_v60 }
 0x39c   : > { %5937 = vmatprep.mubr.f32.mxu1 %v11032_v44 }
 0x39e   : > { %2940 = vmatmul.mubr.f32.gmra.mrb[38].mxu0 %v10909_v25 }
 0x39f   : > { %5938 = vmatmul.mubr.f32.gmra.mrb[66].mxu1 %v11033_v11  ;;  %2945 = vmatprep.mubr.f32.mxu0 %v10554_v60 }
 0x3a0   : > { %5940 = vmatprep.mubr.f32.mxu1 %v10879_v47 }
 0x3a2   : > { %2947 = vmatmul.mubr.f32.gmra.mrb[40].mxu0 %v10910_v6 }
 0x3a3   : > { %5941 = vmatmul.mubr.f32.gmra.mrb[68].mxu1 %v10883_v19  ;;  %2952 = vmatprep.mubr.f32.mxu0 %v10554_v60 }
 0x3a4   : > { %5943 = vmatprep.mubr.f32.mxu1 %v11035_v56 }
 0x3a6   : > { %2954 = vmatmul.mubr.f32.gmra.mrb[42].mxu0 %v8557_v8 }
 0x3a7   : > { %5944 = vmatmul.mubr.f32.gmra.mrb[70].mxu1 %v10888_v34  ;;  %2959 = vmatprep.mubr.f32.mxu0 %v10554_v60 }
 0x3a8   : > { %5946 = vmatprep.mubr.f32.mxu1 %v10889_v45 }
 0x3aa   : > { %2961 = vmatmul.mubr.f32.gmra.mrb[44].mxu0 %v8584_v5 }
 0x3ab   : > { %5947 = vmatmul.mubr.f32.gmra.mrb[72].mxu1 %v10893_v40  ;;  %2966 = vmatprep.mubr.f32.mxu0 %v10554_v60 }
 0x3ac   : > { %5949 = vmatprep.mubr.f32.mxu1 %v10894_v0 }
 0x3ae   : > { %2968 = vmatmul.mubr.f32.gmra.mrb[46].mxu0 %v8600_v30 }
 0x3af   : > { %5950 = vmatmul.mubr.f32.gmra.mrb[74].mxu1 %v10896_v31  ;;  %2973 = vmatprep.mubr.f32.mxu0 %v10554_v60  ;;  %v11044_v31 = vld [vmem:[#allocation15_spill] sm:$0xff] }
 0x3b0   : > { %5952 = vmatprep.mubr.f32.mxu1 %v10897_v61 }
 0x3b2   : > { %2975 = vmatmul.mubr.f32.gmra.mrb[48].mxu0 %v8624_v20 }
 0x3b3   : > { %5953 = vmatmul.mubr.f32.gmra.mrb[76].mxu1 %v10899_v58  ;;  %2980 = vmatprep.mubr.f32.mxu0 %v10554_v60 }
 0x3b4   : > { %5955 = vmatprep.mubr.f32.mxu1 %v10900_v54  ;;  %v11041_v54 = vld [vmem:[#allocation12_spill] sm:$0xff] }
 0x3b6   : > { %2982 = vmatmul.mubr.f32.gmra.mrb[50].mxu0 %v8637_v37 }
 0x3b7   : > { %5956 = vmatmul.mubr.f32.gmra.mrb[78].mxu1 %v10902_v32  ;;  %2987 = vmatprep.mubr.f32.mxu0 %v10554_v60 }
 0x3b8   : > { %5958 = vmatprep.mubr.f32.mxu1 %v10903_v35  ;;  %v11045_v35 = vld [vmem:[#allocation16_spill] sm:$0xff] }
 0x3ba   : > { %2989 = vmatmul.mubr.f32.gmra.mrb[52].mxu0 %v8663_v46 }
 0x3bb   : > { %5959 = vmatmul.mubr.f32.gmra.mrb[80].mxu1 %v10906_v21  ;;  %2994 = vmatprep.mubr.f32.mxu0 %v10554_v60 }
 0x3bc   : > { %5961 = vmatprep.mubr.f32.mxu1 %v10907_v57 }
 0x3be   : > { %2996 = vmatmul.mubr.f32.gmra.mrb[54].mxu0 %v8676_v52 }
 0x3bf   : > { %5962 = vmatmul.mubr.f32.gmra.mrb[82].mxu1 %v10909_v25  ;;  %3001 = vmatprep.mubr.f32.mxu0 %v10554_v60 }
 0x3c0   : > { %5964 = vmatprep.mubr.f32.mxu1 %v10910_v6  ;;  %v11043_v6 = vld [vmem:[#allocation14_spill] sm:$0xff] }
 0x3c2   : > { %3003 = vmatmul.mubr.f32.gmra.mrb[56].mxu0 %v11017_v41 }
 0x3c3   : > { %5965 = vmatmul.mubr.f32.gmra.mrb[84].mxu1 %v8557_v8  ;;  %3008 = vmatprep.mubr.f32.mxu0 %v10554_v60 }
 0x3c4   : > { %5967 = vmatprep.mubr.f32.mxu1 %v8584_v5 }
 0x3c6   : > { %3010 = vmatmul.mubr.f32.gmra.mrb[58].mxu0 %v11020_v51 }
 0x3c7   : > { %5968 = vmatmul.mubr.f32.gmra.mrb[86].mxu1 %v8600_v30  ;;  %3015 = vmatprep.mubr.f32.mxu0 %v10554_v60 }
 0x3c8   : > { %5970 = vmatprep.mubr.f32.mxu1 %v8624_v20  ;;  %v641_v20 = vlaneseq }
 0x3ca   : > { %3017 = vmatmul.mubr.f32.gmra.mrb[60].mxu0 %v8734_v55  ;;  %v9747_v8 = vshrl.u32 %v641_v20, 7 }
 0x3cb   : > { %5971 = vmatmul.mubr.f32.gmra.mrb[88].mxu1 %v8637_v37  ;;  %3022 = vmatprep.mubr.f32.mxu0 %v10554_v60  ;;  %v9753_v60 = vld [vmem:[%s10078_s2] sm:$0x7] }
 0x3cc   : > { %5973 = vmatprep.mubr.f32.mxu1 %v8663_v46  ;;  %v643_v5 = vsub.s32 0, %v9747_v8  ;;  %v647_v30 = vsub.s32 1, %v9747_v8 }
 0x3ce   : > { %3024 = vmatmul.mubr.f32.gmra.mrb[62].mxu0 %v10917_v1  ;;  %v9757_v37 = vrot.slane %v9753_v60, %v643_v5  ;;  %v9760_v46 = vrot.slane %v9753_v60, %v647_v30  ;;  %v11052_v30 = vld [vmem:[#allocation28_spill] sm:$0xff] }
 0x3cf   : > { %5974 = vmatmul.mubr.f32.gmra.mrb[90].mxu1 %v8676_v52 }
 0x3d0   : > { %5976 = vmatprep.mubr.f32.mxu1 %v11017_v41  ;;  %v762_v61 = vadd.f32 %v11041_v54, %v9760_v46  ;;  %v773_v57 = vadd.f32 %v11043_v6, %v9760_v46  ;;  %v782_v58 = vadd.f32 %v11044_v31, %v9757_v37  ;;  %v784_v10 = vadd.f32 %v11045_v35, %v9760_v46 }
 0x3d1   : > { %v793_v24 = vadd.f32 %v11046_v14, %v9757_v37  ;;  %v804_v62 = vadd.f32 %v11048_v17, %v9757_v37  ;;  %v806_v39 = vadd.f32 %v11049_v49, %v9760_v46  ;;  %v815_v56 = vadd.f32 %v11050_v29, %v9757_v37 }
 0x3d2   : > { %v817_v23 = vadd.f32 %v11051_v43, %v9760_v46 }
 0x3d3   : > { %5977 = vmatmul.mubr.f32.gmra.mrb[92].mxu1 %v11020_v51  ;;  %v11047_v51 = vld [vmem:[#allocation25_spill] sm:$0xff] }
 0x3d4   : > { %5979 = vmatprep.mubr.f32.mxu1 %v8734_v55  ;;  %v11040_v55 = vld [vmem:[#allocation11_spill] sm:$0xff]  ;;  %v795_v42 = vadd.f32 %v11047_v51, %v9760_v46 }
 0x3d5   : > { %v760_v52 = vadd.f32 %v11040_v55, %v9757_v37  ;;  %v826_v55 = vadd.f32 %v11052_v30, %v9757_v37 }
 0x3d7   : > { %5980 = vmatmul.mubr.f32.gmra.mrb[94].mxu1 %v10917_v1  ;;  %v11042_v1 = vld [vmem:[#allocation13_spill] sm:$0xff] }
 0x3d8   : > { %v771_v21 = vadd.f32 %v11042_v1, %v9757_v37 }
 0x425   : > { %v2808_v25 = vpop.f32.mrb[0].mxu0 }
 0x426   : > { %v6383_v19 = vadd.f32 %v2808_v25, %v760_v52  ;;  %v2810_v45 = vpop.f32.mrb[1].mxu0  ;;  %v11053_v52 = vld [vmem:[#allocation29_spill] sm:$0xff] }
 0x427   : > { %v6385_v32 = vadd.f32 %v2810_v45, %v762_v61  ;;  %v828_v54 = vadd.f32 %v11053_v52, %v9760_v46 }
 0x428   : > { %5004 = vst [vmem:[%s9769_s25] sm:$0xff] %v6383_v19 }
 0x429   : > { %5005 = vst [vmem:[%s9769_s25 + $0x8] sm:$0xff] %v6385_v32  ;;  %v2815_v40 = vpop.f32.mrb[2].mxu0  ;;  %v11054_v32 = vld [vmem:[#allocation87_spill] sm:$0xff] }
 0x42a   : > { %v6387_v47 = vadd.f32 %v2815_v40, %v771_v21  ;;  %v2817_v34 = vpop.f32.mrb[3].mxu0  ;;  %v837_v1 = vadd.f32 %v11054_v32, %v9757_v37  ;;  %v11055_v21 = vld [vmem:[#allocation37_spill] sm:$0xff] }
 0x42b   : > { %v6389_v0 = vadd.f32 %v2817_v34, %v773_v57  ;;  %v839_v6 = vadd.f32 %v11055_v21, %v9760_v46 }
 0x42c   : > { %5007 = vst [vmem:[%s9769_s25 + $0x18] sm:$0xff] %v6387_v47 }
 0x42d   : > { %5008 = vst [vmem:[%s9769_s25 + $0x20] sm:$0xff] %v6389_v0  ;;  %v2822_v13 = vpop.f32.mrb[4].mxu0  ;;  %v11056_v0 = vld [vmem:[#allocation38_spill] sm:$0xff] }
 0x42e   : > { %v6391_v12 = vadd.f32 %v2822_v13, %v782_v58  ;;  %v2824_v28 = vpop.f32.mrb[5].mxu0  ;;  %v848_v31 = vadd.f32 %v11056_v0, %v9757_v37  ;;  %v11057_v58 = vld [vmem:[#allocation39_spill] sm:$0xff] }
 0x42f   : > { %v6393_v41 = vadd.f32 %v2824_v28, %v784_v10  ;;  %v850_v35 = vadd.f32 %v11057_v58, %v9760_v46 }
 0x430   : > { %5010 = vst [vmem:[%s9769_s25 + $0x30] sm:$0xff] %v6391_v12 }
 0x431   : > { %5011 = vst [vmem:[%s9769_s25 + $0x38] sm:$0xff] %v6393_v41  ;;  %v2829_v7 = vpop.f32.mrb[6].mxu0  ;;  %v11058_v41 = vld [vmem:[#allocation40_spill] sm:$0xff] }
 0x432   : > { %v6395_v26 = vadd.f32 %v2829_v7, %v793_v24  ;;  %v2831_v2 = vpop.f32.mrb[7].mxu0  ;;  %v859_v14 = vadd.f32 %v11058_v41, %v9757_v37  ;;  %v11059_v24 = vld [vmem:[#allocation42_spill] sm:$0xff] }
 0x433   : > { %v6397_v59 = vadd.f32 %v2831_v2, %v795_v42  ;;  %v861_v51 = vadd.f32 %v11059_v24, %v9760_v46 }
 0x434   : > { %5013 = vst [vmem:[%s9769_s25 + $0x48] sm:$0xff] %v6395_v26 }
 0x435   : > { %5014 = vst [vmem:[%s9769_s25 + $0x50] sm:$0xff] %v6397_v59  ;;  %v2836_v36 = vpop.f32.mrb[8].mxu0  ;;  %v11060_v59 = vld [vmem:[#allocation43_spill] sm:$0xff] }
 0x436   : > { %v6399_v18 = vadd.f32 %v2836_v36, %v804_v62  ;;  %v2838_v44 = vpop.f32.mrb[9].mxu0  ;;  %v870_v17 = vadd.f32 %v11060_v59, %v9757_v37  ;;  %v11061_v62 = vld [vmem:[#allocation89_spill] sm:$0xff] }
 0x437   : > { %v6401_v11 = vadd.f32 %v2838_v44, %v806_v39  ;;  %v872_v49 = vadd.f32 %v11061_v62, %v9760_v46 }
 0x438   : > { %5016 = vst [vmem:[%s9769_s25 + $0x60] sm:$0xff] %v6399_v18 }
 0x439   : > { %5017 = vst [vmem:[%s9769_s25 + $0x68] sm:$0xff] %v6401_v11  ;;  %v2843_v33 = vpop.f32.mrb[10].mxu0  ;;  %v11062_v11 = vld [vmem:[#allocation48_spill] sm:$0xff] }
 0x43a   : > { %v6403_v22 = vadd.f32 %v2843_v33, %v815_v56  ;;  %v2845_v20 = vpop.f32.mrb[11].mxu0  ;;  %v881_v29 = vadd.f32 %v11062_v11, %v9757_v37  ;;  %v11063_v56 = vld [vmem:[#allocation52_spill] sm:$0xff]  ;;  %v11074_v11 = vld [vmem:[#allocation70_spill] sm:$0xff] }
 0x43b   : > { %v6405_v5 = vadd.f32 %v2845_v20, %v817_v23  ;;  %v883_v43 = vadd.f32 %v11063_v56, %v9760_v46  ;;  %v11075_v56 = vld [vmem:[#allocation63_spill] sm:$0xff] }
 0x43c   : > { %5019 = vst [vmem:[%s9769_s25 + $0x78] sm:$0xff] %v6403_v22 }
 0x43d   : > { %5020 = vst [vmem:[%s9769_s25 + $0x80] sm:$0xff] %v6405_v5  ;;  %v2850_v61 = vpop.f32.mrb[12].mxu0  ;;  %v11064_v5 = vld [vmem:[#allocation45_spill] sm:$0xff] }
 0x43e   : > { %v6407_v25 = vadd.f32 %v2850_v61, %v826_v55  ;;  %v2852_v19 = vpop.f32.mrb[13].mxu0  ;;  %v892_v30 = vadd.f32 %v11064_v5, %v9757_v37  ;;  %v11065_v55 = vld [vmem:[#allocation92_spill] sm:$0xff] }
 0x43f   : > { %v6409_v45 = vadd.f32 %v2852_v19, %v828_v54  ;;  %v894_v52 = vadd.f32 %v11065_v55, %v9760_v46  ;;  %v11077_v55 = vld [vmem:[#allocation74_spill] sm:$0xff] }
 0x440   : > { %5022 = vst [vmem:[%s9769_s25 + $0x90] sm:$0xff] %v6407_v25 }
 0x441   : > { %5023 = vst [vmem:[%s9769_s25 + $0x98] sm:$0xff] %v6409_v45  ;;  %v2857_v57 = vpop.f32.mrb[14].mxu0  ;;  %v11066_v45 = vld [vmem:[#allocation54_spill] sm:$0xff] }
 0x442   : > { %v6411_v40 = vadd.f32 %v2857_v57, %v837_v1  ;;  %v2859_v47 = vpop.f32.mrb[15].mxu0  ;;  %v903_v32 = vadd.f32 %v11066_v45, %v9757_v37  ;;  %v11067_v1 = vld [vmem:[#allocation57_spill] sm:$0xff] }
 0x443   : > { %v6413_v34 = vadd.f32 %v2859_v47, %v839_v6  ;;  %v905_v21 = vadd.f32 %v11067_v1, %v9760_v46  ;;  %v11078_v1 = vld [vmem:[#allocation102_spill] sm:$0xff] }
 0x444   : > { %5025 = vst [vmem:[%s9769_s25 + $0xa8] sm:$0xff] %v6411_v40 }
 0x445   : > { %5026 = vst [vmem:[%s9769_s25 + $0xb0] sm:$0xff] %v6413_v34  ;;  %v2864_v10 = vpop.f32.mrb[16].mxu0  ;;  %v11068_v34 = vld [vmem:[#allocation32_spill] sm:$0xff] }
 0x446   : > { %v6415_v13 = vadd.f32 %v2864_v10, %v848_v31  ;;  %v2866_v12 = vpop.f32.mrb[17].mxu0  ;;  %v914_v0 = vadd.f32 %v11068_v34, %v9757_v37  ;;  %v11069_v31 = vld [vmem:[#allocation62_spill] sm:$0xff] }
 0x447   : > { %v6417_v28 = vadd.f32 %v2866_v12, %v850_v35  ;;  %v916_v58 = vadd.f32 %v11069_v31, %v9760_v46 }
 0x448   : > { %5028 = vst [vmem:[%s9769_s25 + $0xc0] sm:$0xff] %v6415_v13 }
 0x449   : > { %5029 = vst [vmem:[%s9769_s25 + $0xc8] sm:$0xff] %v6417_v28  ;;  %v2871_v42 = vpop.f32.mrb[18].mxu0  ;;  %v11070_v28 = vld [vmem:[#allocation64_spill] sm:$0xff] }
 0x44a   : > { %v6419_v7 = vadd.f32 %v2871_v42, %v859_v14  ;;  %v2873_v26 = vpop.f32.mrb[19].mxu0  ;;  %v925_v41 = vadd.f32 %v11070_v28, %v9757_v37  ;;  %v11071_v14 = vld [vmem:[#allocation66_spill] sm:$0xff] }
 0x44b   : > { %v6421_v2 = vadd.f32 %v2873_v26, %v861_v51  ;;  %v927_v24 = vadd.f32 %v11071_v14, %v9760_v46 }
 0x44c   : > { %5031 = vst [vmem:[%s9769_s25 + $0xd8] sm:$0xff] %v6419_v7 }
 0x44d   : > { %5032 = vst [vmem:[%s9769_s25 + $0xe0] sm:$0xff] %v6421_v2  ;;  %v2878_v39 = vpop.f32.mrb[20].mxu0  ;;  %v11072_v2 = vld [vmem:[#allocation98_spill] sm:$0xff] }
 0x44e   : > { %v6423_v36 = vadd.f32 %v2878_v39, %v870_v17  ;;  %v2880_v18 = vpop.f32.mrb[21].mxu0  ;;  %v6446_v59 = vadd.f32 %v11072_v2, %v9757_v37  ;;  %v11073_v17 = vld [vmem:[#allocation68_spill] sm:$0xff] }
 0x44f   : > { %v6425_v44 = vadd.f32 %v2880_v18, %v872_v49  ;;  %v6448_v62 = vadd.f32 %v11073_v17, %v9760_v46  ;;  %v11082_v17 = vld [vmem:[#allocation91_spill] sm:$0xff] }
 0x450   : > { %5034 = vst [vmem:[%s9769_s25 + $0xf0] sm:$0xff] %v6423_v36 }
 0x451   : > { %5035 = vst [vmem:[%s9769_s25 + $0xf8] sm:$0xff] %v6425_v44  ;;  %v2885_v23 = vpop.f32.mrb[22].mxu0  ;;  %v651_v44 = vsub.s32 2, %v9747_v8 }
 0x452   : > { %v6427_v33 = vadd.f32 %v2885_v23, %v881_v29  ;;  %v2887_v22 = vpop.f32.mrb[23].mxu0  ;;  %v6450_v29 = vadd.f32 %v11074_v11, %v9757_v37 }
 0x453   : > { %v6429_v20 = vadd.f32 %v2887_v22, %v883_v43  ;;  %v6452_v43 = vadd.f32 %v11075_v56, %v9760_v46  ;;  %v9873_v5 = vrot.slane %v9753_v60, %v651_v44 }
 0x454   : > { %5037 = vst [vmem:[%s9769_s25 + $0x108] sm:$0xff] %v6427_v33 }
 0x455   : > { %5038 = vst [vmem:[%s9769_s25 + $0x110] sm:$0xff] %v6429_v20  ;;  %v2892_v54 = vpop.f32.mrb[24].mxu0 }
 0x456   : > { %v6431_v61 = vadd.f32 %v2892_v54, %v892_v30  ;;  %v2894_v25 = vpop.f32.mrb[25].mxu0  ;;  %v11076_v30 = vld [vmem:[#allocation73_spill] sm:$0xff] }
 0x457   : > { %v6433_v19 = vadd.f32 %v2894_v25, %v894_v52  ;;  %v6454_v8 = vadd.f32 %v11076_v30, %v9757_v37  ;;  %v6456_v52 = vadd.f32 %v11077_v55, %v9760_v46  ;;  %v11085_v30 = vld [vmem:[#allocation95_spill] sm:$0xff] }
 0x458   : > { %5040 = vst [vmem:[%s9769_s25 + $0x120] sm:$0xff] %v6431_v61 }
 0x459   : > { %5041 = vst [vmem:[%s9769_s25 + $0x128] sm:$0xff] %v6433_v19  ;;  %v2899_v6 = vpop.f32.mrb[26].mxu0 }
 0x45a   : > { %v6435_v57 = vadd.f32 %v2899_v6, %v903_v32  ;;  %v2901_v40 = vpop.f32.mrb[27].mxu0 }
 0x45b   : > { %v6437_v47 = vadd.f32 %v2901_v40, %v905_v21  ;;  %v6458_v21 = vadd.f32 %v11078_v1, %v9757_v37 }
 0x45c   : > { %5043 = vst [vmem:[%s9769_s25 + $0x138] sm:$0xff] %v6435_v57  ;;  %v11079_v57 = vld [vmem:[#allocation105_spill] sm:$0xff] }
 0x45d   : > { %5044 = vst [vmem:[%s9769_s25 + $0x140] sm:$0xff] %v6437_v47  ;;  %v2906_v35 = vpop.f32.mrb[28].mxu0  ;;  %v6460_v40 = vadd.f32 %v11079_v57, %v9760_v46 }
 0x45e   : > { %v6439_v10 = vadd.f32 %v2906_v35, %v914_v0  ;;  %v2908_v13 = vpop.f32.mrb[29].mxu0 }
 0x45f   : > { %v6441_v12 = vadd.f32 %v2908_v13, %v916_v58  ;;  %v11080_v13 = vld [vmem:[#allocation75_spill] sm:$0xff] }
 0x460   : > { %5046 = vst [vmem:[%s9769_s25 + $0x150] sm:$0xff] %v6439_v10 }
 0x461   : > { %5047 = vst [vmem:[%s9769_s25 + $0x158] sm:$0xff] %v6441_v12  ;;  %v2913_v51 = vpop.f32.mrb[30].mxu0  ;;  %v6462_v12 = vadd.f32 %v11080_v13, %v9757_v37 }
 0x462   : > { %v6443_v42 = vadd.f32 %v2913_v51, %v925_v41  ;;  %v2915_v7 = vpop.f32.mrb[31].mxu0  ;;  %v11081_v41 = vld [vmem:[#allocation76_spill] sm:$0xff] }
 0x463   : > { %v6445_v26 = vadd.f32 %v2915_v7, %v927_v24  ;;  %v6464_v14 = vadd.f32 %v11081_v41, %v9760_v46 }
 0x464   : > { %5049 = vst [vmem:[%s9769_s25 + $0x168] sm:$0xff] %v6443_v42 }
 0x465   : > { %5050 = vst [vmem:[%s9769_s25 + $0x170] sm:$0xff] %v6445_v26  ;;  %v2920_v49 = vpop.f32.mrb[32].mxu0 }
 0x466   : > { %v6447_v39 = vadd.f32 %v6446_v59, %v2920_v49  ;;  %v2922_v36 = vpop.f32.mrb[33].mxu0 }
 0x467   : > { %v6449_v18 = vadd.f32 %v6448_v62, %v2922_v36  ;;  %v6466_v62 = vadd.f32 %v11082_v17, %v9757_v37 }
 0x468   : > { %5052 = vst [vmem:[%s9769_s25 + $0x180] sm:$0xff] %v6447_v39  ;;  %v11083_v39 = vld [vmem:[#allocation112_spill] sm:$0xff] }
 0x469   : > { %5053 = vst [vmem:[%s9769_s25 + $0x188] sm:$0xff] %v6449_v18  ;;  %v2927_v23 = vpop.f32.mrb[34].mxu0  ;;  %v6468_v36 = vadd.f32 %v11083_v39, %v9760_v46 }
 0x46a   : > { %v6451_v33 = vadd.f32 %v6450_v29, %v2927_v23  ;;  %v2929_v22 = vpop.f32.mrb[35].mxu0 }
 0x46b   : > { %v6453_v20 = vadd.f32 %v6452_v43, %v2929_v22 }
 0x46c   : > { %5055 = vst [vmem:[%s9769_s25 + $0x198] sm:$0xff] %v6451_v33  ;;  %v11084_v33 = vld [vmem:[#allocation61_spill] sm:$0xff] }
 0x46d   : > { %5056 = vst [vmem:[%s9769_s25 + $0x1a0] sm:$0xff] %v6453_v20  ;;  %v2934_v54 = vpop.f32.mrb[36].mxu0  ;;  %v6470_v22 = vadd.f32 %v11084_v33, %v9757_v37 }
 0x46e   : > { %v6455_v61 = vadd.f32 %v6454_v8, %v2934_v54  ;;  %v5936_v25 = vpop.f32.mrb[64].mxu1  ;;  %v2936_v19 = vpop.f32.mrb[37].mxu0  ;;  %v6472_v8 = vadd.f32 %v11085_v30, %v9760_v46 }
 0x46f   : > { %v6510_v45 = vadd.f32 %v5936_v25, %v9873_v5  ;;  %v6457_v32 = vadd.f32 %v6456_v52, %v2936_v19  ;;  %v4814_v60 = vpop.f32.mrb[65].mxu1 }
 0x470   : > { %5058 = vst [vmem:[%s9769_s25 + $0x1b0] sm:$0xff] %v6455_v61  ;;  %v6511_v6 = vadd.f32 %v4814_v60, %v9873_v5 }
 0x471   : > { %5009 = vst [vmem:[%s9769_s25 + $0x28] sm:$0xff] %v6510_v45  ;;  %5059 = vst [vmem:[%s9769_s25 + $0x1b8] sm:$0xff] %v6457_v32  ;;  %v2941_v47 = vpop.f32.mrb[38].mxu0  ;;  %v11086_v32 = vld [vmem:[#allocation17_spill] sm:$0xff] }
 0x472   : > { %5006 = vst [vmem:[%s9769_s25 + $0x10] sm:$0xff] %v6511_v6  ;;  %v6459_v34 = vadd.f32 %v6458_v21, %v2941_v47  ;;  %v5939_v0 = vpop.f32.mrb[66].mxu1  ;;  %v2943_v31 = vpop.f32.mrb[39].mxu0  ;;  %v6474_v60 = vadd.f32 %v11086_v32, %v9757_v37  ;;  %v11087_v21 = vld [vmem:[#allocation118_spill] sm:$0xff] }
 0x473   : > { %v6512_v58 = vadd.f32 %v5939_v0, %v9873_v5  ;;  %v6461_v35 = vadd.f32 %v6460_v40, %v2943_v31  ;;  %v4826_v10 = vpop.f32.mrb[67].mxu1  ;;  %v6476_v6 = vadd.f32 %v11087_v21, %v9760_v46 }
 0x474   : > { %5061 = vst [vmem:[%s9769_s25 + $0x1c8] sm:$0xff] %v6459_v34  ;;  %v6513_v28 = vadd.f32 %v4826_v10, %v9873_v5 }
 0x475   : > { %5015 = vst [vmem:[%s9769_s25 + $0x58] sm:$0xff] %v6512_v58  ;;  %5062 = vst [vmem:[%s9769_s25 + $0x1d0] sm:$0xff] %v6461_v35  ;;  %v2948_v24 = vpop.f32.mrb[40].mxu0  ;;  %v11088_v35 = vld [vmem:[#allocation122_spill] sm:$0xff] }
 0x476   : > { %5012 = vst [vmem:[%s9769_s25 + $0x40] sm:$0xff] %v6513_v28  ;;  %v6463_v51 = vadd.f32 %v6462_v12, %v2948_v24  ;;  %v5942_v42 = vpop.f32.mrb[68].mxu1  ;;  %v2950_v7 = vpop.f32.mrb[41].mxu0  ;;  %v6478_v10 = vadd.f32 %v11088_v35, %v9757_v37  ;;  %v11089_v12 = vld [vmem:[#allocation50_spill] sm:$0xff] }
 0x477   : > { %v6514_v26 = vadd.f32 %v5942_v42, %v9873_v5  ;;  %v6465_v2 = vadd.f32 %v6464_v14, %v2950_v7  ;;  %v4838_v59 = vpop.f32.mrb[69].mxu1  ;;  %v6480_v28 = vadd.f32 %v11089_v12, %v9760_v46 }
 0x478   : > { %5064 = vst [vmem:[%s9769_s25 + $0x1e0] sm:$0xff] %v6463_v51  ;;  %v6515_v49 = vadd.f32 %v4838_v59, %v9873_v5 }
 0x479   : > { %5021 = vst [vmem:[%s9769_s25 + $0x88] sm:$0xff] %v6514_v26  ;;  %5065 = vst [vmem:[%s9769_s25 + $0x1e8] sm:$0xff] %v6465_v2  ;;  %v2955_v18 = vpop.f32.mrb[42].mxu0  ;;  %v11090_v2 = vld [vmem:[#allocation129_spill] sm:$0xff] }
 0x47a   : > { %5018 = vst [vmem:[%s9769_s25 + $0x70] sm:$0xff] %v6515_v49  ;;  %v6467_v44 = vadd.f32 %v6466_v62, %v2955_v18  ;;  %v5945_v11 = vpop.f32.mrb[70].mxu1  ;;  %v2957_v29 = vpop.f32.mrb[43].mxu0  ;;  %v6482_v59 = vadd.f32 %v11090_v2, %v9757_v37  ;;  %v11091_v62 = vld [vmem:[#allocation65_spill] sm:$0xff] }
 0x47b   : > { %v6516_v56 = vadd.f32 %v5945_v11, %v9873_v5  ;;  %v6469_v43 = vadd.f32 %v6468_v36, %v2957_v29  ;;  %v4850_v23 = vpop.f32.mrb[71].mxu1  ;;  %v6484_v49 = vadd.f32 %v11091_v62, %v9760_v46 }
 0x47c   : > { %5067 = vst [vmem:[%s9769_s25 + $0x1f8] sm:$0xff] %v6467_v44  ;;  %v6517_v20 = vadd.f32 %v4850_v23, %v9873_v5 }
 0x47d   : > { %5027 = vst [vmem:[%s9769_s25 + $0xb8] sm:$0xff] %v6516_v56  ;;  %5068 = vst [vmem:[%s9769_s25 + $0x200] sm:$0xff] %v6469_v43  ;;  %v2962_v55 = vpop.f32.mrb[44].mxu0  ;;  %v11092_v43 = vld [vmem:[#allocation131_spill] sm:$0xff] }
 0x47e   : > { %5024 = vst [vmem:[%s9769_s25 + $0xa0] sm:$0xff] %v6517_v20  ;;  %v6471_v52 = vadd.f32 %v6470_v22, %v2962_v55  ;;  %v5948_v54 = vpop.f32.mrb[72].mxu1  ;;  %v2964_v61 = vpop.f32.mrb[45].mxu0  ;;  %v6486_v23 = vadd.f32 %v11092_v43, %v9757_v37  ;;  %v6488_v22 = vadd.f32 %v9492_v48, %v9760_v46 }
 0x47f   : > { %v6518_v25 = vadd.f32 %v5948_v54, %v9873_v5  ;;  %v6473_v19 = vadd.f32 %v6472_v8, %v2964_v61  ;;  %v4862_v45 = vpop.f32.mrb[73].mxu1 }
 0x480   : > { %5070 = vst [vmem:[%s9769_s25 + $0x210] sm:$0xff] %v6471_v52  ;;  %v6519_v1 = vadd.f32 %v4862_v45, %v9873_v5 }
 0x481   : > { %5033 = vst [vmem:[%s9769_s25 + $0xe8] sm:$0xff] %v6518_v25  ;;  %5071 = vst [vmem:[%s9769_s25 + $0x218] sm:$0xff] %v6473_v19  ;;  %v2969_v57 = vpop.f32.mrb[46].mxu0  ;;  %v6490_v25 = vadd.f32 %v9501_v27, %v9757_v37  ;;  %v6492_v19 = vadd.f32 %v9504_v50, %v9760_v46 }
 0x482   : > { %5030 = vst [vmem:[%s9769_s25 + $0xd0] sm:$0xff] %v6519_v1  ;;  %v6475_v40 = vadd.f32 %v6474_v60, %v2969_v57  ;;  %v5951_v47 = vpop.f32.mrb[74].mxu1  ;;  %v2971_v34 = vpop.f32.mrb[47].mxu0  ;;  %v6494_v57 = vadd.f32 %v9513_v53, %v9757_v37 }
 0x483   : > { %v6520_v0 = vadd.f32 %v5951_v47, %v9873_v5  ;;  %v6477_v31 = vadd.f32 %v6476_v6, %v2971_v34  ;;  %v4874_v58 = vpop.f32.mrb[75].mxu1 }
 0x484   : > { %5073 = vst [vmem:[%s9769_s25 + $0x228] sm:$0xff] %v6475_v40  ;;  %v6521_v13 = vadd.f32 %v4874_v58, %v9873_v5  ;;  %v6496_v40 = vadd.f32 %v9516_v3, %v9760_v46 }
 0x485   : > { %5039 = vst [vmem:[%s9769_s25 + $0x118] sm:$0xff] %v6520_v0  ;;  %5074 = vst [vmem:[%s9769_s25 + $0x230] sm:$0xff] %v6477_v31  ;;  %v2976_v41 = vpop.f32.mrb[48].mxu0 }
 0x486   : > { %5036 = vst [vmem:[%s9769_s25 + $0x100] sm:$0xff] %v6521_v13  ;;  %v6479_v14 = vadd.f32 %v6478_v10, %v2976_v41  ;;  %v5954_v24 = vpop.f32.mrb[76].mxu1  ;;  %v2978_v51 = vpop.f32.mrb[49].mxu0  ;;  %v6498_v10 = vadd.f32 %v9525_v38, %v9757_v37  ;;  %v6500_v13 = vadd.f32 %v9528_v4, %v9760_v46 }
 0x487   : > { %v6522_v42 = vadd.f32 %v5954_v24, %v9873_v5  ;;  %v6481_v7 = vadd.f32 %v6480_v28, %v2978_v51  ;;  %v4886_v26 = vpop.f32.mrb[77].mxu1 }
 0x488   : > { %5076 = vst [vmem:[%s9769_s25 + $0x240] sm:$0xff] %v6479_v14  ;;  %v6523_v17 = vadd.f32 %v4886_v26, %v9873_v5 }
 0x489   : > { %5045 = vst [vmem:[%s9769_s25 + $0x148] sm:$0xff] %v6522_v42  ;;  %5077 = vst [vmem:[%s9769_s25 + $0x248] sm:$0xff] %v6481_v7  ;;  %v2983_v39 = vpop.f32.mrb[50].mxu0  ;;  %v6502_v42 = vadd.f32 %v9537_v15, %v9757_v37  ;;  %v6504_v7 = vadd.f32 %v9540_v9, %v9760_v46 }
 0x48a   : > { %5042 = vst [vmem:[%s9769_s25 + $0x130] sm:$0xff] %v6523_v17  ;;  %v6483_v36 = vadd.f32 %v6482_v59, %v2983_v39  ;;  %v5957_v18 = vpop.f32.mrb[78].mxu1  ;;  %v2985_v44 = vpop.f32.mrb[51].mxu0  ;;  %v6506_v39 = vadd.f32 %v9549_v63, %v9757_v37 }
 0x48b   : > { %v6524_v11 = vadd.f32 %v5957_v18, %v9873_v5  ;;  %v6485_v29 = vadd.f32 %v6484_v49, %v2985_v44  ;;  %v4898_v56 = vpop.f32.mrb[79].mxu1 }
 0x48c   : > { %5079 = vst [vmem:[%s9769_s25 + $0x258] sm:$0xff] %v6483_v36  ;;  %v6525_v33 = vadd.f32 %v4898_v56, %v9873_v5  ;;  %v6508_v36 = vadd.f32 %v9552_v16, %v9760_v46 }
 0x48d   : > { %5051 = vst [vmem:[%s9769_s25 + $0x178] sm:$0xff] %v6524_v11  ;;  %5080 = vst [vmem:[%s9769_s25 + $0x260] sm:$0xff] %v6485_v29  ;;  %v2990_v20 = vpop.f32.mrb[52].mxu0 }
 0x48e   : > { %5048 = vst [vmem:[%s9769_s25 + $0x160] sm:$0xff] %v6525_v33  ;;  %v6487_v30 = vadd.f32 %v6486_v23, %v2990_v20  ;;  %v5960_v8 = vpop.f32.mrb[80].mxu1  ;;  %v2992_v55 = vpop.f32.mrb[53].mxu0 }
 0x48f   : > { %v6526_v52 = vadd.f32 %v5960_v8, %v9873_v5  ;;  %v6489_v54 = vadd.f32 %v6488_v22, %v2992_v55  ;;  %v4910_v61 = vpop.f32.mrb[81].mxu1 }
 0x490   : > { %5082 = vst [vmem:[%s9769_s25 + $0x270] sm:$0xff] %v6487_v30  ;;  %v6527_v48 = vadd.f32 %v4910_v61, %v9873_v5 }
 0x491   : > { %5057 = vst [vmem:[%s9769_s25 + $0x1a8] sm:$0xff] %v6526_v52  ;;  %5083 = vst [vmem:[%s9769_s25 + $0x278] sm:$0xff] %v6489_v54  ;;  %v2997_v45 = vpop.f32.mrb[54].mxu0 }
 0x492   : > { %5054 = vst [vmem:[%s9769_s25 + $0x190] sm:$0xff] %v6527_v48  ;;  %v6491_v32 = vadd.f32 %v6490_v25, %v2997_v45  ;;  %v5963_v60 = vpop.f32.mrb[82].mxu1  ;;  %v2999_v1 = vpop.f32.mrb[55].mxu0 }
 0x493   : > { %v6528_v21 = vadd.f32 %v5963_v60, %v9873_v5  ;;  %v6493_v6 = vadd.f32 %v6492_v19, %v2999_v1  ;;  %v4922_v27 = vpop.f32.mrb[83].mxu1 }
 0x494   : > { %5085 = vst [vmem:[%s9769_s25 + $0x288] sm:$0xff] %v6491_v32  ;;  %v6529_v50 = vadd.f32 %v4922_v27, %v9873_v5 }
 0x495   : > { %5063 = vst [vmem:[%s9769_s25 + $0x1d8] sm:$0xff] %v6528_v21  ;;  %5086 = vst [vmem:[%s9769_s25 + $0x290] sm:$0xff] %v6493_v6  ;;  %v3004_v47 = vpop.f32.mrb[56].mxu0 }
 0x496   : > { %5060 = vst [vmem:[%s9769_s25 + $0x1c0] sm:$0xff] %v6529_v50  ;;  %v6495_v34 = vadd.f32 %v6494_v57, %v3004_v47  ;;  %v5966_v0 = vpop.f32.mrb[84].mxu1  ;;  %v3006_v31 = vpop.f32.mrb[57].mxu0 }
 0x497   : > { %v6530_v58 = vadd.f32 %v5966_v0, %v9873_v5  ;;  %v6497_v35 = vadd.f32 %v6496_v40, %v3006_v31  ;;  %v4934_v53 = vpop.f32.mrb[85].mxu1 }
 0x498   : > { %5088 = vst [vmem:[%s9769_s25 + $0x2a0] sm:$0xff] %v6495_v34  ;;  %v6531_v3 = vadd.f32 %v4934_v53, %v9873_v5 }
 0x499   : > { %5069 = vst [vmem:[%s9769_s25 + $0x208] sm:$0xff] %v6530_v58  ;;  %5089 = vst [vmem:[%s9769_s25 + $0x2a8] sm:$0xff] %v6497_v35  ;;  %v3011_v12 = vpop.f32.mrb[58].mxu0 }
 0x49a   : > { %5066 = vst [vmem:[%s9769_s25 + $0x1f0] sm:$0xff] %v6531_v3  ;;  %v6499_v28 = vadd.f32 %v6498_v10, %v3011_v12  ;;  %v5969_v41 = vpop.f32.mrb[86].mxu1  ;;  %v3013_v14 = vpop.f32.mrb[59].mxu0 }
 0x49b   : > { %v6532_v24 = vadd.f32 %v5969_v41, %v9873_v5  ;;  %v6501_v51 = vadd.f32 %v6500_v13, %v3013_v14  ;;  %v4946_v38 = vpop.f32.mrb[87].mxu1 }
 0x49c   : > { %5091 = vst [vmem:[%s9769_s25 + $0x2b8] sm:$0xff] %v6499_v28  ;;  %v6533_v4 = vadd.f32 %v4946_v38, %v9873_v5 }
 0x49d   : > { %5075 = vst [vmem:[%s9769_s25 + $0x238] sm:$0xff] %v6532_v24  ;;  %5092 = vst [vmem:[%s9769_s25 + $0x2c0] sm:$0xff] %v6501_v51  ;;  %v3018_v26 = vpop.f32.mrb[60].mxu0 }
 0x49e   : > { %5072 = vst [vmem:[%s9769_s25 + $0x220] sm:$0xff] %v6533_v4  ;;  %v6503_v2 = vadd.f32 %v6502_v42, %v3018_v26  ;;  %v5972_v59 = vpop.f32.mrb[88].mxu1  ;;  %v3020_v17 = vpop.f32.mrb[61].mxu0 }
 0x49f   : > { %v6534_v62 = vadd.f32 %v5972_v59, %v9873_v5  ;;  %v6505_v49 = vadd.f32 %v6504_v7, %v3020_v17  ;;  %v4958_v15 = vpop.f32.mrb[89].mxu1 }
 0x4a0   : > { %5094 = vst [vmem:[%s9769_s25 + $0x2d0] sm:$0xff] %v6503_v2  ;;  %v6535_v9 = vadd.f32 %v4958_v15, %v9873_v5 }
 0x4a1   : > { %5081 = vst [vmem:[%s9769_s25 + $0x268] sm:$0xff] %v6534_v62  ;;  %5095 = vst [vmem:[%s9769_s25 + $0x2d8] sm:$0xff] %v6505_v49  ;;  %v3025_v18 = vpop.f32.mrb[62].mxu0 }
 0x4a2   : > { %5078 = vst [vmem:[%s9769_s25 + $0x250] sm:$0xff] %v6535_v9  ;;  %v6507_v44 = vadd.f32 %v6506_v39, %v3025_v18  ;;  %v5975_v11 = vpop.f32.mrb[90].mxu1  ;;  %v3027_v29 = vpop.f32.mrb[63].mxu0 }
 0x4a3   : > { %v6536_v63 = vadd.f32 %v5975_v11, %v9873_v5  ;;  %v6509_v37 = vadd.f32 %v6508_v36, %v3027_v29  ;;  %v4970_v56 = vpop.f32.mrb[91].mxu1 }
 0x4a4   : > { %5097 = vst [vmem:[%s9769_s25 + $0x2e8] sm:$0xff] %v6507_v44  ;;  %v6537_v43 = vadd.f32 %v4970_v56, %v9873_v5 }
 0x4a5   : > { %5087 = vst [vmem:[%s9769_s25 + $0x298] sm:$0xff] %v6536_v63  ;;  %5098 = vst [vmem:[%s9769_s25 + $0x2f0] sm:$0xff] %v6509_v37 }
 0x4a6   : > { %5084 = vst [vmem:[%s9769_s25 + $0x280] sm:$0xff] %v6537_v43  ;;  %v5978_v16 = vpop.f32.mrb[92].mxu1 }
 0x4a7   : > { %v6538_v46 = vadd.f32 %v5978_v16, %v9873_v5  ;;  %v4982_v23 = vpop.f32.mrb[93].mxu1 }
 0x4a8   : > { %v6539_v33 = vadd.f32 %v4982_v23, %v9873_v5 }
 0x4a9   : > { %5093 = vst [vmem:[%s9769_s25 + $0x2c8] sm:$0xff] %v6538_v46 }
 0x4aa   : > { %5090 = vst [vmem:[%s9769_s25 + $0x2b0] sm:$0xff] %v6539_v33  ;;  %v5981_v22 = vpop.f32.mrb[94].mxu1 }
 0x4ab   : > { %v6540_v20 = vadd.f32 %v5981_v22, %v9873_v5  ;;  %v4994_v30 = vpop.f32.mrb[95].mxu1 }
 0x4ac   : > { %v6541_v8 = vadd.f32 %v4994_v30, %v9873_v5 }
 0x4ad   : > { %5099 = vst [vmem:[%s9769_s25 + $0x2f8] sm:$0xff] %v6540_v20 }
 0x4ae   : > { %5096 = vst [vmem:[%s9769_s25 + $0x2e0] sm:$0xff] %v6541_v8 }
 0x4af   : > { %7159 = shalt.err (!%p7156_p7)
}
 0x4b0   : > { %s7160_s22 = scalar_lea.hbm %s10027_s27, 12288  ;;  %s7164_s9 = scalar_lea.hbm %s10079_s3, 24576 }
 0x4b1   : > { %p7161_p9 = scmp.ne.s32.totalorder %s10027_s27, %s7160_s22  ;;  %p7165_p5 = scmp.lt.u32.totalorder %s10027_s27, %s10079_s3 }
 0x4b2   : > { %p7166_p11 = scmp.lt.u32.totalorder %s7164_s9, %s7160_s22  ;;  %p7168_p4 = scmp.lt.u32.totalorder %s7160_s22, %s10027_s27 }
 0x4b3   : > { %p7162_p2 = pnand %p7161_p9, %p7339_p12 }
 0x4b4   : > { %p7167_p1 = por %p7166_p11, %p7165_p5 }
 0x4b5   : > { %p7163_p0 = pneg %p7162_p2 }
 0x4b6   : > { %p7169_p6 = por %p7168_p4, %p7167_p1 }
 0x4b8   : > { %p7170_p8 = pnand %p7169_p6, %p7163_p0 }
 0x4ba   : > { %7173 = shalt.err (!%p7170_p8)
}
 0x4bb   : > { %s7226_s4 = smov 384   ;;  %s7227_s25 = smov 24  }
 0x4bc   : > { %6966 = dma.vmem_to_hbm [thread:$0]  (%p7339_p12), %s10029_s5, 12288, %s10027_s27, %s5101_s16, %s7226_s4, %s7226_s4, %s7227_s25  }
 0x4bd PF: > { %s5130_s26 = sand.u32 1, %s7204_s12   ;;  %p11093_p10 = scmp.ne.s32.totalorder %s10428_s19, 0 }
 0x4be   : > { %p11094_p13 = scmp.ge.s32.totalorder %s7216_s15, 2  ;;  %s5131_s10 = scalar_lea.sflag [#allocation4], %s5130_s26 }
 0x4c0   : > { %p6977_p3 = pnand %p11094_p13, %p11093_p10 }
 0x4c2   : > { %7199 = dma.done.wait (!%p6977_p3), %s5131_s10, 12288  }
 0x4c3   : > { %7201 = vsyncadd (!%p6977_p3), %s5131_s10, 4294955008  ;;  %p17_p7 = scmp.ge.s32.totalorder %s7304_s24, 4   ;;  %s11095_s12 = smov %s7208_s13 }
 0x4c4   : > { %s11096_s13 = smov %s7212_s14  ;;  %s11097_s14 = smov %s7335_s17 }
 0x4c5   : > { %s11098_s15 = smov %s7304_s24  ;;  %19 = sbr.rel (!%p17_p7) target bundleno = 6 (0x6), region = 81 }
 0x4cc   :  { %5136 = vsyncpa [#allocation3], 1 }
 0x4cd   :  { %5138 = vsyncpa [#allocation3 + $0x1], 1 }
 0x4ce   :  { %5139 = vsyncpa [#allocation6], 1 }
 0x4cf   :  { %5140 = vsyncpa [#allocation4], 1 }
 0x4d0   :  { %5142 = vsyncpa [#allocation4 + $0x1], 1 }

</bundles_post_ra>
